<compile_context>
chip_gen: v7x
topology: tpu7x:2x2x1
jax: 0.10.0
libtpu: 0.0.40
codegen_flags: <defaults>
</compile_context>

<pallas_src>
import jax
import jax.numpy as jnp
from jax import lax
from jax.experimental import pallas as pl
from jax.experimental.pallas import tpu as pltpu

# Synthetic hyper-parameters consistent with the module's __init__.
WORD_EMBED = 16      # params.word_embed_size
LATENT = 16          # params.latent_variable_size
HIDDEN = 32          # params.decoder_rnn_size  (must equal WORD_EMBED + LATENT)
NUM_LAYERS = 2       # params.decoder_num_layers
VOCAB = 64           # params.word_vocab_size
BATCH = 2
SEQ = 8
VPAD = ((VOCAB + 127) // 128) * 128    # lane-dense padded logits width (=128)
BPAD = 8                               # sublane-padded batch


# --------------------------------------------------------------------------- #
#  Pallas kernel
# --------------------------------------------------------------------------- #
def decoder_residual_kernel(x_ref,        # [S*BP, H]  time-major, batch-padded input
                            w1_ih_ref,    # [L, H, 4H] W_ih^T per layer, LSTM 1 (bf16)
                            w1_hh_ref,    # [L, H, 4H] W_hh^T per layer, LSTM 1 (bf16)
                            b1_ref,       # [L, 1, 4H] b_ih + b_hh, LSTM 1 (f32)
                            w2_ih_ref,    # [L, H, 4H] LSTM 2 (bf16)
                            w2_hh_ref,    # [L, H, 4H] LSTM 2 (bf16)
                            b2_ref,       # [L, 1, 4H] LSTM 2 (f32)
                            fcw_ref,      # [H, Vpad]  fc weight^T, lane-padded (bf16)
                            fcb_ref,      # [1, Vpad]  (f32)
                            h0_ref,       # [L, BP, H]
                            c0_ref,       # [L, BP, H]
                            logits_ref,   # [S*BP, Vpad]
                            hN_ref,       # [L, BP, H]
                            cN_ref,       # [L, BP, H]
                            xproj_ref,    # scratch [S*BP, 4H] f32
                            out2_ref):    # scratch [S*BP, H]  f32
    L, BP, H = h0_ref.shape
    SB = x_ref.shape[0]
    S = SB // BP
    bf16 = jnp.bfloat16

    # ----- hoisted loop-invariant weights / biases (resident for whole loop) --
    w1_hh = [w1_hh_ref[l] for l in range(L)]          # [H,4H] bf16 each
    w1_ih = [w1_ih_ref[l] for l in range(1, L)]       # layer-0 input proj hoisted
    w2_ih = [w2_ih_ref[l] for l in range(L)]
    w2_hh = [w2_hh_ref[l] for l in range(L)]
    b1 = [b1_ref[l] for l in range(L)]                # [1,4H] f32 each
    b2 = [b2_ref[l] for l in range(L)]

    # ----- non-recurrent input projection for LSTM-1 layer 0, all timesteps ---
    # One [S*BP, H] @ [H, 4H] matmul outside the serial chain; result parked in
    # VMEM scratch so it does not occupy vregs across the unrolled loop.
    x_all = x_ref[...]                                # [S*BP, H] f32
    xproj_ref[...] = (jnp.dot(x_all.astype(bf16), w1_ih_ref[0],
                              preferred_element_type=jnp.float32) + b1[0])

    # ----- recurrent state lives in registers --------------------------------
    h1 = [h0_ref[l] for l in range(L)]
    c1 = [c0_ref[l] for l in range(L)]
    h2 = [h0_ref[l] for l in range(L)]
    c2 = [c0_ref[l] for l in range(L)]

    def cell(gates, c_prev):
        # PyTorch gate order: i | f | g | o.
        # One sigmoid over the full [BP,4H] gates vreg + one tanh on the g
        # slice (2 gate-nonlinearity EUP pushes instead of 4).
        sg = jax.nn.sigmoid(gates)
        g = jnp.tanh(gates[:, 2 * H:3 * H])
        i = sg[:, 0:H]
        f = sg[:, H:2 * H]
        o = sg[:, 3 * H:4 * H]
        c_new = f * c_prev + i * g
        h_new = o * jnp.tanh(c_new)
        return h_new, c_new

    for t in range(S):                                # static, fully unrolled
        lo = t * BP
        x_t = x_ref[lo:lo + BP, :]                    # [BP, H]  aligned slice
        xp_t = xproj_ref[lo:lo + BP, :]               # [BP, 4H] aligned slice

        # ---- LSTM 1, layer 0: only h @ W_hh^T sits on the recurrent chain ----
        g0 = xp_t + jnp.dot(h1[0].astype(bf16), w1_hh[0],
                            preferred_element_type=jnp.float32)
        h1[0], c1[0] = cell(g0, c1[0])
        inp = h1[0]
        # ---- LSTM 1, layers 1..L-1: split two-matmul form (no lane concat) ---
        for l in range(1, L):
            g = (jnp.dot(inp.astype(bf16), w1_ih[l - 1],
                         preferred_element_type=jnp.float32)
                 + jnp.dot(h1[l].astype(bf16), w1_hh[l],
                           preferred_element_type=jnp.float32)
                 + b1[l])
            h1[l], c1[l] = cell(g, c1[l])
            inp = h1[l]

        # ---- residual add (rnn_out_1 + decoder_input) -------------------------
        res = inp + x_t

        # ---- LSTM 2 (same initial state), split two-matmul form ---------------
        inp2 = res
        for l in range(L):
            g = (jnp.dot(inp2.astype(bf16), w2_ih[l],
                         preferred_element_type=jnp.float32)
                 + jnp.dot(h2[l].astype(bf16), w2_hh[l],
                           preferred_element_type=jnp.float32)
                 + b2[l])
            h2[l], c2[l] = cell(g, c2[l])
            inp2 = h2[l]

        # per-step store of the last-layer output (off the critical chain)
        out2_ref[lo:lo + BP, :] = inp2

    # ----- final Linear: one lane-dense [S*BP, H] @ [H, Vpad] matmul ----------
    logits_ref[...] = (jnp.dot(out2_ref[...].astype(bf16), fcw_ref[...],
                               preferred_element_type=jnp.float32)
                       + fcb_ref[...]).astype(logits_ref.dtype)

    # ----- final state is LSTM 2's (h, c), as in the PyTorch module -----------
    for l in range(L):
        hN_ref[l] = h2[l]
        cN_ref[l] = c2[l]


# --------------------------------------------------------------------------- #
#  Parameters (PyTorch-style raw params + kernel re-layout)
# --------------------------------------------------------------------------- #
def init_params(key):
    """PyTorch-style uniform(-1/sqrt(H), 1/sqrt(H)) raw parameters."""
    H, L, V = HIDDEN, NUM_LAYERS, VOCAB
    s = 1.0 / float(H) ** 0.5
    keys = iter(jax.random.split(key, 4 * L * 2 + 2))

    def u(shape):
        return jax.random.uniform(next(keys), shape, jnp.float32, -s, s)

    def lstm_params():
        # input size == H for every layer here (LATENT + WORD_EMBED == H)
        return [(u((4 * H, H)), u((4 * H, H)), u((4 * H,)), u((4 * H,)))
                for _ in range(L)]

    lstm1 = lstm_params()
    lstm2 = lstm_params()
    fc_w = u((V, H))          # nn.Linear(H, V).weight  [V, H]
    fc_b = u((V,))
    return (lstm1, lstm2, fc_w, fc_b)


def prepare_kernel_params(raw_params):
    """Transpose weights, combine biases, cast matmul weights to bf16, pad fc."""
    lstm1, lstm2, fc_w, fc_b = raw_params
    H, V = fc_w.shape[1], fc_w.shape[0]

    def split(layers):
        wih = jnp.stack([wih.T for (wih, _, _, _) in layers]).astype(jnp.bfloat16)
        whh = jnp.stack([whh.T for (_, whh, _, _) in layers]).astype(jnp.bfloat16)
        b = jnp.stack([(bih + bhh)[None, :] for (_, _, bih, bhh) in layers])
        return wih, whh, b                           # [L,H,4H], [L,H,4H], [L,1,4H]

    w1_ih, w1_hh, b1 = split(lstm1)
    w2_ih, w2_hh, b2 = split(lstm2)
    fcw = jnp.zeros((H, VPAD), jnp.bfloat16).at[:, :V].set(
        fc_w.T.astype(jnp.bfloat16))
    fcb = jnp.zeros((1, VPAD), jnp.float32).at[:, :V].set(fc_b[None, :])
    return w1_ih, w1_hh, b1, w2_ih, w2_hh, b2, fcw, fcb


# --------------------------------------------------------------------------- #
#  Wrapper (mirrors DecoderResidual.forward)
# --------------------------------------------------------------------------- #
def decoder_residual_forward(decoder_input, z, drop_prob, raw_params,
                             initial_state=None, dropout_rng=None):
    """decoder_input: [B, S, WORD_EMBED], z: [B, LATENT].
    Returns (logits [B, S, VOCAB], (h_n, c_n) each [NUM_LAYERS, B, HIDDEN])."""
    B, S, E = decoder_input.shape
    H, L, V = HIDDEN, NUM_LAYERS, VOCAB
    BP = max(BPAD, ((B + 7) // 8) * 8)
    assert H == E + LATENT, "residual add requires decoder_rnn_size == embed+latent"

    # F.dropout on decoder_input (inverted dropout). Stochastic glue kept in JAX.
    if drop_prob > 0.0:
        if dropout_rng is None:
            raise ValueError("dropout_rng is required when drop_prob > 0")
        keep = 1.0 - drop_prob
        mask = jax.random.bernoulli(dropout_rng, keep, decoder_input.shape)
        decoder_input = jnp.where(mask, decoder_input / keep, 0.0)

    # condition on context z at every token, concat on feature dim
    z_seq = jnp.broadcast_to(z[:, None, :], (B, S, LATENT))
    x = jnp.concatenate([decoder_input.astype(jnp.float32),
                         z_seq.astype(jnp.float32)], axis=2)       # [B, S, H]
    # time-major, batch padded to 8 sublanes, flattened to [S*BP, H]
    x_tm = jnp.transpose(x, (1, 0, 2))                             # [S, B, H]
    x_pad = jnp.zeros((S, BP, H), jnp.float32).at[:, :B, :].set(x_tm)
    x_flat = x_pad.reshape(S * BP, H)

    if initial_state is None:
        h0 = jnp.zeros((L, BP, H), jnp.float32)
        c0 = jnp.zeros((L, BP, H), jnp.float32)
    else:
        h0_in, c0_in = initial_state
        h0 = jnp.zeros((L, BP, H), jnp.float32).at[:, :B, :].set(
            h0_in.astype(jnp.float32))
        c0 = jnp.zeros((L, BP, H), jnp.float32).at[:, :B, :].set(
            c0_in.astype(jnp.float32))

    w1_ih, w1_hh, b1, w2_ih, w2_hh, b2, fcw, fcb = prepare_kernel_params(raw_params)

    vmem = pl.BlockSpec(memory_space=pltpu.MemorySpace.VMEM)
    logits_flat, hN, cN = pl.pallas_call(
        decoder_residual_kernel,
        out_shape=(
            jax.ShapeDtypeStruct((S * BP, VPAD), jnp.float32),
            jax.ShapeDtypeStruct((L, BP, H), jnp.float32),
            jax.ShapeDtypeStruct((L, BP, H), jnp.float32),
        ),
        in_specs=[vmem] * 11,
        out_specs=(vmem, vmem, vmem),
        scratch_shapes=[
            pltpu.VMEM((S * BP, 4 * H), jnp.float32),   # hoisted layer-0 x-proj
            pltpu.VMEM((S * BP, H), jnp.float32),       # per-step LSTM-2 outputs
        ],
    )(x_flat, w1_ih, w1_hh, b1, w2_ih, w2_hh, b2, fcw, fcb, h0, c0)

    logits = logits_flat.reshape(S, BP, VPAD)[:, :B, :V].transpose(1, 0, 2)
    return logits, (hN[:, :B, :], cN[:, :B, :])


# --------------------------------------------------------------------------- #
#  Pure-JAX reference (for correctness check)
# --------------------------------------------------------------------------- #
def _ref_lstm(x, layers, h0, c0):
    B, S, _ = x.shape
    H = h0.shape[-1]
    hs, cs = [], []
    out = x
    for l, (wih, whh, bih, bhh) in enumerate(layers):
        h, c = h0[l], c0[l]
        ys = []
        for t in range(S):
            g = (jnp.dot(out[:, t, :], wih.T, precision=lax.Precision.HIGHEST)
                 + bih
                 + jnp.dot(h, whh.T, precision=lax.Precision.HIGHEST)
                 + bhh)
            i = jax.nn.sigmoid(g[:, :H])
            f = jax.nn.sigmoid(g[:, H:2 * H])
            gg = jnp.tanh(g[:, 2 * H:3 * H])
            o = jax.nn.sigmoid(g[:, 3 * H:])
            c = f * c + i * gg
            h = o * jnp.tanh(c)
            ys.append(h)
        out = jnp.stack(ys, axis=1)
        hs.append(h)
        cs.append(c)
    return out, (jnp.stack(hs), jnp.stack(cs))


def decoder_residual_reference(decoder_input, z, raw_params, initial_state=None):
    lstm1, lstm2, fc_w, fc_b = raw_params
    B, S, _ = decoder_input.shape
    H, L = HIDDEN, NUM_LAYERS
    z_seq = jnp.broadcast_to(z[:, None, :], (B, S, LATENT))
    x = jnp.concatenate([decoder_input, z_seq], axis=2).astype(jnp.float32)
    if initial_state is None:
        h0 = jnp.zeros((L, B, H), jnp.float32)
        c0 = jnp.zeros((L, B, H), jnp.float32)
    else:
        h0, c0 = initial_state
    out1, _ = _ref_lstm(x, lstm1, h0, c0)
    res = out1 + x
    out2, final = _ref_lstm(res, lstm2, h0, c0)
    logits = (jnp.einsum("bsh,vh->bsv", out2, fc_w,
                         precision=lax.Precision.HIGHEST) + fc_b)
    return logits, final


# --------------------------------------------------------------------------- #
if __name__ == "__main__":
    key = jax.random.PRNGKey(0)
    kx, kz, kp = jax.random.split(key, 3)
    decoder_input = jax.random.normal(kx, (BATCH, SEQ, WORD_EMBED), jnp.float32)
    z = jax.random.normal(kz, (BATCH, LATENT), jnp.float32)
    params = init_params(kp)

    logits, (hN, cN) = decoder_residual_forward(decoder_input, z, 0.0, params)
    jax.block_until_ready((logits, hN, cN))

    assert logits.shape == (BATCH, SEQ, VOCAB)
    assert hN.shape == (NUM_LAYERS, BATCH, HIDDEN)
    assert cN.shape == (NUM_LAYERS, BATCH, HIDDEN)

    # correctness check against an independent pure-JAX reference
    ref_logits, (ref_h, ref_c) = decoder_residual_reference(decoder_input, z, params)
    assert bool(jnp.allclose(logits, ref_logits, atol=2.5e-2, rtol=0.0))
    assert bool(jnp.allclose(hN, ref_h, atol=2.5e-2, rtol=0.0))
    assert bool(jnp.allclose(cN, ref_c, atol=2.5e-2, rtol=0.0))

    print("KERNEL_OK")
</pallas_src>

<mosaic_0001>
module attributes {stable_mosaic.version = 11 : i64} {
  func.func @decoder_residual_kernel(%arg0: memref<64x32xf32, #tpu.memory_space<vmem>>, %arg1: memref<2x32x128xbf16, #tpu.memory_space<vmem>>, %arg2: memref<2x32x128xbf16, #tpu.memory_space<vmem>>, %arg3: memref<2x1x128xf32, #tpu.memory_space<vmem>>, %arg4: memref<2x32x128xbf16, #tpu.memory_space<vmem>>, %arg5: memref<2x32x128xbf16, #tpu.memory_space<vmem>>, %arg6: memref<2x1x128xf32, #tpu.memory_space<vmem>>, %arg7: memref<32x128xbf16, #tpu.memory_space<vmem>>, %arg8: memref<1x128xf32, #tpu.memory_space<vmem>>, %arg9: memref<2x8x32xf32, #tpu.memory_space<vmem>>, %arg10: memref<2x8x32xf32, #tpu.memory_space<vmem>>, %arg11: memref<64x128xf32, #tpu.memory_space<vmem>>, %arg12: memref<2x8x32xf32, #tpu.memory_space<vmem>>, %arg13: memref<2x8x32xf32, #tpu.memory_space<vmem>>, %arg14: memref<64x128xf32, #tpu.memory_space<vmem>>, %arg15: memref<64x32xf32, #tpu.memory_space<vmem>>) attributes {dimension_semantics = [], scalar_prefetch = 0 : i64, scratch_operands = 2 : i64, tpu.core_type = #tpu.core_type<tc>} {
    %c0 = arith.constant 0 : index
    %c0_0 = arith.constant 0 : index
    %c0_1 = arith.constant 0 : index
    %0 = vector.load %arg2[%c0, %c0_0, %c0_1] : memref<2x32x128xbf16, #tpu.memory_space<vmem>>, vector<1x32x128xbf16>
    %1 = vector.shape_cast %0 : vector<1x32x128xbf16> to vector<32x128xbf16>
    %c1 = arith.constant 1 : index
    %c0_2 = arith.constant 0 : index
    %c0_3 = arith.constant 0 : index
    %2 = vector.load %arg2[%c1, %c0_2, %c0_3] : memref<2x32x128xbf16, #tpu.memory_space<vmem>>, vector<1x32x128xbf16>
    %3 = vector.shape_cast %2 : vector<1x32x128xbf16> to vector<32x128xbf16>
    %c1_4 = arith.constant 1 : index
    %c0_5 = arith.constant 0 : index
    %c0_6 = arith.constant 0 : index
    %4 = vector.load %arg1[%c1_4, %c0_5, %c0_6] : memref<2x32x128xbf16, #tpu.memory_space<vmem>>, vector<1x32x128xbf16>
    %5 = vector.shape_cast %4 : vector<1x32x128xbf16> to vector<32x128xbf16>
    %c0_7 = arith.constant 0 : index
    %c0_8 = arith.constant 0 : index
    %c0_9 = arith.constant 0 : index
    %6 = vector.load %arg4[%c0_7, %c0_8, %c0_9] : memref<2x32x128xbf16, #tpu.memory_space<vmem>>, vector<1x32x128xbf16>
    %7 = vector.shape_cast %6 : vector<1x32x128xbf16> to vector<32x128xbf16>
    %c1_10 = arith.constant 1 : index
    %c0_11 = arith.constant 0 : index
    %c0_12 = arith.constant 0 : index
    %8 = vector.load %arg4[%c1_10, %c0_11, %c0_12] : memref<2x32x128xbf16, #tpu.memory_space<vmem>>, vector<1x32x128xbf16>
    %9 = vector.shape_cast %8 : vector<1x32x128xbf16> to vector<32x128xbf16>
    %c0_13 = arith.constant 0 : index
    %c0_14 = arith.constant 0 : index
    %c0_15 = arith.constant 0 : index
    %10 = vector.load %arg5[%c0_13, %c0_14, %c0_15] : memref<2x32x128xbf16, #tpu.memory_space<vmem>>, vector<1x32x128xbf16>
    %11 = vector.shape_cast %10 : vector<1x32x128xbf16> to vector<32x128xbf16>
    %c1_16 = arith.constant 1 : index
    %c0_17 = arith.constant 0 : index
    %c0_18 = arith.constant 0 : index
    %12 = vector.load %arg5[%c1_16, %c0_17, %c0_18] : memref<2x32x128xbf16, #tpu.memory_space<vmem>>, vector<1x32x128xbf16>
    %13 = vector.shape_cast %12 : vector<1x32x128xbf16> to vector<32x128xbf16>
    %c0_19 = arith.constant 0 : index
    %c0_20 = arith.constant 0 : index
    %c0_21 = arith.constant 0 : index
    %14 = vector.load %arg3[%c0_19, %c0_20, %c0_21] : memref<2x1x128xf32, #tpu.memory_space<vmem>>, vector<1x1x128xf32>
    %15 = vector.shape_cast %14 : vector<1x1x128xf32> to vector<1x128xf32>
    %c1_22 = arith.constant 1 : index
    %c0_23 = arith.constant 0 : index
    %c0_24 = arith.constant 0 : index
    %16 = vector.load %arg3[%c1_22, %c0_23, %c0_24] : memref<2x1x128xf32, #tpu.memory_space<vmem>>, vector<1x1x128xf32>
    %17 = vector.shape_cast %16 : vector<1x1x128xf32> to vector<1x128xf32>
    %c0_25 = arith.constant 0 : index
    %c0_26 = arith.constant 0 : index
    %c0_27 = arith.constant 0 : index
    %18 = vector.load %arg6[%c0_25, %c0_26, %c0_27] : memref<2x1x128xf32, #tpu.memory_space<vmem>>, vector<1x1x128xf32>
    %19 = vector.shape_cast %18 : vector<1x1x128xf32> to vector<1x128xf32>
    %c1_28 = arith.constant 1 : index
    %c0_29 = arith.constant 0 : index
    %c0_30 = arith.constant 0 : index
    %20 = vector.load %arg6[%c1_28, %c0_29, %c0_30] : memref<2x1x128xf32, #tpu.memory_space<vmem>>, vector<1x1x128xf32>
    %21 = vector.shape_cast %20 : vector<1x1x128xf32> to vector<1x128xf32>
    %c0_31 = arith.constant 0 : index
    %c0_32 = arith.constant 0 : index
    %22 = vector.load %arg0[%c0_31, %c0_32] : memref<64x32xf32, #tpu.memory_space<vmem>>, vector<64x32xf32>
    %23 = arith.truncf %22 : vector<64x32xf32> to vector<64x32xbf16>
    %c0_33 = arith.constant 0 : index
    %c0_34 = arith.constant 0 : index
    %c0_35 = arith.constant 0 : index
    %24 = vector.load %arg1[%c0_33, %c0_34, %c0_35] : memref<2x32x128xbf16, #tpu.memory_space<vmem>>, vector<1x32x128xbf16>
    %25 = vector.shape_cast %24 : vector<1x32x128xbf16> to vector<32x128xbf16>
    %cst = arith.constant dense<0.000000e+00> : vector<64x128xf32>
    %26 = tpu.matmul %23, %25, %cst {dimension_numbers = #tpu.dot_dimension_numbers<[1], [0], [0], [1], [0, 0, 1, 1], [], []>} : vector<64x32xbf16>, vector<32x128xbf16>, vector<64x128xf32> -> vector<64x128xf32>
    %27 = vector.broadcast %15 : vector<1x128xf32> to vector<64x128xf32>
    %28 = arith.addf %26, %27 : vector<64x128xf32>
    %c0_36 = arith.constant 0 : index
    %c0_37 = arith.constant 0 : index
    %29 = vector.load %arg14[%c0_36, %c0_37] : memref<64x128xf32, #tpu.memory_space<vmem>>, vector<64x128xf32>
    tpu.vector_store %arg14[%c0_36, %c0_37], %28 {strides = array<i32>} : memref<64x128xf32, #tpu.memory_space<vmem>>, vector<64x128xf32>,
    %c0_38 = arith.constant 0 : index
    %c0_39 = arith.constant 0 : index
    %c0_40 = arith.constant 0 : index
    %30 = vector.load %arg9[%c0_38, %c0_39, %c0_40] : memref<2x8x32xf32, #tpu.memory_space<vmem>>, vector<1x8x32xf32>
    %31 = vector.shape_cast %30 : vector<1x8x32xf32> to vector<8x32xf32>
    %c1_41 = arith.constant 1 : index
    %c0_42 = arith.constant 0 : index
    %c0_43 = arith.constant 0 : index
    %32 = vector.load %arg9[%c1_41, %c0_42, %c0_43] : memref<2x8x32xf32, #tpu.memory_space<vmem>>, vector<1x8x32xf32>
    %33 = vector.shape_cast %32 : vector<1x8x32xf32> to vector<8x32xf32>
    %c0_44 = arith.constant 0 : index
    %c0_45 = arith.constant 0 : index
    %c0_46 = arith.constant 0 : index
    %34 = vector.load %arg10[%c0_44, %c0_45, %c0_46] : memref<2x8x32xf32, #tpu.memory_space<vmem>>, vector<1x8x32xf32>
    %35 = vector.shape_cast %34 : vector<1x8x32xf32> to vector<8x32xf32>
    %c1_47 = arith.constant 1 : index
    %c0_48 = arith.constant 0 : index
    %c0_49 = arith.constant 0 : index
    %36 = vector.load %arg10[%c1_47, %c0_48, %c0_49] : memref<2x8x32xf32, #tpu.memory_space<vmem>>, vector<1x8x32xf32>
    %37 = vector.shape_cast %36 : vector<1x8x32xf32> to vector<8x32xf32>
    %c0_50 = arith.constant 0 : index
    %c0_51 = arith.constant 0 : index
    %c0_52 = arith.constant 0 : index
    %38 = vector.load %arg9[%c0_50, %c0_51, %c0_52] : memref<2x8x32xf32, #tpu.memory_space<vmem>>, vector<1x8x32xf32>
    %39 = vector.shape_cast %38 : vector<1x8x32xf32> to vector<8x32xf32>
    %c1_53 = arith.constant 1 : index
    %c0_54 = arith.constant 0 : index
    %c0_55 = arith.constant 0 : index
    %40 = vector.load %arg9[%c1_53, %c0_54, %c0_55] : memref<2x8x32xf32, #tpu.memory_space<vmem>>, vector<1x8x32xf32>
    %41 = vector.shape_cast %40 : vector<1x8x32xf32> to vector<8x32xf32>
    %c0_56 = arith.constant 0 : index
    %c0_57 = arith.constant 0 : index
    %c0_58 = arith.constant 0 : index
    %42 = vector.load %arg10[%c0_56, %c0_57, %c0_58] : memref<2x8x32xf32, #tpu.memory_space<vmem>>, vector<1x8x32xf32>
    %43 = vector.shape_cast %42 : vector<1x8x32xf32> to vector<8x32xf32>
    %c1_59 = arith.constant 1 : index
    %c0_60 = arith.constant 0 : index
    %c0_61 = arith.constant 0 : index
    %44 = vector.load %arg10[%c1_59, %c0_60, %c0_61] : memref<2x8x32xf32, #tpu.memory_space<vmem>>, vector<1x8x32xf32>
    %45 = vector.shape_cast %44 : vector<1x8x32xf32> to vector<8x32xf32>
    %c0_62 = arith.constant 0 : index
    %c0_63 = arith.constant 0 : index
    %46 = vector.load %arg0[%c0_62, %c0_63] : memref<64x32xf32, #tpu.memory_space<vmem>>, vector<8x32xf32>
    %c0_64 = arith.constant 0 : index
    %c0_65 = arith.constant 0 : index
    %47 = vector.load %arg14[%c0_64, %c0_65] : memref<64x128xf32, #tpu.memory_space<vmem>>, vector<8x128xf32>
    %48 = arith.truncf %31 : vector<8x32xf32> to vector<8x32xbf16>
    %cst_66 = arith.constant dense<0.000000e+00> : vector<8x128xf32>
    %49 = tpu.matmul %48, %1, %cst_66 {dimension_numbers = #tpu.dot_dimension_numbers<[1], [0], [0], [1], [0, 0, 1, 1], [], []>} : vector<8x32xbf16>, vector<32x128xbf16>, vector<8x128xf32> -> vector<8x128xf32>
    %50 = arith.addf %47, %49 : vector<8x128xf32>
    %51 = arith.negf %50 : vector<8x128xf32>
    %52 = math.exp %51 : vector<8x128xf32>
    %cst_67 = arith.constant 1.000000e+00 : f32
    %53 = vector.broadcast %cst_67 : f32 to vector<8x128xf32>
    %54 = arith.addf %53, %52 : vector<8x128xf32>
    %55 = arith.divf %53, %54 : vector<8x128xf32>
    %56 = vector.extract_strided_slice %50 {offsets = [0, 64], sizes = [8, 32], strides = [1, 1]} : vector<8x128xf32> to vector<8x32xf32>
    %57 = math.tanh %56 : vector<8x32xf32>
    %58 = vector.extract_strided_slice %55 {offsets = [0, 0], sizes = [8, 32], strides = [1, 1]} : vector<8x128xf32> to vector<8x32xf32>
    %59 = vector.extract_strided_slice %55 {offsets = [0, 32], sizes = [8, 32], strides = [1, 1]} : vector<8x128xf32> to vector<8x32xf32>
    %60 = vector.extract_strided_slice %55 {offsets = [0, 96], sizes = [8, 32], strides = [1, 1]} : vector<8x128xf32> to vector<8x32xf32>
    %61 = arith.mulf %59, %35 : vector<8x32xf32>
    %62 = arith.mulf %58, %57 : vector<8x32xf32>
    %63 = arith.addf %61, %62 : vector<8x32xf32>
    %64 = math.tanh %63 : vector<8x32xf32>
    %65 = arith.mulf %60, %64 : vector<8x32xf32>
    %66 = arith.truncf %65 : vector<8x32xf32> to vector<8x32xbf16>
    %cst_68 = arith.constant dense<0.000000e+00> : vector<8x128xf32>
    %67 = tpu.matmul %66, %5, %cst_68 {dimension_numbers = #tpu.dot_dimension_numbers<[1], [0], [0], [1], [0, 0, 1, 1], [], []>} : vector<8x32xbf16>, vector<32x128xbf16>, vector<8x128xf32> -> vector<8x128xf32>
    %68 = arith.truncf %33 : vector<8x32xf32> to vector<8x32xbf16>
    %cst_69 = arith.constant dense<0.000000e+00> : vector<8x128xf32>
    %69 = tpu.matmul %68, %3, %cst_69 {dimension_numbers = #tpu.dot_dimension_numbers<[1], [0], [0], [1], [0, 0, 1, 1], [], []>} : vector<8x32xbf16>, vector<32x128xbf16>, vector<8x128xf32> -> vector<8x128xf32>
    %70 = arith.addf %67, %69 : vector<8x128xf32>
    %71 = vector.broadcast %17 : vector<1x128xf32> to vector<8x128xf32>
    %72 = arith.addf %70, %71 : vector<8x128xf32>
    %73 = arith.negf %72 : vector<8x128xf32>
    %74 = math.exp %73 : vector<8x128xf32>
    %cst_70 = arith.constant 1.000000e+00 : f32
    %75 = vector.broadcast %cst_70 : f32 to vector<8x128xf32>
    %76 = arith.addf %75, %74 : vector<8x128xf32>
    %77 = arith.divf %75, %76 : vector<8x128xf32>
    %78 = vector.extract_strided_slice %72 {offsets = [0, 64], sizes = [8, 32], strides = [1, 1]} : vector<8x128xf32> to vector<8x32xf32>
    %79 = math.tanh %78 : vector<8x32xf32>
    %80 = vector.extract_strided_slice %77 {offsets = [0, 0], sizes = [8, 32], strides = [1, 1]} : vector<8x128xf32> to vector<8x32xf32>
    %81 = vector.extract_strided_slice %77 {offsets = [0, 32], sizes = [8, 32], strides = [1, 1]} : vector<8x128xf32> to vector<8x32xf32>
    %82 = vector.extract_strided_slice %77 {offsets = [0, 96], sizes = [8, 32], strides = [1, 1]} : vector<8x128xf32> to vector<8x32xf32>
    %83 = arith.mulf %81, %37 : vector<8x32xf32>
    %84 = arith.mulf %80, %79 : vector<8x32xf32>
    %85 = arith.addf %83, %84 : vector<8x32xf32>
    %86 = math.tanh %85 : vector<8x32xf32>
    %87 = arith.mulf %82, %86 : vector<8x32xf32>
    %88 = arith.addf %87, %46 : vector<8x32xf32>
    %89 = arith.truncf %88 : vector<8x32xf32> to vector<8x32xbf16>
    %cst_71 = arith.constant dense<0.000000e+00> : vector<8x128xf32>
    %90 = tpu.matmul %89, %7, %cst_71 {dimension_numbers = #tpu.dot_dimension_numbers<[1], [0], [0], [1], [0, 0, 1, 1], [], []>} : vector<8x32xbf16>, vector<32x128xbf16>, vector<8x128xf32> -> vector<8x128xf32>
    %91 = arith.truncf %39 : vector<8x32xf32> to vector<8x32xbf16>
    %cst_72 = arith.constant dense<0.000000e+00> : vector<8x128xf32>
    %92 = tpu.matmul %91, %11, %cst_72 {dimension_numbers = #tpu.dot_dimension_numbers<[1], [0], [0], [1], [0, 0, 1, 1], [], []>} : vector<8x32xbf16>, vector<32x128xbf16>, vector<8x128xf32> -> vector<8x128xf32>
    %93 = arith.addf %90, %92 : vector<8x128xf32>
    %94 = vector.broadcast %19 : vector<1x128xf32> to vector<8x128xf32>
    %95 = arith.addf %93, %94 : vector<8x128xf32>
    %96 = arith.negf %95 : vector<8x128xf32>
    %97 = math.exp %96 : vector<8x128xf32>
    %cst_73 = arith.constant 1.000000e+00 : f32
    %98 = vector.broadcast %cst_73 : f32 to vector<8x128xf32>
    %99 = arith.addf %98, %97 : vector<8x128xf32>
    %100 = arith.divf %98, %99 : vector<8x128xf32>
    %101 = vector.extract_strided_slice %95 {offsets = [0, 64], sizes = [8, 32], strides = [1, 1]} : vector<8x128xf32> to vector<8x32xf32>
    %102 = math.tanh %101 : vector<8x32xf32>
    %103 = vector.extract_strided_slice %100 {offsets = [0, 0], sizes = [8, 32], strides = [1, 1]} : vector<8x128xf32> to vector<8x32xf32>
    %104 = vector.extract_strided_slice %100 {offsets = [0, 32], sizes = [8, 32], strides = [1, 1]} : vector<8x128xf32> to vector<8x32xf32>
    %105 = vector.extract_strided_slice %100 {offsets = [0, 96], sizes = [8, 32], strides = [1, 1]} : vector<8x128xf32> to vector<8x32xf32>
    %106 = arith.mulf %104, %43 : vector<8x32xf32>
    %107 = arith.mulf %103, %102 : vector<8x32xf32>
    %108 = arith.addf %106, %107 : vector<8x32xf32>
    %109 = math.tanh %108 : vector<8x32xf32>
    %110 = arith.mulf %105, %109 : vector<8x32xf32>
    %111 = arith.truncf %110 : vector<8x32xf32> to vector<8x32xbf16>
    %cst_74 = arith.constant dense<0.000000e+00> : vector<8x128xf32>
    %112 = tpu.matmul %111, %9, %cst_74 {dimension_numbers = #tpu.dot_dimension_numbers<[1], [0], [0], [1], [0, 0, 1, 1], [], []>} : vector<8x32xbf16>, vector<32x128xbf16>, vector<8x128xf32> -> vector<8x128xf32>
    %113 = arith.truncf %41 : vector<8x32xf32> to vector<8x32xbf16>
    %cst_75 = arith.constant dense<0.000000e+00> : vector<8x128xf32>
    %114 = tpu.matmul %113, %13, %cst_75 {dimension_numbers = #tpu.dot_dimension_numbers<[1], [0], [0], [1], [0, 0, 1, 1], [], []>} : vector<8x32xbf16>, vector<32x128xbf16>, vector<8x128xf32> -> vector<8x128xf32>
    %115 = arith.addf %112, %114 : vector<8x128xf32>
    %116 = vector.broadcast %21 : vector<1x128xf32> to vector<8x128xf32>
    %117 = arith.addf %115, %116 : vector<8x128xf32>
    %118 = arith.negf %117 : vector<8x128xf32>
    %119 = math.exp %118 : vector<8x128xf32>
    %cst_76 = arith.constant 1.000000e+00 : f32
    %120 = vector.broadcast %cst_76 : f32 to vector<8x128xf32>
    %121 = arith.addf %120, %119 : vector<8x128xf32>
    %122 = arith.divf %120, %121 : vector<8x128xf32>
    %123 = vector.extract_strided_slice %117 {offsets = [0, 64], sizes = [8, 32], strides = [1, 1]} : vector<8x128xf32> to vector<8x32xf32>
    %124 = math.tanh %123 : vector<8x32xf32>
    %125 = vector.extract_strided_slice %122 {offsets = [0, 0], sizes = [8, 32], strides = [1, 1]} : vector<8x128xf32> to vector<8x32xf32>
    %126 = vector.extract_strided_slice %122 {offsets = [0, 32], sizes = [8, 32], strides = [1, 1]} : vector<8x128xf32> to vector<8x32xf32>
    %127 = vector.extract_strided_slice %122 {offsets = [0, 96], sizes = [8, 32], strides = [1, 1]} : vector<8x128xf32> to vector<8x32xf32>
    %128 = arith.mulf %126, %45 : vector<8x32xf32>
    %129 = arith.mulf %125, %124 : vector<8x32xf32>
    %130 = arith.addf %128, %129 : vector<8x32xf32>
    %131 = math.tanh %130 : vector<8x32xf32>
    %132 = arith.mulf %127, %131 : vector<8x32xf32>
    %c0_77 = arith.constant 0 : index
    %c0_78 = arith.constant 0 : index
    %133 = vector.load %arg15[%c0_77, %c0_78] : memref<64x32xf32, #tpu.memory_space<vmem>>, vector<8x32xf32>
    tpu.vector_store %arg15[%c0_77, %c0_78], %132 {strides = array<i32>} : memref<64x32xf32, #tpu.memory_space<vmem>>, vector<8x32xf32>,
    %c8 = arith.constant 8 : index
    %c0_79 = arith.constant 0 : index
    %134 = vector.load %arg0[%c8, %c0_79] : memref<64x32xf32, #tpu.memory_space<vmem>>, vector<8x32xf32>
    %c8_80 = arith.constant 8 : index
    %c0_81 = arith.constant 0 : index
    %135 = vector.load %arg14[%c8_80, %c0_81] : memref<64x128xf32, #tpu.memory_space<vmem>>, vector<8x128xf32>
    %136 = arith.truncf %65 : vector<8x32xf32> to vector<8x32xbf16>
    %cst_82 = arith.constant dense<0.000000e+00> : vector<8x128xf32>
    %137 = tpu.matmul %136, %1, %cst_82 {dimension_numbers = #tpu.dot_dimension_numbers<[1], [0], [0], [1], [0, 0, 1, 1], [], []>} : vector<8x32xbf16>, vector<32x128xbf16>, vector<8x128xf32> -> vector<8x128xf32>
    %138 = arith.addf %135, %137 : vector<8x128xf32>
    %139 = arith.negf %138 : vector<8x128xf32>
    %140 = math.exp %139 : vector<8x128xf32>
    %cst_83 = arith.constant 1.000000e+00 : f32
    %141 = vector.broadcast %cst_83 : f32 to vector<8x128xf32>
    %142 = arith.addf %141, %140 : vector<8x128xf32>
    %143 = arith.divf %141, %142 : vector<8x128xf32>
    %144 = vector.extract_strided_slice %138 {offsets = [0, 64], sizes = [8, 32], strides = [1, 1]} : vector<8x128xf32> to vector<8x32xf32>
    %145 = math.tanh %144 : vector<8x32xf32>
    %146 = vector.extract_strided_slice %143 {offsets = [0, 0], sizes = [8, 32], strides = [1, 1]} : vector<8x128xf32> to vector<8x32xf32>
    %147 = vector.extract_strided_slice %143 {offsets = [0, 32], sizes = [8, 32], strides = [1, 1]} : vector<8x128xf32> to vector<8x32xf32>
    %148 = vector.extract_strided_slice %143 {offsets = [0, 96], sizes = [8, 32], strides = [1, 1]} : vector<8x128xf32> to vector<8x32xf32>
    %149 = arith.mulf %147, %63 : vector<8x32xf32>
    %150 = arith.mulf %146, %145 : vector<8x32xf32>
    %151 = arith.addf %149, %150 : vector<8x32xf32>
    %152 = math.tanh %151 : vector<8x32xf32>
    %153 = arith.mulf %148, %152 : vector<8x32xf32>
    %154 = arith.truncf %153 : vector<8x32xf32> to vector<8x32xbf16>
    %cst_84 = arith.constant dense<0.000000e+00> : vector<8x128xf32>
    %155 = tpu.matmul %154, %5, %cst_84 {dimension_numbers = #tpu.dot_dimension_numbers<[1], [0], [0], [1], [0, 0, 1, 1], [], []>} : vector<8x32xbf16>, vector<32x128xbf16>, vector<8x128xf32> -> vector<8x128xf32>
    %156 = arith.truncf %87 : vector<8x32xf32> to vector<8x32xbf16>
    %cst_85 = arith.constant dense<0.000000e+00> : vector<8x128xf32>
    %157 = tpu.matmul %156, %3, %cst_85 {dimension_numbers = #tpu.dot_dimension_numbers<[1], [0], [0], [1], [0, 0, 1, 1], [], []>} : vector<8x32xbf16>, vector<32x128xbf16>, vector<8x128xf32> -> vector<8x128xf32>
    %158 = arith.addf %155, %157 : vector<8x128xf32>
    %159 = vector.broadcast %17 : vector<1x128xf32> to vector<8x128xf32>
    %160 = arith.addf %158, %159 : vector<8x128xf32>
    %161 = arith.negf %160 : vector<8x128xf32>
    %162 = math.exp %161 : vector<8x128xf32>
    %cst_86 = arith.constant 1.000000e+00 : f32
    %163 = vector.broadcast %cst_86 : f32 to vector<8x128xf32>
    %164 = arith.addf %163, %162 : vector<8x128xf32>
    %165 = arith.divf %163, %164 : vector<8x128xf32>
    %166 = vector.extract_strided_slice %160 {offsets = [0, 64], sizes = [8, 32], strides = [1, 1]} : vector<8x128xf32> to vector<8x32xf32>
    %167 = math.tanh %166 : vector<8x32xf32>
    %168 = vector.extract_strided_slice %165 {offsets = [0, 0], sizes = [8, 32], strides = [1, 1]} : vector<8x128xf32> to vector<8x32xf32>
    %169 = vector.extract_strided_slice %165 {offsets = [0, 32], sizes = [8, 32], strides = [1, 1]} : vector<8x128xf32> to vector<8x32xf32>
    %170 = vector.extract_strided_slice %165 {offsets = [0, 96], sizes = [8, 32], strides = [1, 1]} : vector<8x128xf32> to vector<8x32xf32>
    %171 = arith.mulf %169, %85 : vector<8x32xf32>
    %172 = arith.mulf %168, %167 : vector<8x32xf32>
    %173 = arith.addf %171, %172 : vector<8x32xf32>
    %174 = math.tanh %173 : vector<8x32xf32>
    %175 = arith.mulf %170, %174 : vector<8x32xf32>
    %176 = arith.addf %175, %134 : vector<8x32xf32>
    %177 = arith.truncf %176 : vector<8x32xf32> to vector<8x32xbf16>
    %cst_87 = arith.constant dense<0.000000e+00> : vector<8x128xf32>
    %178 = tpu.matmul %177, %7, %cst_87 {dimension_numbers = #tpu.dot_dimension_numbers<[1], [0], [0], [1], [0, 0, 1, 1], [], []>} : vector<8x32xbf16>, vector<32x128xbf16>, vector<8x128xf32> -> vector<8x128xf32>
    %179 = arith.truncf %110 : vector<8x32xf32> to vector<8x32xbf16>
    %cst_88 = arith.constant dense<0.000000e+00> : vector<8x128xf32>
    %180 = tpu.matmul %179, %11, %cst_88 {dimension_numbers = #tpu.dot_dimension_numbers<[1], [0], [0], [1], [0, 0, 1, 1], [], []>} : vector<8x32xbf16>, vector<32x128xbf16>, vector<8x128xf32> -> vector<8x128xf32>
    %181 = arith.addf %178, %180 : vector<8x128xf32>
    %182 = vector.broadcast %19 : vector<1x128xf32> to vector<8x128xf32>
    %183 = arith.addf %181, %182 : vector<8x128xf32>
    %184 = arith.negf %183 : vector<8x128xf32>
    %185 = math.exp %184 : vector<8x128xf32>
    %cst_89 = arith.constant 1.000000e+00 : f32
    %186 = vector.broadcast %cst_89 : f32 to vector<8x128xf32>
    %187 = arith.addf %186, %185 : vector<8x128xf32>
    %188 = arith.divf %186, %187 : vector<8x128xf32>
    %189 = vector.extract_strided_slice %183 {offsets = [0, 64], sizes = [8, 32], strides = [1, 1]} : vector<8x128xf32> to vector<8x32xf32>
    %190 = math.tanh %189 : vector<8x32xf32>
    %191 = vector.extract_strided_slice %188 {offsets = [0, 0], sizes = [8, 32], strides = [1, 1]} : vector<8x128xf32> to vector<8x32xf32>
    %192 = vector.extract_strided_slice %188 {offsets = [0, 32], sizes = [8, 32], strides = [1, 1]} : vector<8x128xf32> to vector<8x32xf32>
    %193 = vector.extract_strided_slice %188 {offsets = [0, 96], sizes = [8, 32], strides = [1, 1]} : vector<8x128xf32> to vector<8x32xf32>
    %194 = arith.mulf %192, %108 : vector<8x32xf32>
    %195 = arith.mulf %191, %190 : vector<8x32xf32>
    %196 = arith.addf %194, %195 : vector<8x32xf32>
    %197 = math.tanh %196 : vector<8x32xf32>
    %198 = arith.mulf %193, %197 : vector<8x32xf32>
    %199 = arith.truncf %198 : vector<8x32xf32> to vector<8x32xbf16>
    %cst_90 = arith.constant dense<0.000000e+00> : vector<8x128xf32>
    %200 = tpu.matmul %199, %9, %cst_90 {dimension_numbers = #tpu.dot_dimension_numbers<[1], [0], [0], [1], [0, 0, 1, 1], [], []>} : vector<8x32xbf16>, vector<32x128xbf16>, vector<8x128xf32> -> vector<8x128xf32>
    %201 = arith.truncf %132 : vector<8x32xf32> to vector<8x32xbf16>
    %cst_91 = arith.constant dense<0.000000e+00> : vector<8x128xf32>
    %202 = tpu.matmul %201, %13, %cst_91 {dimension_numbers = #tpu.dot_dimension_numbers<[1], [0], [0], [1], [0, 0, 1, 1], [], []>} : vector<8x32xbf16>, vector<32x128xbf16>, vector<8x128xf32> -> vector<8x128xf32>
    %203 = arith.addf %200, %202 : vector<8x128xf32>
    %204 = vector.broadcast %21 : vector<1x128xf32> to vector<8x128xf32>
    %205 = arith.addf %203, %204 : vector<8x128xf32>
    %206 = arith.negf %205 : vector<8x128xf32>
    %207 = math.exp %206 : vector<8x128xf32>
    %cst_92 = arith.constant 1.000000e+00 : f32
    %208 = vector.broadcast %cst_92 : f32 to vector<8x128xf32>
    %209 = arith.addf %208, %207 : vector<8x128xf32>
    %210 = arith.divf %208, %209 : vector<8x128xf32>
    %211 = vector.extract_strided_slice %205 {offsets = [0, 64], sizes = [8, 32], strides = [1, 1]} : vector<8x128xf32> to vector<8x32xf32>
    %212 = math.tanh %211 : vector<8x32xf32>
    %213 = vector.extract_strided_slice %210 {offsets = [0, 0], sizes = [8, 32], strides = [1, 1]} : vector<8x128xf32> to vector<8x32xf32>
    %214 = vector.extract_strided_slice %210 {offsets = [0, 32], sizes = [8, 32], strides = [1, 1]} : vector<8x128xf32> to vector<8x32xf32>
    %215 = vector.extract_strided_slice %210 {offsets = [0, 96], sizes = [8, 32], strides = [1, 1]} : vector<8x128xf32> to vector<8x32xf32>
    %216 = arith.mulf %214, %130 : vector<8x32xf32>
    %217 = arith.mulf %213, %212 : vector<8x32xf32>
    %218 = arith.addf %216, %217 : vector<8x32xf32>
    %219 = math.tanh %218 : vector<8x32xf32>
    %220 = arith.mulf %215, %219 : vector<8x32xf32>
    %c8_93 = arith.constant 8 : index
    %c0_94 = arith.constant 0 : index
    %221 = vector.load %arg15[%c8_93, %c0_94] : memref<64x32xf32, #tpu.memory_space<vmem>>, vector<8x32xf32>
    tpu.vector_store %arg15[%c8_93, %c0_94], %220 {strides = array<i32>} : memref<64x32xf32, #tpu.memory_space<vmem>>, vector<8x32xf32>,
    %c16 = arith.constant 16 : index
    %c0_95 = arith.constant 0 : index
    %222 = vector.load %arg0[%c16, %c0_95] : memref<64x32xf32, #tpu.memory_space<vmem>>, vector<8x32xf32>
    %c16_96 = arith.constant 16 : index
    %c0_97 = arith.constant 0 : index
    %223 = vector.load %arg14[%c16_96, %c0_97] : memref<64x128xf32, #tpu.memory_space<vmem>>, vector<8x128xf32>
    %224 = arith.truncf %153 : vector<8x32xf32> to vector<8x32xbf16>
    %cst_98 = arith.constant dense<0.000000e+00> : vector<8x128xf32>
    %225 = tpu.matmul %224, %1, %cst_98 {dimension_numbers = #tpu.dot_dimension_numbers<[1], [0], [0], [1], [0, 0, 1, 1], [], []>} : vector<8x32xbf16>, vector<32x128xbf16>, vector<8x128xf32> -> vector<8x128xf32>
    %226 = arith.addf %223, %225 : vector<8x128xf32>
    %227 = arith.negf %226 : vector<8x128xf32>
    %228 = math.exp %227 : vector<8x128xf32>
    %cst_99 = arith.constant 1.000000e+00 : f32
    %229 = vector.broadcast %cst_99 : f32 to vector<8x128xf32>
    %230 = arith.addf %229, %228 : vector<8x128xf32>
    %231 = arith.divf %229, %230 : vector<8x128xf32>
    %232 = vector.extract_strided_slice %226 {offsets = [0, 64], sizes = [8, 32], strides = [1, 1]} : vector<8x128xf32> to vector<8x32xf32>
    %233 = math.tanh %232 : vector<8x32xf32>
    %234 = vector.extract_strided_slice %231 {offsets = [0, 0], sizes = [8, 32], strides = [1, 1]} : vector<8x128xf32> to vector<8x32xf32>
    %235 = vector.extract_strided_slice %231 {offsets = [0, 32], sizes = [8, 32], strides = [1, 1]} : vector<8x128xf32> to vector<8x32xf32>
    %236 = vector.extract_strided_slice %231 {offsets = [0, 96], sizes = [8, 32], strides = [1, 1]} : vector<8x128xf32> to vector<8x32xf32>
    %237 = arith.mulf %235, %151 : vector<8x32xf32>
    %238 = arith.mulf %234, %233 : vector<8x32xf32>
    %239 = arith.addf %237, %238 : vector<8x32xf32>
    %240 = math.tanh %239 : vector<8x32xf32>
    %241 = arith.mulf %236, %240 : vector<8x32xf32>
    %242 = arith.truncf %241 : vector<8x32xf32> to vector<8x32xbf16>
    %cst_100 = arith.constant dense<0.000000e+00> : vector<8x128xf32>
    %243 = tpu.matmul %242, %5, %cst_100 {dimension_numbers = #tpu.dot_dimension_numbers<[1], [0], [0], [1], [0, 0, 1, 1], [], []>} : vector<8x32xbf16>, vector<32x128xbf16>, vector<8x128xf32> -> vector<8x128xf32>
    %244 = arith.truncf %175 : vector<8x32xf32> to vector<8x32xbf16>
    %cst_101 = arith.constant dense<0.000000e+00> : vector<8x128xf32>
    %245 = tpu.matmul %244, %3, %cst_101 {dimension_numbers = #tpu.dot_dimension_numbers<[1], [0], [0], [1], [0, 0, 1, 1], [], []>} : vector<8x32xbf16>, vector<32x128xbf16>, vector<8x128xf32> -> vector<8x128xf32>
    %246 = arith.addf %243, %245 : vector<8x128xf32>
    %247 = vector.broadcast %17 : vector<1x128xf32> to vector<8x128xf32>
    %248 = arith.addf %246, %247 : vector<8x128xf32>
    %249 = arith.negf %248 : vector<8x128xf32>
    %250 = math.exp %249 : vector<8x128xf32>
    %cst_102 = arith.constant 1.000000e+00 : f32
    %251 = vector.broadcast %cst_102 : f32 to vector<8x128xf32>
    %252 = arith.addf %251, %250 : vector<8x128xf32>
    %253 = arith.divf %251, %252 : vector<8x128xf32>
    %254 = vector.extract_strided_slice %248 {offsets = [0, 64], sizes = [8, 32], strides = [1, 1]} : vector<8x128xf32> to vector<8x32xf32>
    %255 = math.tanh %254 : vector<8x32xf32>
    %256 = vector.extract_strided_slice %253 {offsets = [0, 0], sizes = [8, 32], strides = [1, 1]} : vector<8x128xf32> to vector<8x32xf32>
    %257 = vector.extract_strided_slice %253 {offsets = [0, 32], sizes = [8, 32], strides = [1, 1]} : vector<8x128xf32> to vector<8x32xf32>
    %258 = vector.extract_strided_slice %253 {offsets = [0, 96], sizes = [8, 32], strides = [1, 1]} : vector<8x128xf32> to vector<8x32xf32>
    %259 = arith.mulf %257, %173 : vector<8x32xf32>
    %260 = arith.mulf %256, %255 : vector<8x32xf32>
    %261 = arith.addf %259, %260 : vector<8x32xf32>
    %262 = math.tanh %261 : vector<8x32xf32>
    %263 = arith.mulf %258, %262 : vector<8x32xf32>
    %264 = arith.addf %263, %222 : vector<8x32xf32>
    %265 = arith.truncf %264 : vector<8x32xf32> to vector<8x32xbf16>
    %cst_103 = arith.constant dense<0.000000e+00> : vector<8x128xf32>
    %266 = tpu.matmul %265, %7, %cst_103 {dimension_numbers = #tpu.dot_dimension_numbers<[1], [0], [0], [1], [0, 0, 1, 1], [], []>} : vector<8x32xbf16>, vector<32x128xbf16>, vector<8x128xf32> -> vector<8x128xf32>
    %267 = arith.truncf %198 : vector<8x32xf32> to vector<8x32xbf16>
    %cst_104 = arith.constant dense<0.000000e+00> : vector<8x128xf32>
    %268 = tpu.matmul %267, %11, %cst_104 {dimension_numbers = #tpu.dot_dimension_numbers<[1], [0], [0], [1], [0, 0, 1, 1], [], []>} : vector<8x32xbf16>, vector<32x128xbf16>, vector<8x128xf32> -> vector<8x128xf32>
    %269 = arith.addf %266, %268 : vector<8x128xf32>
    %270 = vector.broadcast %19 : vector<1x128xf32> to vector<8x128xf32>
    %271 = arith.addf %269, %270 : vector<8x128xf32>
    %272 = arith.negf %271 : vector<8x128xf32>
    %273 = math.exp %272 : vector<8x128xf32>
    %cst_105 = arith.constant 1.000000e+00 : f32
    %274 = vector.broadcast %cst_105 : f32 to vector<8x128xf32>
    %275 = arith.addf %274, %273 : vector<8x128xf32>
    %276 = arith.divf %274, %275 : vector<8x128xf32>
    %277 = vector.extract_strided_slice %271 {offsets = [0, 64], sizes = [8, 32], strides = [1, 1]} : vector<8x128xf32> to vector<8x32xf32>
    %278 = math.tanh %277 : vector<8x32xf32>
    %279 = vector.extract_strided_slice %276 {offsets = [0, 0], sizes = [8, 32], strides = [1, 1]} : vector<8x128xf32> to vector<8x32xf32>
    %280 = vector.extract_strided_slice %276 {offsets = [0, 32], sizes = [8, 32], strides = [1, 1]} : vector<8x128xf32> to vector<8x32xf32>
    %281 = vector.extract_strided_slice %276 {offsets = [0, 96], sizes = [8, 32], strides = [1, 1]} : vector<8x128xf32> to vector<8x32xf32>
    %282 = arith.mulf %280, %196 : vector<8x32xf32>
    %283 = arith.mulf %279, %278 : vector<8x32xf32>
    %284 = arith.addf %282, %283 : vector<8x32xf32>
    %285 = math.tanh %284 : vector<8x32xf32>
    %286 = arith.mulf %281, %285 : vector<8x32xf32>
    %287 = arith.truncf %286 : vector<8x32xf32> to vector<8x32xbf16>
    %cst_106 = arith.constant dense<0.000000e+00> : vector<8x128xf32>
    %288 = tpu.matmul %287, %9, %cst_106 {dimension_numbers = #tpu.dot_dimension_numbers<[1], [0], [0], [1], [0, 0, 1, 1], [], []>} : vector<8x32xbf16>, vector<32x128xbf16>, vector<8x128xf32> -> vector<8x128xf32>
    %289 = arith.truncf %220 : vector<8x32xf32> to vector<8x32xbf16>
    %cst_107 = arith.constant dense<0.000000e+00> : vector<8x128xf32>
    %290 = tpu.matmul %289, %13, %cst_107 {dimension_numbers = #tpu.dot_dimension_numbers<[1], [0], [0], [1], [0, 0, 1, 1], [], []>} : vector<8x32xbf16>, vector<32x128xbf16>, vector<8x128xf32> -> vector<8x128xf32>
    %291 = arith.addf %288, %290 : vector<8x128xf32>
    %292 = vector.broadcast %21 : vector<1x128xf32> to vector<8x128xf32>
    %293 = arith.addf %291, %292 : vector<8x128xf32>
    %294 = arith.negf %293 : vector<8x128xf32>
    %295 = math.exp %294 : vector<8x128xf32>
    %cst_108 = arith.constant 1.000000e+00 : f32
    %296 = vector.broadcast %cst_108 : f32 to vector<8x128xf32>
    %297 = arith.addf %296, %295 : vector<8x128xf32>
    %298 = arith.divf %296, %297 : vector<8x128xf32>
    %299 = vector.extract_strided_slice %293 {offsets = [0, 64], sizes = [8, 32], strides = [1, 1]} : vector<8x128xf32> to vector<8x32xf32>
    %300 = math.tanh %299 : vector<8x32xf32>
    %301 = vector.extract_strided_slice %298 {offsets = [0, 0], sizes = [8, 32], strides = [1, 1]} : vector<8x128xf32> to vector<8x32xf32>
    %302 = vector.extract_strided_slice %298 {offsets = [0, 32], sizes = [8, 32], strides = [1, 1]} : vector<8x128xf32> to vector<8x32xf32>
    %303 = vector.extract_strided_slice %298 {offsets = [0, 96], sizes = [8, 32], strides = [1, 1]} : vector<8x128xf32> to vector<8x32xf32>
    %304 = arith.mulf %302, %218 : vector<8x32xf32>
    %305 = arith.mulf %301, %300 : vector<8x32xf32>
    %306 = arith.addf %304, %305 : vector<8x32xf32>
    %307 = math.tanh %306 : vector<8x32xf32>
    %308 = arith.mulf %303, %307 : vector<8x32xf32>
    %c16_109 = arith.constant 16 : index
    %c0_110 = arith.constant 0 : index
    %309 = vector.load %arg15[%c16_109, %c0_110] : memref<64x32xf32, #tpu.memory_space<vmem>>, vector<8x32xf32>
    tpu.vector_store %arg15[%c16_109, %c0_110], %308 {strides = array<i32>} : memref<64x32xf32, #tpu.memory_space<vmem>>, vector<8x32xf32>,
    %c24 = arith.constant 24 : index
    %c0_111 = arith.constant 0 : index
    %310 = vector.load %arg0[%c24, %c0_111] : memref<64x32xf32, #tpu.memory_space<vmem>>, vector<8x32xf32>
    %c24_112 = arith.constant 24 : index
    %c0_113 = arith.constant 0 : index
    %311 = vector.load %arg14[%c24_112, %c0_113] : memref<64x128xf32, #tpu.memory_space<vmem>>, vector<8x128xf32>
    %312 = arith.truncf %241 : vector<8x32xf32> to vector<8x32xbf16>
    %cst_114 = arith.constant dense<0.000000e+00> : vector<8x128xf32>
    %313 = tpu.matmul %312, %1, %cst_114 {dimension_numbers = #tpu.dot_dimension_numbers<[1], [0], [0], [1], [0, 0, 1, 1], [], []>} : vector<8x32xbf16>, vector<32x128xbf16>, vector<8x128xf32> -> vector<8x128xf32>
    %314 = arith.addf %311, %313 : vector<8x128xf32>
    %315 = arith.negf %314 : vector<8x128xf32>
    %316 = math.exp %315 : vector<8x128xf32>
    %cst_115 = arith.constant 1.000000e+00 : f32
    %317 = vector.broadcast %cst_115 : f32 to vector<8x128xf32>
    %318 = arith.addf %317, %316 : vector<8x128xf32>
    %319 = arith.divf %317, %318 : vector<8x128xf32>
    %320 = vector.extract_strided_slice %314 {offsets = [0, 64], sizes = [8, 32], strides = [1, 1]} : vector<8x128xf32> to vector<8x32xf32>
    %321 = math.tanh %320 : vector<8x32xf32>
    %322 = vector.extract_strided_slice %319 {offsets = [0, 0], sizes = [8, 32], strides = [1, 1]} : vector<8x128xf32> to vector<8x32xf32>
    %323 = vector.extract_strided_slice %319 {offsets = [0, 32], sizes = [8, 32], strides = [1, 1]} : vector<8x128xf32> to vector<8x32xf32>
    %324 = vector.extract_strided_slice %319 {offsets = [0, 96], sizes = [8, 32], strides = [1, 1]} : vector<8x128xf32> to vector<8x32xf32>
    %325 = arith.mulf %323, %239 : vector<8x32xf32>
    %326 = arith.mulf %322, %321 : vector<8x32xf32>
    %327 = arith.addf %325, %326 : vector<8x32xf32>
    %328 = math.tanh %327 : vector<8x32xf32>
    %329 = arith.mulf %324, %328 : vector<8x32xf32>
    %330 = arith.truncf %329 : vector<8x32xf32> to vector<8x32xbf16>
    %cst_116 = arith.constant dense<0.000000e+00> : vector<8x128xf32>
    %331 = tpu.matmul %330, %5, %cst_116 {dimension_numbers = #tpu.dot_dimension_numbers<[1], [0], [0], [1], [0, 0, 1, 1], [], []>} : vector<8x32xbf16>, vector<32x128xbf16>, vector<8x128xf32> -> vector<8x128xf32>
    %332 = arith.truncf %263 : vector<8x32xf32> to vector<8x32xbf16>
    %cst_117 = arith.constant dense<0.000000e+00> : vector<8x128xf32>
    %333 = tpu.matmul %332, %3, %cst_117 {dimension_numbers = #tpu.dot_dimension_numbers<[1], [0], [0], [1], [0, 0, 1, 1], [], []>} : vector<8x32xbf16>, vector<32x128xbf16>, vector<8x128xf32> -> vector<8x128xf32>
    %334 = arith.addf %331, %333 : vector<8x128xf32>
    %335 = vector.broadcast %17 : vector<1x128xf32> to vector<8x128xf32>
    %336 = arith.addf %334, %335 : vector<8x128xf32>
    %337 = arith.negf %336 : vector<8x128xf32>
    %338 = math.exp %337 : vector<8x128xf32>
    %cst_118 = arith.constant 1.000000e+00 : f32
    %339 = vector.broadcast %cst_118 : f32 to vector<8x128xf32>
    %340 = arith.addf %339, %338 : vector<8x128xf32>
    %341 = arith.divf %339, %340 : vector<8x128xf32>
    %342 = vector.extract_strided_slice %336 {offsets = [0, 64], sizes = [8, 32], strides = [1, 1]} : vector<8x128xf32> to vector<8x32xf32>
    %343 = math.tanh %342 : vector<8x32xf32>
    %344 = vector.extract_strided_slice %341 {offsets = [0, 0], sizes = [8, 32], strides = [1, 1]} : vector<8x128xf32> to vector<8x32xf32>
    %345 = vector.extract_strided_slice %341 {offsets = [0, 32], sizes = [8, 32], strides = [1, 1]} : vector<8x128xf32> to vector<8x32xf32>
    %346 = vector.extract_strided_slice %341 {offsets = [0, 96], sizes = [8, 32], strides = [1, 1]} : vector<8x128xf32> to vector<8x32xf32>
    %347 = arith.mulf %345, %261 : vector<8x32xf32>
    %348 = arith.mulf %344, %343 : vector<8x32xf32>
    %349 = arith.addf %347, %348 : vector<8x32xf32>
    %350 = math.tanh %349 : vector<8x32xf32>
    %351 = arith.mulf %346, %350 : vector<8x32xf32>
    %352 = arith.addf %351, %310 : vector<8x32xf32>
    %353 = arith.truncf %352 : vector<8x32xf32> to vector<8x32xbf16>
    %cst_119 = arith.constant dense<0.000000e+00> : vector<8x128xf32>
    %354 = tpu.matmul %353, %7, %cst_119 {dimension_numbers = #tpu.dot_dimension_numbers<[1], [0], [0], [1], [0, 0, 1, 1], [], []>} : vector<8x32xbf16>, vector<32x128xbf16>, vector<8x128xf32> -> vector<8x128xf32>
    %355 = arith.truncf %286 : vector<8x32xf32> to vector<8x32xbf16>
    %cst_120 = arith.constant dense<0.000000e+00> : vector<8x128xf32>
    %356 = tpu.matmul %355, %11, %cst_120 {dimension_numbers = #tpu.dot_dimension_numbers<[1], [0], [0], [1], [0, 0, 1, 1], [], []>} : vector<8x32xbf16>, vector<32x128xbf16>, vector<8x128xf32> -> vector<8x128xf32>
    %357 = arith.addf %354, %356 : vector<8x128xf32>
    %358 = vector.broadcast %19 : vector<1x128xf32> to vector<8x128xf32>
    %359 = arith.addf %357, %358 : vector<8x128xf32>
    %360 = arith.negf %359 : vector<8x128xf32>
    %361 = math.exp %360 : vector<8x128xf32>
    %cst_121 = arith.constant 1.000000e+00 : f32
    %362 = vector.broadcast %cst_121 : f32 to vector<8x128xf32>
    %363 = arith.addf %362, %361 : vector<8x128xf32>
    %364 = arith.divf %362, %363 : vector<8x128xf32>
    %365 = vector.extract_strided_slice %359 {offsets = [0, 64], sizes = [8, 32], strides = [1, 1]} : vector<8x128xf32> to vector<8x32xf32>
    %366 = math.tanh %365 : vector<8x32xf32>
    %367 = vector.extract_strided_slice %364 {offsets = [0, 0], sizes = [8, 32], strides = [1, 1]} : vector<8x128xf32> to vector<8x32xf32>
    %368 = vector.extract_strided_slice %364 {offsets = [0, 32], sizes = [8, 32], strides = [1, 1]} : vector<8x128xf32> to vector<8x32xf32>
    %369 = vector.extract_strided_slice %364 {offsets = [0, 96], sizes = [8, 32], strides = [1, 1]} : vector<8x128xf32> to vector<8x32xf32>
    %370 = arith.mulf %368, %284 : vector<8x32xf32>
    %371 = arith.mulf %367, %366 : vector<8x32xf32>
    %372 = arith.addf %370, %371 : vector<8x32xf32>
    %373 = math.tanh %372 : vector<8x32xf32>
    %374 = arith.mulf %369, %373 : vector<8x32xf32>
    %375 = arith.truncf %374 : vector<8x32xf32> to vector<8x32xbf16>
    %cst_122 = arith.constant dense<0.000000e+00> : vector<8x128xf32>
    %376 = tpu.matmul %375, %9, %cst_122 {dimension_numbers = #tpu.dot_dimension_numbers<[1], [0], [0], [1], [0, 0, 1, 1], [], []>} : vector<8x32xbf16>, vector<32x128xbf16>, vector<8x128xf32> -> vector<8x128xf32>
    %377 = arith.truncf %308 : vector<8x32xf32> to vector<8x32xbf16>
    %cst_123 = arith.constant dense<0.000000e+00> : vector<8x128xf32>
    %378 = tpu.matmul %377, %13, %cst_123 {dimension_numbers = #tpu.dot_dimension_numbers<[1], [0], [0], [1], [0, 0, 1, 1], [], []>} : vector<8x32xbf16>, vector<32x128xbf16>, vector<8x128xf32> -> vector<8x128xf32>
    %379 = arith.addf %376, %378 : vector<8x128xf32>
    %380 = vector.broadcast %21 : vector<1x128xf32> to vector<8x128xf32>
    %381 = arith.addf %379, %380 : vector<8x128xf32>
    %382 = arith.negf %381 : vector<8x128xf32>
    %383 = math.exp %382 : vector<8x128xf32>
    %cst_124 = arith.constant 1.000000e+00 : f32
    %384 = vector.broadcast %cst_124 : f32 to vector<8x128xf32>
    %385 = arith.addf %384, %383 : vector<8x128xf32>
    %386 = arith.divf %384, %385 : vector<8x128xf32>
    %387 = vector.extract_strided_slice %381 {offsets = [0, 64], sizes = [8, 32], strides = [1, 1]} : vector<8x128xf32> to vector<8x32xf32>
    %388 = math.tanh %387 : vector<8x32xf32>
    %389 = vector.extract_strided_slice %386 {offsets = [0, 0], sizes = [8, 32], strides = [1, 1]} : vector<8x128xf32> to vector<8x32xf32>
    %390 = vector.extract_strided_slice %386 {offsets = [0, 32], sizes = [8, 32], strides = [1, 1]} : vector<8x128xf32> to vector<8x32xf32>
    %391 = vector.extract_strided_slice %386 {offsets = [0, 96], sizes = [8, 32], strides = [1, 1]} : vector<8x128xf32> to vector<8x32xf32>
    %392 = arith.mulf %390, %306 : vector<8x32xf32>
    %393 = arith.mulf %389, %388 : vector<8x32xf32>
    %394 = arith.addf %392, %393 : vector<8x32xf32>
    %395 = math.tanh %394 : vector<8x32xf32>
    %396 = arith.mulf %391, %395 : vector<8x32xf32>
    %c24_125 = arith.constant 24 : index
    %c0_126 = arith.constant 0 : index
    %397 = vector.load %arg15[%c24_125, %c0_126] : memref<64x32xf32, #tpu.memory_space<vmem>>, vector<8x32xf32>
    tpu.vector_store %arg15[%c24_125, %c0_126], %396 {strides = array<i32>} : memref<64x32xf32, #tpu.memory_space<vmem>>, vector<8x32xf32>,
    %c32 = arith.constant 32 : index
    %c0_127 = arith.constant 0 : index
    %398 = vector.load %arg0[%c32, %c0_127] : memref<64x32xf32, #tpu.memory_space<vmem>>, vector<8x32xf32>
    %c32_128 = arith.constant 32 : index
    %c0_129 = arith.constant 0 : index
    %399 = vector.load %arg14[%c32_128, %c0_129] : memref<64x128xf32, #tpu.memory_space<vmem>>, vector<8x128xf32>
    %400 = arith.truncf %329 : vector<8x32xf32> to vector<8x32xbf16>
    %cst_130 = arith.constant dense<0.000000e+00> : vector<8x128xf32>
    %401 = tpu.matmul %400, %1, %cst_130 {dimension_numbers = #tpu.dot_dimension_numbers<[1], [0], [0], [1], [0, 0, 1, 1], [], []>} : vector<8x32xbf16>, vector<32x128xbf16>, vector<8x128xf32> -> vector<8x128xf32>
    %402 = arith.addf %399, %401 : vector<8x128xf32>
    %403 = arith.negf %402 : vector<8x128xf32>
    %404 = math.exp %403 : vector<8x128xf32>
    %cst_131 = arith.constant 1.000000e+00 : f32
    %405 = vector.broadcast %cst_131 : f32 to vector<8x128xf32>
    %406 = arith.addf %405, %404 : vector<8x128xf32>
    %407 = arith.divf %405, %406 : vector<8x128xf32>
    %408 = vector.extract_strided_slice %402 {offsets = [0, 64], sizes = [8, 32], strides = [1, 1]} : vector<8x128xf32> to vector<8x32xf32>
    %409 = math.tanh %408 : vector<8x32xf32>
    %410 = vector.extract_strided_slice %407 {offsets = [0, 0], sizes = [8, 32], strides = [1, 1]} : vector<8x128xf32> to vector<8x32xf32>
    %411 = vector.extract_strided_slice %407 {offsets = [0, 32], sizes = [8, 32], strides = [1, 1]} : vector<8x128xf32> to vector<8x32xf32>
    %412 = vector.extract_strided_slice %407 {offsets = [0, 96], sizes = [8, 32], strides = [1, 1]} : vector<8x128xf32> to vector<8x32xf32>
    %413 = arith.mulf %411, %327 : vector<8x32xf32>
    %414 = arith.mulf %410, %409 : vector<8x32xf32>
    %415 = arith.addf %413, %414 : vector<8x32xf32>
    %416 = math.tanh %415 : vector<8x32xf32>
    %417 = arith.mulf %412, %416 : vector<8x32xf32>
    %418 = arith.truncf %417 : vector<8x32xf32> to vector<8x32xbf16>
    %cst_132 = arith.constant dense<0.000000e+00> : vector<8x128xf32>
    %419 = tpu.matmul %418, %5, %cst_132 {dimension_numbers = #tpu.dot_dimension_numbers<[1], [0], [0], [1], [0, 0, 1, 1], [], []>} : vector<8x32xbf16>, vector<32x128xbf16>, vector<8x128xf32> -> vector<8x128xf32>
    %420 = arith.truncf %351 : vector<8x32xf32> to vector<8x32xbf16>
    %cst_133 = arith.constant dense<0.000000e+00> : vector<8x128xf32>
    %421 = tpu.matmul %420, %3, %cst_133 {dimension_numbers = #tpu.dot_dimension_numbers<[1], [0], [0], [1], [0, 0, 1, 1], [], []>} : vector<8x32xbf16>, vector<32x128xbf16>, vector<8x128xf32> -> vector<8x128xf32>
    %422 = arith.addf %419, %421 : vector<8x128xf32>
    %423 = vector.broadcast %17 : vector<1x128xf32> to vector<8x128xf32>
    %424 = arith.addf %422, %423 : vector<8x128xf32>
    %425 = arith.negf %424 : vector<8x128xf32>
    %426 = math.exp %425 : vector<8x128xf32>
    %cst_134 = arith.constant 1.000000e+00 : f32
    %427 = vector.broadcast %cst_134 : f32 to vector<8x128xf32>
    %428 = arith.addf %427, %426 : vector<8x128xf32>
    %429 = arith.divf %427, %428 : vector<8x128xf32>
    %430 = vector.extract_strided_slice %424 {offsets = [0, 64], sizes = [8, 32], strides = [1, 1]} : vector<8x128xf32> to vector<8x32xf32>
    %431 = math.tanh %430 : vector<8x32xf32>
    %432 = vector.extract_strided_slice %429 {offsets = [0, 0], sizes = [8, 32], strides = [1, 1]} : vector<8x128xf32> to vector<8x32xf32>
    %433 = vector.extract_strided_slice %429 {offsets = [0, 32], sizes = [8, 32], strides = [1, 1]} : vector<8x128xf32> to vector<8x32xf32>
    %434 = vector.extract_strided_slice %429 {offsets = [0, 96], sizes = [8, 32], strides = [1, 1]} : vector<8x128xf32> to vector<8x32xf32>
    %435 = arith.mulf %433, %349 : vector<8x32xf32>
    %436 = arith.mulf %432, %431 : vector<8x32xf32>
    %437 = arith.addf %435, %436 : vector<8x32xf32>
    %438 = math.tanh %437 : vector<8x32xf32>
    %439 = arith.mulf %434, %438 : vector<8x32xf32>
    %440 = arith.addf %439, %398 : vector<8x32xf32>
    %441 = arith.truncf %440 : vector<8x32xf32> to vector<8x32xbf16>
    %cst_135 = arith.constant dense<0.000000e+00> : vector<8x128xf32>
    %442 = tpu.matmul %441, %7, %cst_135 {dimension_numbers = #tpu.dot_dimension_numbers<[1], [0], [0], [1], [0, 0, 1, 1], [], []>} : vector<8x32xbf16>, vector<32x128xbf16>, vector<8x128xf32> -> vector<8x128xf32>
    %443 = arith.truncf %374 : vector<8x32xf32> to vector<8x32xbf16>
    %cst_136 = arith.constant dense<0.000000e+00> : vector<8x128xf32>
    %444 = tpu.matmul %443, %11, %cst_136 {dimension_numbers = #tpu.dot_dimension_numbers<[1], [0], [0], [1], [0, 0, 1, 1], [], []>} : vector<8x32xbf16>, vector<32x128xbf16>, vector<8x128xf32> -> vector<8x128xf32>
    %445 = arith.addf %442, %444 : vector<8x128xf32>
    %446 = vector.broadcast %19 : vector<1x128xf32> to vector<8x128xf32>
    %447 = arith.addf %445, %446 : vector<8x128xf32>
    %448 = arith.negf %447 : vector<8x128xf32>
    %449 = math.exp %448 : vector<8x128xf32>
    %cst_137 = arith.constant 1.000000e+00 : f32
    %450 = vector.broadcast %cst_137 : f32 to vector<8x128xf32>
    %451 = arith.addf %450, %449 : vector<8x128xf32>
    %452 = arith.divf %450, %451 : vector<8x128xf32>
    %453 = vector.extract_strided_slice %447 {offsets = [0, 64], sizes = [8, 32], strides = [1, 1]} : vector<8x128xf32> to vector<8x32xf32>
    %454 = math.tanh %453 : vector<8x32xf32>
    %455 = vector.extract_strided_slice %452 {offsets = [0, 0], sizes = [8, 32], strides = [1, 1]} : vector<8x128xf32> to vector<8x32xf32>
    %456 = vector.extract_strided_slice %452 {offsets = [0, 32], sizes = [8, 32], strides = [1, 1]} : vector<8x128xf32> to vector<8x32xf32>
    %457 = vector.extract_strided_slice %452 {offsets = [0, 96], sizes = [8, 32], strides = [1, 1]} : vector<8x128xf32> to vector<8x32xf32>
    %458 = arith.mulf %456, %372 : vector<8x32xf32>
    %459 = arith.mulf %455, %454 : vector<8x32xf32>
    %460 = arith.addf %458, %459 : vector<8x32xf32>
    %461 = math.tanh %460 : vector<8x32xf32>
    %462 = arith.mulf %457, %461 : vector<8x32xf32>
    %463 = arith.truncf %462 : vector<8x32xf32> to vector<8x32xbf16>
    %cst_138 = arith.constant dense<0.000000e+00> : vector<8x128xf32>
    %464 = tpu.matmul %463, %9, %cst_138 {dimension_numbers = #tpu.dot_dimension_numbers<[1], [0], [0], [1], [0, 0, 1, 1], [], []>} : vector<8x32xbf16>, vector<32x128xbf16>, vector<8x128xf32> -> vector<8x128xf32>
    %465 = arith.truncf %396 : vector<8x32xf32> to vector<8x32xbf16>
    %cst_139 = arith.constant dense<0.000000e+00> : vector<8x128xf32>
    %466 = tpu.matmul %465, %13, %cst_139 {dimension_numbers = #tpu.dot_dimension_numbers<[1], [0], [0], [1], [0, 0, 1, 1], [], []>} : vector<8x32xbf16>, vector<32x128xbf16>, vector<8x128xf32> -> vector<8x128xf32>
    %467 = arith.addf %464, %466 : vector<8x128xf32>
    %468 = vector.broadcast %21 : vector<1x128xf32> to vector<8x128xf32>
    %469 = arith.addf %467, %468 : vector<8x128xf32>
    %470 = arith.negf %469 : vector<8x128xf32>
    %471 = math.exp %470 : vector<8x128xf32>
    %cst_140 = arith.constant 1.000000e+00 : f32
    %472 = vector.broadcast %cst_140 : f32 to vector<8x128xf32>
    %473 = arith.addf %472, %471 : vector<8x128xf32>
    %474 = arith.divf %472, %473 : vector<8x128xf32>
    %475 = vector.extract_strided_slice %469 {offsets = [0, 64], sizes = [8, 32], strides = [1, 1]} : vector<8x128xf32> to vector<8x32xf32>
    %476 = math.tanh %475 : vector<8x32xf32>
    %477 = vector.extract_strided_slice %474 {offsets = [0, 0], sizes = [8, 32], strides = [1, 1]} : vector<8x128xf32> to vector<8x32xf32>
    %478 = vector.extract_strided_slice %474 {offsets = [0, 32], sizes = [8, 32], strides = [1, 1]} : vector<8x128xf32> to vector<8x32xf32>
    %479 = vector.extract_strided_slice %474 {offsets = [0, 96], sizes = [8, 32], strides = [1, 1]} : vector<8x128xf32> to vector<8x32xf32>
    %480 = arith.mulf %478, %394 : vector<8x32xf32>
    %481 = arith.mulf %477, %476 : vector<8x32xf32>
    %482 = arith.addf %480, %481 : vector<8x32xf32>
    %483 = math.tanh %482 : vector<8x32xf32>
    %484 = arith.mulf %479, %483 : vector<8x32xf32>
    %c32_141 = arith.constant 32 : index
    %c0_142 = arith.constant 0 : index
    %485 = vector.load %arg15[%c32_141, %c0_142] : memref<64x32xf32, #tpu.memory_space<vmem>>, vector<8x32xf32>
    tpu.vector_store %arg15[%c32_141, %c0_142], %484 {strides = array<i32>} : memref<64x32xf32, #tpu.memory_space<vmem>>, vector<8x32xf32>,
    %c40 = arith.constant 40 : index
    %c0_143 = arith.constant 0 : index
    %486 = vector.load %arg0[%c40, %c0_143] : memref<64x32xf32, #tpu.memory_space<vmem>>, vector<8x32xf32>
    %c40_144 = arith.constant 40 : index
    %c0_145 = arith.constant 0 : index
    %487 = vector.load %arg14[%c40_144, %c0_145] : memref<64x128xf32, #tpu.memory_space<vmem>>, vector<8x128xf32>
    %488 = arith.truncf %417 : vector<8x32xf32> to vector<8x32xbf16>
    %cst_146 = arith.constant dense<0.000000e+00> : vector<8x128xf32>
    %489 = tpu.matmul %488, %1, %cst_146 {dimension_numbers = #tpu.dot_dimension_numbers<[1], [0], [0], [1], [0, 0, 1, 1], [], []>} : vector<8x32xbf16>, vector<32x128xbf16>, vector<8x128xf32> -> vector<8x128xf32>
    %490 = arith.addf %487, %489 : vector<8x128xf32>
    %491 = arith.negf %490 : vector<8x128xf32>
    %492 = math.exp %491 : vector<8x128xf32>
    %cst_147 = arith.constant 1.000000e+00 : f32
    %493 = vector.broadcast %cst_147 : f32 to vector<8x128xf32>
    %494 = arith.addf %493, %492 : vector<8x128xf32>
    %495 = arith.divf %493, %494 : vector<8x128xf32>
    %496 = vector.extract_strided_slice %490 {offsets = [0, 64], sizes = [8, 32], strides = [1, 1]} : vector<8x128xf32> to vector<8x32xf32>
    %497 = math.tanh %496 : vector<8x32xf32>
    %498 = vector.extract_strided_slice %495 {offsets = [0, 0], sizes = [8, 32], strides = [1, 1]} : vector<8x128xf32> to vector<8x32xf32>
    %499 = vector.extract_strided_slice %495 {offsets = [0, 32], sizes = [8, 32], strides = [1, 1]} : vector<8x128xf32> to vector<8x32xf32>
    %500 = vector.extract_strided_slice %495 {offsets = [0, 96], sizes = [8, 32], strides = [1, 1]} : vector<8x128xf32> to vector<8x32xf32>
    %501 = arith.mulf %499, %415 : vector<8x32xf32>
    %502 = arith.mulf %498, %497 : vector<8x32xf32>
    %503 = arith.addf %501, %502 : vector<8x32xf32>
    %504 = math.tanh %503 : vector<8x32xf32>
    %505 = arith.mulf %500, %504 : vector<8x32xf32>
    %506 = arith.truncf %505 : vector<8x32xf32> to vector<8x32xbf16>
    %cst_148 = arith.constant dense<0.000000e+00> : vector<8x128xf32>
    %507 = tpu.matmul %506, %5, %cst_148 {dimension_numbers = #tpu.dot_dimension_numbers<[1], [0], [0], [1], [0, 0, 1, 1], [], []>} : vector<8x32xbf16>, vector<32x128xbf16>, vector<8x128xf32> -> vector<8x128xf32>
    %508 = arith.truncf %439 : vector<8x32xf32> to vector<8x32xbf16>
    %cst_149 = arith.constant dense<0.000000e+00> : vector<8x128xf32>
    %509 = tpu.matmul %508, %3, %cst_149 {dimension_numbers = #tpu.dot_dimension_numbers<[1], [0], [0], [1], [0, 0, 1, 1], [], []>} : vector<8x32xbf16>, vector<32x128xbf16>, vector<8x128xf32> -> vector<8x128xf32>
    %510 = arith.addf %507, %509 : vector<8x128xf32>
    %511 = vector.broadcast %17 : vector<1x128xf32> to vector<8x128xf32>
    %512 = arith.addf %510, %511 : vector<8x128xf32>
    %513 = arith.negf %512 : vector<8x128xf32>
    %514 = math.exp %513 : vector<8x128xf32>
    %cst_150 = arith.constant 1.000000e+00 : f32
    %515 = vector.broadcast %cst_150 : f32 to vector<8x128xf32>
    %516 = arith.addf %515, %514 : vector<8x128xf32>
    %517 = arith.divf %515, %516 : vector<8x128xf32>
    %518 = vector.extract_strided_slice %512 {offsets = [0, 64], sizes = [8, 32], strides = [1, 1]} : vector<8x128xf32> to vector<8x32xf32>
    %519 = math.tanh %518 : vector<8x32xf32>
    %520 = vector.extract_strided_slice %517 {offsets = [0, 0], sizes = [8, 32], strides = [1, 1]} : vector<8x128xf32> to vector<8x32xf32>
    %521 = vector.extract_strided_slice %517 {offsets = [0, 32], sizes = [8, 32], strides = [1, 1]} : vector<8x128xf32> to vector<8x32xf32>
    %522 = vector.extract_strided_slice %517 {offsets = [0, 96], sizes = [8, 32], strides = [1, 1]} : vector<8x128xf32> to vector<8x32xf32>
    %523 = arith.mulf %521, %437 : vector<8x32xf32>
    %524 = arith.mulf %520, %519 : vector<8x32xf32>
    %525 = arith.addf %523, %524 : vector<8x32xf32>
    %526 = math.tanh %525 : vector<8x32xf32>
    %527 = arith.mulf %522, %526 : vector<8x32xf32>
    %528 = arith.addf %527, %486 : vector<8x32xf32>
    %529 = arith.truncf %528 : vector<8x32xf32> to vector<8x32xbf16>
    %cst_151 = arith.constant dense<0.000000e+00> : vector<8x128xf32>
    %530 = tpu.matmul %529, %7, %cst_151 {dimension_numbers = #tpu.dot_dimension_numbers<[1], [0], [0], [1], [0, 0, 1, 1], [], []>} : vector<8x32xbf16>, vector<32x128xbf16>, vector<8x128xf32> -> vector<8x128xf32>
    %531 = arith.truncf %462 : vector<8x32xf32> to vector<8x32xbf16>
    %cst_152 = arith.constant dense<0.000000e+00> : vector<8x128xf32>
    %532 = tpu.matmul %531, %11, %cst_152 {dimension_numbers = #tpu.dot_dimension_numbers<[1], [0], [0], [1], [0, 0, 1, 1], [], []>} : vector<8x32xbf16>, vector<32x128xbf16>, vector<8x128xf32> -> vector<8x128xf32>
    %533 = arith.addf %530, %532 : vector<8x128xf32>
    %534 = vector.broadcast %19 : vector<1x128xf32> to vector<8x128xf32>
    %535 = arith.addf %533, %534 : vector<8x128xf32>
    %536 = arith.negf %535 : vector<8x128xf32>
    %537 = math.exp %536 : vector<8x128xf32>
    %cst_153 = arith.constant 1.000000e+00 : f32
    %538 = vector.broadcast %cst_153 : f32 to vector<8x128xf32>
    %539 = arith.addf %538, %537 : vector<8x128xf32>
    %540 = arith.divf %538, %539 : vector<8x128xf32>
    %541 = vector.extract_strided_slice %535 {offsets = [0, 64], sizes = [8, 32], strides = [1, 1]} : vector<8x128xf32> to vector<8x32xf32>
    %542 = math.tanh %541 : vector<8x32xf32>
    %543 = vector.extract_strided_slice %540 {offsets = [0, 0], sizes = [8, 32], strides = [1, 1]} : vector<8x128xf32> to vector<8x32xf32>
    %544 = vector.extract_strided_slice %540 {offsets = [0, 32], sizes = [8, 32], strides = [1, 1]} : vector<8x128xf32> to vector<8x32xf32>
    %545 = vector.extract_strided_slice %540 {offsets = [0, 96], sizes = [8, 32], strides = [1, 1]} : vector<8x128xf32> to vector<8x32xf32>
    %546 = arith.mulf %544, %460 : vector<8x32xf32>
    %547 = arith.mulf %543, %542 : vector<8x32xf32>
    %548 = arith.addf %546, %547 : vector<8x32xf32>
    %549 = math.tanh %548 : vector<8x32xf32>
    %550 = arith.mulf %545, %549 : vector<8x32xf32>
    %551 = arith.truncf %550 : vector<8x32xf32> to vector<8x32xbf16>
    %cst_154 = arith.constant dense<0.000000e+00> : vector<8x128xf32>
    %552 = tpu.matmul %551, %9, %cst_154 {dimension_numbers = #tpu.dot_dimension_numbers<[1], [0], [0], [1], [0, 0, 1, 1], [], []>} : vector<8x32xbf16>, vector<32x128xbf16>, vector<8x128xf32> -> vector<8x128xf32>
    %553 = arith.truncf %484 : vector<8x32xf32> to vector<8x32xbf16>
    %cst_155 = arith.constant dense<0.000000e+00> : vector<8x128xf32>
    %554 = tpu.matmul %553, %13, %cst_155 {dimension_numbers = #tpu.dot_dimension_numbers<[1], [0], [0], [1], [0, 0, 1, 1], [], []>} : vector<8x32xbf16>, vector<32x128xbf16>, vector<8x128xf32> -> vector<8x128xf32>
    %555 = arith.addf %552, %554 : vector<8x128xf32>
    %556 = vector.broadcast %21 : vector<1x128xf32> to vector<8x128xf32>
    %557 = arith.addf %555, %556 : vector<8x128xf32>
    %558 = arith.negf %557 : vector<8x128xf32>
    %559 = math.exp %558 : vector<8x128xf32>
    %cst_156 = arith.constant 1.000000e+00 : f32
    %560 = vector.broadcast %cst_156 : f32 to vector<8x128xf32>
    %561 = arith.addf %560, %559 : vector<8x128xf32>
    %562 = arith.divf %560, %561 : vector<8x128xf32>
    %563 = vector.extract_strided_slice %557 {offsets = [0, 64], sizes = [8, 32], strides = [1, 1]} : vector<8x128xf32> to vector<8x32xf32>
    %564 = math.tanh %563 : vector<8x32xf32>
    %565 = vector.extract_strided_slice %562 {offsets = [0, 0], sizes = [8, 32], strides = [1, 1]} : vector<8x128xf32> to vector<8x32xf32>
    %566 = vector.extract_strided_slice %562 {offsets = [0, 32], sizes = [8, 32], strides = [1, 1]} : vector<8x128xf32> to vector<8x32xf32>
    %567 = vector.extract_strided_slice %562 {offsets = [0, 96], sizes = [8, 32], strides = [1, 1]} : vector<8x128xf32> to vector<8x32xf32>
    %568 = arith.mulf %566, %482 : vector<8x32xf32>
    %569 = arith.mulf %565, %564 : vector<8x32xf32>
    %570 = arith.addf %568, %569 : vector<8x32xf32>
    %571 = math.tanh %570 : vector<8x32xf32>
    %572 = arith.mulf %567, %571 : vector<8x32xf32>
    %c40_157 = arith.constant 40 : index
    %c0_158 = arith.constant 0 : index
    %573 = vector.load %arg15[%c40_157, %c0_158] : memref<64x32xf32, #tpu.memory_space<vmem>>, vector<8x32xf32>
    tpu.vector_store %arg15[%c40_157, %c0_158], %572 {strides = array<i32>} : memref<64x32xf32, #tpu.memory_space<vmem>>, vector<8x32xf32>,
    %c48 = arith.constant 48 : index
    %c0_159 = arith.constant 0 : index
    %574 = vector.load %arg0[%c48, %c0_159] : memref<64x32xf32, #tpu.memory_space<vmem>>, vector<8x32xf32>
    %c48_160 = arith.constant 48 : index
    %c0_161 = arith.constant 0 : index
    %575 = vector.load %arg14[%c48_160, %c0_161] : memref<64x128xf32, #tpu.memory_space<vmem>>, vector<8x128xf32>
    %576 = arith.truncf %505 : vector<8x32xf32> to vector<8x32xbf16>
    %cst_162 = arith.constant dense<0.000000e+00> : vector<8x128xf32>
    %577 = tpu.matmul %576, %1, %cst_162 {dimension_numbers = #tpu.dot_dimension_numbers<[1], [0], [0], [1], [0, 0, 1, 1], [], []>} : vector<8x32xbf16>, vector<32x128xbf16>, vector<8x128xf32> -> vector<8x128xf32>
    %578 = arith.addf %575, %577 : vector<8x128xf32>
    %579 = arith.negf %578 : vector<8x128xf32>
    %580 = math.exp %579 : vector<8x128xf32>
    %cst_163 = arith.constant 1.000000e+00 : f32
    %581 = vector.broadcast %cst_163 : f32 to vector<8x128xf32>
    %582 = arith.addf %581, %580 : vector<8x128xf32>
    %583 = arith.divf %581, %582 : vector<8x128xf32>
    %584 = vector.extract_strided_slice %578 {offsets = [0, 64], sizes = [8, 32], strides = [1, 1]} : vector<8x128xf32> to vector<8x32xf32>
    %585 = math.tanh %584 : vector<8x32xf32>
    %586 = vector.extract_strided_slice %583 {offsets = [0, 0], sizes = [8, 32], strides = [1, 1]} : vector<8x128xf32> to vector<8x32xf32>
    %587 = vector.extract_strided_slice %583 {offsets = [0, 32], sizes = [8, 32], strides = [1, 1]} : vector<8x128xf32> to vector<8x32xf32>
    %588 = vector.extract_strided_slice %583 {offsets = [0, 96], sizes = [8, 32], strides = [1, 1]} : vector<8x128xf32> to vector<8x32xf32>
    %589 = arith.mulf %587, %503 : vector<8x32xf32>
    %590 = arith.mulf %586, %585 : vector<8x32xf32>
    %591 = arith.addf %589, %590 : vector<8x32xf32>
    %592 = math.tanh %591 : vector<8x32xf32>
    %593 = arith.mulf %588, %592 : vector<8x32xf32>
    %594 = arith.truncf %593 : vector<8x32xf32> to vector<8x32xbf16>
    %cst_164 = arith.constant dense<0.000000e+00> : vector<8x128xf32>
    %595 = tpu.matmul %594, %5, %cst_164 {dimension_numbers = #tpu.dot_dimension_numbers<[1], [0], [0], [1], [0, 0, 1, 1], [], []>} : vector<8x32xbf16>, vector<32x128xbf16>, vector<8x128xf32> -> vector<8x128xf32>
    %596 = arith.truncf %527 : vector<8x32xf32> to vector<8x32xbf16>
    %cst_165 = arith.constant dense<0.000000e+00> : vector<8x128xf32>
    %597 = tpu.matmul %596, %3, %cst_165 {dimension_numbers = #tpu.dot_dimension_numbers<[1], [0], [0], [1], [0, 0, 1, 1], [], []>} : vector<8x32xbf16>, vector<32x128xbf16>, vector<8x128xf32> -> vector<8x128xf32>
    %598 = arith.addf %595, %597 : vector<8x128xf32>
    %599 = vector.broadcast %17 : vector<1x128xf32> to vector<8x128xf32>
    %600 = arith.addf %598, %599 : vector<8x128xf32>
    %601 = arith.negf %600 : vector<8x128xf32>
    %602 = math.exp %601 : vector<8x128xf32>
    %cst_166 = arith.constant 1.000000e+00 : f32
    %603 = vector.broadcast %cst_166 : f32 to vector<8x128xf32>
    %604 = arith.addf %603, %602 : vector<8x128xf32>
    %605 = arith.divf %603, %604 : vector<8x128xf32>
    %606 = vector.extract_strided_slice %600 {offsets = [0, 64], sizes = [8, 32], strides = [1, 1]} : vector<8x128xf32> to vector<8x32xf32>
    %607 = math.tanh %606 : vector<8x32xf32>
    %608 = vector.extract_strided_slice %605 {offsets = [0, 0], sizes = [8, 32], strides = [1, 1]} : vector<8x128xf32> to vector<8x32xf32>
    %609 = vector.extract_strided_slice %605 {offsets = [0, 32], sizes = [8, 32], strides = [1, 1]} : vector<8x128xf32> to vector<8x32xf32>
    %610 = vector.extract_strided_slice %605 {offsets = [0, 96], sizes = [8, 32], strides = [1, 1]} : vector<8x128xf32> to vector<8x32xf32>
    %611 = arith.mulf %609, %525 : vector<8x32xf32>
    %612 = arith.mulf %608, %607 : vector<8x32xf32>
    %613 = arith.addf %611, %612 : vector<8x32xf32>
    %614 = math.tanh %613 : vector<8x32xf32>
    %615 = arith.mulf %610, %614 : vector<8x32xf32>
    %616 = arith.addf %615, %574 : vector<8x32xf32>
    %617 = arith.truncf %616 : vector<8x32xf32> to vector<8x32xbf16>
    %cst_167 = arith.constant dense<0.000000e+00> : vector<8x128xf32>
    %618 = tpu.matmul %617, %7, %cst_167 {dimension_numbers = #tpu.dot_dimension_numbers<[1], [0], [0], [1], [0, 0, 1, 1], [], []>} : vector<8x32xbf16>, vector<32x128xbf16>, vector<8x128xf32> -> vector<8x128xf32>
    %619 = arith.truncf %550 : vector<8x32xf32> to vector<8x32xbf16>
    %cst_168 = arith.constant dense<0.000000e+00> : vector<8x128xf32>
    %620 = tpu.matmul %619, %11, %cst_168 {dimension_numbers = #tpu.dot_dimension_numbers<[1], [0], [0], [1], [0, 0, 1, 1], [], []>} : vector<8x32xbf16>, vector<32x128xbf16>, vector<8x128xf32> -> vector<8x128xf32>
    %621 = arith.addf %618, %620 : vector<8x128xf32>
    %622 = vector.broadcast %19 : vector<1x128xf32> to vector<8x128xf32>
    %623 = arith.addf %621, %622 : vector<8x128xf32>
    %624 = arith.negf %623 : vector<8x128xf32>
    %625 = math.exp %624 : vector<8x128xf32>
    %cst_169 = arith.constant 1.000000e+00 : f32
    %626 = vector.broadcast %cst_169 : f32 to vector<8x128xf32>
    %627 = arith.addf %626, %625 : vector<8x128xf32>
    %628 = arith.divf %626, %627 : vector<8x128xf32>
    %629 = vector.extract_strided_slice %623 {offsets = [0, 64], sizes = [8, 32], strides = [1, 1]} : vector<8x128xf32> to vector<8x32xf32>
    %630 = math.tanh %629 : vector<8x32xf32>
    %631 = vector.extract_strided_slice %628 {offsets = [0, 0], sizes = [8, 32], strides = [1, 1]} : vector<8x128xf32> to vector<8x32xf32>
    %632 = vector.extract_strided_slice %628 {offsets = [0, 32], sizes = [8, 32], strides = [1, 1]} : vector<8x128xf32> to vector<8x32xf32>
    %633 = vector.extract_strided_slice %628 {offsets = [0, 96], sizes = [8, 32], strides = [1, 1]} : vector<8x128xf32> to vector<8x32xf32>
    %634 = arith.mulf %632, %548 : vector<8x32xf32>
    %635 = arith.mulf %631, %630 : vector<8x32xf32>
    %636 = arith.addf %634, %635 : vector<8x32xf32>
    %637 = math.tanh %636 : vector<8x32xf32>
    %638 = arith.mulf %633, %637 : vector<8x32xf32>
    %639 = arith.truncf %638 : vector<8x32xf32> to vector<8x32xbf16>
    %cst_170 = arith.constant dense<0.000000e+00> : vector<8x128xf32>
    %640 = tpu.matmul %639, %9, %cst_170 {dimension_numbers = #tpu.dot_dimension_numbers<[1], [0], [0], [1], [0, 0, 1, 1], [], []>} : vector<8x32xbf16>, vector<32x128xbf16>, vector<8x128xf32> -> vector<8x128xf32>
    %641 = arith.truncf %572 : vector<8x32xf32> to vector<8x32xbf16>
    %cst_171 = arith.constant dense<0.000000e+00> : vector<8x128xf32>
    %642 = tpu.matmul %641, %13, %cst_171 {dimension_numbers = #tpu.dot_dimension_numbers<[1], [0], [0], [1], [0, 0, 1, 1], [], []>} : vector<8x32xbf16>, vector<32x128xbf16>, vector<8x128xf32> -> vector<8x128xf32>
    %643 = arith.addf %640, %642 : vector<8x128xf32>
    %644 = vector.broadcast %21 : vector<1x128xf32> to vector<8x128xf32>
    %645 = arith.addf %643, %644 : vector<8x128xf32>
    %646 = arith.negf %645 : vector<8x128xf32>
    %647 = math.exp %646 : vector<8x128xf32>
    %cst_172 = arith.constant 1.000000e+00 : f32
    %648 = vector.broadcast %cst_172 : f32 to vector<8x128xf32>
    %649 = arith.addf %648, %647 : vector<8x128xf32>
    %650 = arith.divf %648, %649 : vector<8x128xf32>
    %651 = vector.extract_strided_slice %645 {offsets = [0, 64], sizes = [8, 32], strides = [1, 1]} : vector<8x128xf32> to vector<8x32xf32>
    %652 = math.tanh %651 : vector<8x32xf32>
    %653 = vector.extract_strided_slice %650 {offsets = [0, 0], sizes = [8, 32], strides = [1, 1]} : vector<8x128xf32> to vector<8x32xf32>
    %654 = vector.extract_strided_slice %650 {offsets = [0, 32], sizes = [8, 32], strides = [1, 1]} : vector<8x128xf32> to vector<8x32xf32>
    %655 = vector.extract_strided_slice %650 {offsets = [0, 96], sizes = [8, 32], strides = [1, 1]} : vector<8x128xf32> to vector<8x32xf32>
    %656 = arith.mulf %654, %570 : vector<8x32xf32>
    %657 = arith.mulf %653, %652 : vector<8x32xf32>
    %658 = arith.addf %656, %657 : vector<8x32xf32>
    %659 = math.tanh %658 : vector<8x32xf32>
    %660 = arith.mulf %655, %659 : vector<8x32xf32>
    %c48_173 = arith.constant 48 : index
    %c0_174 = arith.constant 0 : index
    %661 = vector.load %arg15[%c48_173, %c0_174] : memref<64x32xf32, #tpu.memory_space<vmem>>, vector<8x32xf32>
    tpu.vector_store %arg15[%c48_173, %c0_174], %660 {strides = array<i32>} : memref<64x32xf32, #tpu.memory_space<vmem>>, vector<8x32xf32>,
    %c56 = arith.constant 56 : index
    %c0_175 = arith.constant 0 : index
    %662 = vector.load %arg0[%c56, %c0_175] : memref<64x32xf32, #tpu.memory_space<vmem>>, vector<8x32xf32>
    %c56_176 = arith.constant 56 : index
    %c0_177 = arith.constant 0 : index
    %663 = vector.load %arg14[%c56_176, %c0_177] : memref<64x128xf32, #tpu.memory_space<vmem>>, vector<8x128xf32>
    %664 = arith.truncf %593 : vector<8x32xf32> to vector<8x32xbf16>
    %cst_178 = arith.constant dense<0.000000e+00> : vector<8x128xf32>
    %665 = tpu.matmul %664, %1, %cst_178 {dimension_numbers = #tpu.dot_dimension_numbers<[1], [0], [0], [1], [0, 0, 1, 1], [], []>} : vector<8x32xbf16>, vector<32x128xbf16>, vector<8x128xf32> -> vector<8x128xf32>
    %666 = arith.addf %663, %665 : vector<8x128xf32>
    %667 = arith.negf %666 : vector<8x128xf32>
    %668 = math.exp %667 : vector<8x128xf32>
    %cst_179 = arith.constant 1.000000e+00 : f32
    %669 = vector.broadcast %cst_179 : f32 to vector<8x128xf32>
    %670 = arith.addf %669, %668 : vector<8x128xf32>
    %671 = arith.divf %669, %670 : vector<8x128xf32>
    %672 = vector.extract_strided_slice %666 {offsets = [0, 64], sizes = [8, 32], strides = [1, 1]} : vector<8x128xf32> to vector<8x32xf32>
    %673 = math.tanh %672 : vector<8x32xf32>
    %674 = vector.extract_strided_slice %671 {offsets = [0, 0], sizes = [8, 32], strides = [1, 1]} : vector<8x128xf32> to vector<8x32xf32>
    %675 = vector.extract_strided_slice %671 {offsets = [0, 32], sizes = [8, 32], strides = [1, 1]} : vector<8x128xf32> to vector<8x32xf32>
    %676 = vector.extract_strided_slice %671 {offsets = [0, 96], sizes = [8, 32], strides = [1, 1]} : vector<8x128xf32> to vector<8x32xf32>
    %677 = arith.mulf %675, %591 : vector<8x32xf32>
    %678 = arith.mulf %674, %673 : vector<8x32xf32>
    %679 = arith.addf %677, %678 : vector<8x32xf32>
    %680 = math.tanh %679 : vector<8x32xf32>
    %681 = arith.mulf %676, %680 : vector<8x32xf32>
    %682 = arith.truncf %681 : vector<8x32xf32> to vector<8x32xbf16>
    %cst_180 = arith.constant dense<0.000000e+00> : vector<8x128xf32>
    %683 = tpu.matmul %682, %5, %cst_180 {dimension_numbers = #tpu.dot_dimension_numbers<[1], [0], [0], [1], [0, 0, 1, 1], [], []>} : vector<8x32xbf16>, vector<32x128xbf16>, vector<8x128xf32> -> vector<8x128xf32>
    %684 = arith.truncf %615 : vector<8x32xf32> to vector<8x32xbf16>
    %cst_181 = arith.constant dense<0.000000e+00> : vector<8x128xf32>
    %685 = tpu.matmul %684, %3, %cst_181 {dimension_numbers = #tpu.dot_dimension_numbers<[1], [0], [0], [1], [0, 0, 1, 1], [], []>} : vector<8x32xbf16>, vector<32x128xbf16>, vector<8x128xf32> -> vector<8x128xf32>
    %686 = arith.addf %683, %685 : vector<8x128xf32>
    %687 = vector.broadcast %17 : vector<1x128xf32> to vector<8x128xf32>
    %688 = arith.addf %686, %687 : vector<8x128xf32>
    %689 = arith.negf %688 : vector<8x128xf32>
    %690 = math.exp %689 : vector<8x128xf32>
    %cst_182 = arith.constant 1.000000e+00 : f32
    %691 = vector.broadcast %cst_182 : f32 to vector<8x128xf32>
    %692 = arith.addf %691, %690 : vector<8x128xf32>
    %693 = arith.divf %691, %692 : vector<8x128xf32>
    %694 = vector.extract_strided_slice %688 {offsets = [0, 64], sizes = [8, 32], strides = [1, 1]} : vector<8x128xf32> to vector<8x32xf32>
    %695 = math.tanh %694 : vector<8x32xf32>
    %696 = vector.extract_strided_slice %693 {offsets = [0, 0], sizes = [8, 32], strides = [1, 1]} : vector<8x128xf32> to vector<8x32xf32>
    %697 = vector.extract_strided_slice %693 {offsets = [0, 32], sizes = [8, 32], strides = [1, 1]} : vector<8x128xf32> to vector<8x32xf32>
    %698 = vector.extract_strided_slice %693 {offsets = [0, 96], sizes = [8, 32], strides = [1, 1]} : vector<8x128xf32> to vector<8x32xf32>
    %699 = arith.mulf %697, %613 : vector<8x32xf32>
    %700 = arith.mulf %696, %695 : vector<8x32xf32>
    %701 = arith.addf %699, %700 : vector<8x32xf32>
    %702 = math.tanh %701 : vector<8x32xf32>
    %703 = arith.mulf %698, %702 : vector<8x32xf32>
    %704 = arith.addf %703, %662 : vector<8x32xf32>
    %705 = arith.truncf %704 : vector<8x32xf32> to vector<8x32xbf16>
    %cst_183 = arith.constant dense<0.000000e+00> : vector<8x128xf32>
    %706 = tpu.matmul %705, %7, %cst_183 {dimension_numbers = #tpu.dot_dimension_numbers<[1], [0], [0], [1], [0, 0, 1, 1], [], []>} : vector<8x32xbf16>, vector<32x128xbf16>, vector<8x128xf32> -> vector<8x128xf32>
    %707 = arith.truncf %638 : vector<8x32xf32> to vector<8x32xbf16>
    %cst_184 = arith.constant dense<0.000000e+00> : vector<8x128xf32>
    %708 = tpu.matmul %707, %11, %cst_184 {dimension_numbers = #tpu.dot_dimension_numbers<[1], [0], [0], [1], [0, 0, 1, 1], [], []>} : vector<8x32xbf16>, vector<32x128xbf16>, vector<8x128xf32> -> vector<8x128xf32>
    %709 = arith.addf %706, %708 : vector<8x128xf32>
    %710 = vector.broadcast %19 : vector<1x128xf32> to vector<8x128xf32>
    %711 = arith.addf %709, %710 : vector<8x128xf32>
    %712 = arith.negf %711 : vector<8x128xf32>
    %713 = math.exp %712 : vector<8x128xf32>
    %cst_185 = arith.constant 1.000000e+00 : f32
    %714 = vector.broadcast %cst_185 : f32 to vector<8x128xf32>
    %715 = arith.addf %714, %713 : vector<8x128xf32>
    %716 = arith.divf %714, %715 : vector<8x128xf32>
    %717 = vector.extract_strided_slice %711 {offsets = [0, 64], sizes = [8, 32], strides = [1, 1]} : vector<8x128xf32> to vector<8x32xf32>
    %718 = math.tanh %717 : vector<8x32xf32>
    %719 = vector.extract_strided_slice %716 {offsets = [0, 0], sizes = [8, 32], strides = [1, 1]} : vector<8x128xf32> to vector<8x32xf32>
    %720 = vector.extract_strided_slice %716 {offsets = [0, 32], sizes = [8, 32], strides = [1, 1]} : vector<8x128xf32> to vector<8x32xf32>
    %721 = vector.extract_strided_slice %716 {offsets = [0, 96], sizes = [8, 32], strides = [1, 1]} : vector<8x128xf32> to vector<8x32xf32>
    %722 = arith.mulf %720, %636 : vector<8x32xf32>
    %723 = arith.mulf %719, %718 : vector<8x32xf32>
    %724 = arith.addf %722, %723 : vector<8x32xf32>
    %725 = math.tanh %724 : vector<8x32xf32>
    %726 = arith.mulf %721, %725 : vector<8x32xf32>
    %727 = arith.truncf %726 : vector<8x32xf32> to vector<8x32xbf16>
    %cst_186 = arith.constant dense<0.000000e+00> : vector<8x128xf32>
    %728 = tpu.matmul %727, %9, %cst_186 {dimension_numbers = #tpu.dot_dimension_numbers<[1], [0], [0], [1], [0, 0, 1, 1], [], []>} : vector<8x32xbf16>, vector<32x128xbf16>, vector<8x128xf32> -> vector<8x128xf32>
    %729 = arith.truncf %660 : vector<8x32xf32> to vector<8x32xbf16>
    %cst_187 = arith.constant dense<0.000000e+00> : vector<8x128xf32>
    %730 = tpu.matmul %729, %13, %cst_187 {dimension_numbers = #tpu.dot_dimension_numbers<[1], [0], [0], [1], [0, 0, 1, 1], [], []>} : vector<8x32xbf16>, vector<32x128xbf16>, vector<8x128xf32> -> vector<8x128xf32>
    %731 = arith.addf %728, %730 : vector<8x128xf32>
    %732 = vector.broadcast %21 : vector<1x128xf32> to vector<8x128xf32>
    %733 = arith.addf %731, %732 : vector<8x128xf32>
    %734 = arith.negf %733 : vector<8x128xf32>
    %735 = math.exp %734 : vector<8x128xf32>
    %cst_188 = arith.constant 1.000000e+00 : f32
    %736 = vector.broadcast %cst_188 : f32 to vector<8x128xf32>
    %737 = arith.addf %736, %735 : vector<8x128xf32>
    %738 = arith.divf %736, %737 : vector<8x128xf32>
    %739 = vector.extract_strided_slice %733 {offsets = [0, 64], sizes = [8, 32], strides = [1, 1]} : vector<8x128xf32> to vector<8x32xf32>
    %740 = math.tanh %739 : vector<8x32xf32>
    %741 = vector.extract_strided_slice %738 {offsets = [0, 0], sizes = [8, 32], strides = [1, 1]} : vector<8x128xf32> to vector<8x32xf32>
    %742 = vector.extract_strided_slice %738 {offsets = [0, 32], sizes = [8, 32], strides = [1, 1]} : vector<8x128xf32> to vector<8x32xf32>
    %743 = vector.extract_strided_slice %738 {offsets = [0, 96], sizes = [8, 32], strides = [1, 1]} : vector<8x128xf32> to vector<8x32xf32>
    %744 = arith.mulf %742, %658 : vector<8x32xf32>
    %745 = arith.mulf %741, %740 : vector<8x32xf32>
    %746 = arith.addf %744, %745 : vector<8x32xf32>
    %747 = math.tanh %746 : vector<8x32xf32>
    %748 = arith.mulf %743, %747 : vector<8x32xf32>
    %c56_189 = arith.constant 56 : index
    %c0_190 = arith.constant 0 : index
    %749 = vector.load %arg15[%c56_189, %c0_190] : memref<64x32xf32, #tpu.memory_space<vmem>>, vector<8x32xf32>
    tpu.vector_store %arg15[%c56_189, %c0_190], %748 {strides = array<i32>} : memref<64x32xf32, #tpu.memory_space<vmem>>, vector<8x32xf32>,
    %c0_191 = arith.constant 0 : index
    %c0_192 = arith.constant 0 : index
    %750 = vector.load %arg15[%c0_191, %c0_192] : memref<64x32xf32, #tpu.memory_space<vmem>>, vector<64x32xf32>
    %751 = arith.truncf %750 : vector<64x32xf32> to vector<64x32xbf16>
    %c0_193 = arith.constant 0 : index
    %c0_194 = arith.constant 0 : index
    %752 = vector.load %arg7[%c0_193, %c0_194] : memref<32x128xbf16, #tpu.memory_space<vmem>>, vector<32x128xbf16>
    %cst_195 = arith.constant dense<0.000000e+00> : vector<64x128xf32>
    %753 = tpu.matmul %751, %752, %cst_195 {dimension_numbers = #tpu.dot_dimension_numbers<[1], [0], [0], [1], [0, 0, 1, 1], [], []>} : vector<64x32xbf16>, vector<32x128xbf16>, vector<64x128xf32> -> vector<64x128xf32>
    %c0_196 = arith.constant 0 : index
    %c0_197 = arith.constant 0 : index
    %754 = vector.load %arg8[%c0_196, %c0_197] : memref<1x128xf32, #tpu.memory_space<vmem>>, vector<1x128xf32>
    %755 = vector.broadcast %754 : vector<1x128xf32> to vector<64x128xf32>
    %756 = arith.addf %753, %755 : vector<64x128xf32>
    %c0_198 = arith.constant 0 : index
    %c0_199 = arith.constant 0 : index
    %757 = vector.load %arg11[%c0_198, %c0_199] : memref<64x128xf32, #tpu.memory_space<vmem>>, vector<64x128xf32>
    tpu.vector_store %arg11[%c0_198, %c0_199], %756 {strides = array<i32>} : memref<64x128xf32, #tpu.memory_space<vmem>>, vector<64x128xf32>,
    %c0_200 = arith.constant 0 : index
    %c0_201 = arith.constant 0 : index
    %c0_202 = arith.constant 0 : index
    %758 = vector.load %arg12[%c0_200, %c0_201, %c0_202] : memref<2x8x32xf32, #tpu.memory_space<vmem>>, vector<1x8x32xf32>
    %759 = vector.shape_cast %758 : vector<1x8x32xf32> to vector<8x32xf32>
    %760 = vector.shape_cast %726 : vector<8x32xf32> to vector<1x8x32xf32>
    tpu.vector_store %arg12[%c0_200, %c0_201, %c0_202], %760 {strides = array<i32>} : memref<2x8x32xf32, #tpu.memory_space<vmem>>, vector<1x8x32xf32>,
    %c0_203 = arith.constant 0 : index
    %c0_204 = arith.constant 0 : index
    %c0_205 = arith.constant 0 : index
    %761 = vector.load %arg13[%c0_203, %c0_204, %c0_205] : memref<2x8x32xf32, #tpu.memory_space<vmem>>, vector<1x8x32xf32>
    %762 = vector.shape_cast %761 : vector<1x8x32xf32> to vector<8x32xf32>
    %763 = vector.shape_cast %724 : vector<8x32xf32> to vector<1x8x32xf32>
    tpu.vector_store %arg13[%c0_203, %c0_204, %c0_205], %763 {strides = array<i32>} : memref<2x8x32xf32, #tpu.memory_space<vmem>>, vector<1x8x32xf32>,
    %c1_206 = arith.constant 1 : index
    %c0_207 = arith.constant 0 : index
    %c0_208 = arith.constant 0 : index
    %764 = vector.load %arg12[%c1_206, %c0_207, %c0_208] : memref<2x8x32xf32, #tpu.memory_space<vmem>>, vector<1x8x32xf32>
    %765 = vector.shape_cast %764 : vector<1x8x32xf32> to vector<8x32xf32>
    %766 = vector.shape_cast %748 : vector<8x32xf32> to vector<1x8x32xf32>
    tpu.vector_store %arg12[%c1_206, %c0_207, %c0_208], %766 {strides = array<i32>} : memref<2x8x32xf32, #tpu.memory_space<vmem>>, vector<1x8x32xf32>,
    %c1_209 = arith.constant 1 : index
    %c0_210 = arith.constant 0 : index
    %c0_211 = arith.constant 0 : index
    %767 = vector.load %arg13[%c1_209, %c0_210, %c0_211] : memref<2x8x32xf32, #tpu.memory_space<vmem>>, vector<1x8x32xf32>
    %768 = vector.shape_cast %767 : vector<1x8x32xf32> to vector<8x32xf32>
    %769 = vector.shape_cast %746 : vector<8x32xf32> to vector<1x8x32xf32>
    tpu.vector_store %arg13[%c1_209, %c0_210, %c0_211], %769 {strides = array<i32>} : memref<2x8x32xf32, #tpu.memory_space<vmem>>, vector<1x8x32xf32>,
    return
  }
}

</mosaic_0001>

<bundles_post_ra>
// kernel: tpu_custom_call.1
= control target key start
LH: loop header
LB: loop body
LE: loop exit
PB: predicated region body
PF: predicated region fallthrough
CT: control target
= control target key end

     0   :  { %19 = vsyncpa [#allocation5], 0  ;;  %s6557_s0 = inlined_call_operand.vmem [shape: f32[64,32], index: 0, kind: input, shape index: {}]   ;;  %s6558_s1 = inlined_call_operand.vmem [shape: bf16[2,32,128], index: 1, kind: input, shape index: {}]   ;;  %s6559_s2 = inlined_call_operand.vmem [shape: bf16[2,32,128], index: 2, kind: input, shape index: {}]   ;;  %s6560_s3 = inlined_call_operand.vmem [shape: f32[2,1,128], index: 3, kind: input, shape index: {}]   ;;  %s6561_s4 = inlined_call_operand.vmem [shape: bf16[2,32,128], index: 4, kind: input, shape index: {}]   ;;  %s6562_s5 = inlined_call_operand.hbm [shape: bf16[2,32,128], index: 5, kind: input, shape index: {}]   ;;  %s6563_s6 = inlined_call_operand.hbm [shape: f32[2,1,128], index: 6, kind: input, shape index: {}]   ;;  %s6564_s7 = inlined_call_operand.vmem [shape: bf16[32,128], index: 7, kind: input, shape index: {}]   ;;  %s6565_s8 = inlined_call_operand.hbm [shape: f32[1,128], index: 8, kind: input, shape index: {}]   ;;  %s6566_s9 = inlined_call_operand.vmem [shape: f32[2,8,32], index: 9, kind: input, shape index: {}]   ;;  %s6567_s10 = inlined_call_operand.hbm [shape: f32[2,8,32], index: 10, kind: input, shape index: {}]   ;;  %s6568_s11 = inlined_call_operand.hbm [shape: f32[64,128], index: 11, kind: output, shape index: {0}]   ;;  %s6569_s12 = inlined_call_operand.hbm [shape: f32[2,8,32], index: 12, kind: output, shape index: {1}]   ;;  %s6570_s13 = inlined_call_operand.hbm [shape: f32[2,8,32], index: 13, kind: output, shape index: {2}]  }
   0x1   :  { %20 = vsyncpa [#allocation8], 0 }
   0x2   :  { %21 = vsyncpa [#allocation11], 0 }
   0x3   :  { %22 = vsyncpa [#allocation6], 0 }
   0x4   :  { %23 = vsyncpa [#allocation14], 0  ;;  %s5247_s25 = smov [#allocation7]   ;;  %s5083_s29 = scalar_lea.hbm %s6563_s6, 32 }
   0x5   :  { %s51_s26 = sshll.u32 %s5247_s25, 4  ;;  %p5084_p0 = scmp.ne.s32.totalorder %s6563_s6, %s5083_s29  ;;  %s52_s26 = int_to_ptr.vmem [resolvable:$true] %s51_s26 }
   0x6   :  { %p5087_p1 = scmp.lt.u32.totalorder %s5083_s29, %s6563_s6 }
   0x8   :  { %p5089_p2 = pnand %p5087_p1, %p5084_p0 }
   0xa   :  { %5092 = shalt.err (!%p5089_p2)
}
   0xb   :  { %s5093_s17 = scalar_lea.vmem %s52_s26, 32  ;;  %p5098_p4 = scmp.lt.s32.totalorder %s52_s26, %s52_s26 }
   0xc   :  { %p5094_p3 = scmp.ne.s32.totalorder %s52_s26, %s5093_s17  ;;  %p5099_p5 = scmp.lt.s32.totalorder %s5093_s17, %s5093_s17 }
   0xe   :  { %p5100_p6 = por %p5099_p5, %p5098_p4 }
  0x10   :  { %p5101_p7 = pnand %p5100_p6, %p5094_p3 }
  0x12   :  { %5104 = shalt.err (!%p5101_p7)
}
  0x13   :  { %s5248_s18 = smov 16   ;;  %s5249_s19 = smov 1  }
  0x14   :  { %57 = dma.hbm_to_vmem [thread:$0]  %s6563_s6, 32, %s52_s26, [#allocation8], %s5248_s18, %s5248_s18, %s5249_s19  }
  0x15   :  { %s5250_s22 = smov [#allocation4]   ;;  %s5105_s27 = scalar_lea.hbm %s6562_s5, 512 }
  0x16   :  { %s39_s23 = sshll.u32 %s5250_s22, 4  ;;  %p5106_p8 = scmp.ne.s32.totalorder %s6562_s5, %s5105_s27  ;;  %s40_s23 = int_to_ptr.vmem [resolvable:$true] %s39_s23 }
  0x17   :  { %p5109_p9 = scmp.lt.u32.totalorder %s5105_s27, %s6562_s5 }
  0x19   :  { %p5111_p10 = pnand %p5109_p9, %p5106_p8 }
  0x1b   :  { %5114 = shalt.err (!%p5111_p10)
}
  0x1c   :  { %s5115_s15 = scalar_lea.vmem %s40_s23, 512  ;;  %p5120_p12 = scmp.lt.s32.totalorder %s40_s23, %s40_s23 }
  0x1d   :  { %p5116_p11 = scmp.ne.s32.totalorder %s40_s23, %s5115_s15  ;;  %p5121_p13 = scmp.lt.s32.totalorder %s5115_s15, %s5115_s15 }
  0x1f   :  { %p5122_p0 = por %p5121_p13, %p5120_p12 }
  0x21   :  { %p5123_p1 = pnand %p5122_p0, %p5116_p11 }
  0x23   :  { %5126 = shalt.err (!%p5123_p1)
}
  0x24   :  { %s5251_s6 = smov 64   ;;  %s5252_s26 = smov 4  }
  0x25   :  { %45 = dma.hbm_to_vmem [thread:$0]  %s6562_s5, 512, %s40_s23, [#allocation5], %s5251_s6, %s5251_s6, %s5252_s26  }
  0x26   :  { %s5253_s18 = smov [#allocation9]   ;;  %s5254_s20 = smov [#allocation10]  }
  0x27   :  { %s66_s19 = sshll.u32 %s5253_s18, 4  ;;  %s77_s21 = sshll.u32 %s5254_s20, 4  ;;  %s67_s19 = int_to_ptr.vmem [resolvable:$true] %s66_s19  ;;  %s5360_s21 = int_to_ptr.vmem [resolvable:$true] %s77_s21 }
  0x28   :  { %s5127_s25 = scalar_lea.hbm %s6565_s8, 16 }
  0x29   :  { %p5128_p2 = scmp.ne.s32.totalorder %s6565_s8, %s5127_s25  ;;  %p5131_p3 = scmp.lt.u32.totalorder %s5127_s25, %s6565_s8 }
  0x2b   :  { %p5133_p4 = pnand %p5131_p3, %p5128_p2 }
  0x2d   :  { %5136 = shalt.err (!%p5133_p4)
}
  0x2e   :  { %s5137_s5 = scalar_lea.vmem %s67_s19, 16  ;;  %s5141_s23 = scalar_lea.vmem %s67_s19, 32 }
  0x2f   :  { %p5138_p5 = scmp.ne.s32.totalorder %s67_s19, %s5137_s5  ;;  %p5142_p6 = scmp.lt.s32.totalorder %s67_s19, %s67_s19 }
  0x30   :  { %p5143_p7 = scmp.lt.s32.totalorder %s5141_s23, %s5137_s5 }
  0x32   :  { %p5144_p8 = por %p5143_p7, %p5142_p6 }
  0x34   :  { %p5145_p9 = pnand %p5144_p8, %p5138_p5 }
  0x36   :  { %5148 = shalt.err (!%p5145_p9)
}
  0x37   :  { %69 = dma.hbm_to_vmem [thread:$0]  %s6565_s8, 16, %s67_s19, [#allocation8]  }
  0x38   :  { %s5149_s17 = scalar_lea.hbm %s6567_s10, 256 }
  0x39   :  { %p5150_p10 = scmp.ne.s32.totalorder %s6567_s10, %s5149_s17  ;;  %p5153_p11 = scmp.lt.u32.totalorder %s5149_s17, %s6567_s10 }
  0x3b   :  { %p5155_p12 = pnand %p5153_p11, %p5150_p10 }
  0x3d   :  { %5158 = shalt.err (!%p5155_p12)
}
  0x3e   :  { %s5159_s25 = scalar_lea.vmem %s5360_s21, 256  ;;  %p5164_p0 = scmp.lt.s32.totalorder %s5360_s21, %s5360_s21 }
  0x3f   :  { %p5160_p13 = scmp.ne.s32.totalorder %s5360_s21, %s5159_s25  ;;  %p5165_p1 = scmp.lt.s32.totalorder %s5159_s25, %s5159_s25 }
  0x41   :  { %p5166_p2 = por %p5165_p1, %p5164_p0 }
  0x43   :  { %p5167_p3 = pnand %p5166_p2, %p5160_p13 }
  0x45   :  { %5170 = shalt.err (!%p5167_p3)
}
  0x46   :  { %s5255_s8 = smov 128   ;;  %s5256_s19 = smov 8  }
  0x47   :  { %83 = dma.hbm_to_vmem [thread:$0]  %s6567_s10, 256, %s5360_s21, [#allocation11], %s5255_s8, %s5255_s8, %s5256_s19  }
  0x48   :  { %5237 = dma.done.wait [#allocation5], 512  }
  0x49   :  { %5238 = vsyncadd [#allocation5], 4294966784 }
  0x4a   :  { %5239 = dma.done.wait [#allocation8], 48  }
  0x4b   :  { %5240 = vsyncadd [#allocation8], 4294967248 }
  0x4c   :  { %5241 = dma.done.wait [#allocation11], 256  }
  0x4d   :  { %5242 = vsyncadd [#allocation11], 4294967040  ;;  %v4775_v0 = vld [vmem:[%s6558_s1] sm:$0xff]   ;;  %v4776_v1 = vld [vmem:[%s6558_s1 + $0x8] sm:$0xff]   ;;  %vm169_vm0 = vcmask 261120   ;;  %v5257_v15 = vmov 0.0  }
  0x4e   :  { %4754 = vmatprep.subr.bf16.mxu1 %v4775_v0  ;;  %4282 = vmatprep.subr.bf16.mxu0 %v4775_v0  ;;  %v139_v2 = vld [vmem:[%s6557_s0 + $0x20] sm:$0xff]  ;;  %v140_v3 = vld [vmem:[%s6557_s0 + $0x28] sm:$0xff]  ;;  %v141_v4 = vld [vmem:[%s6557_s0 + $0x30] sm:$0xff]  ;;  %vm5258_vm1 = vmmov 0   ;;  %s5259_s17 = smov 32   ;;  %s5260_s14 = smov 96  }
  0x4f   :  { %4756 = vmatpush3.bf16.msra.mxu1 %v4775_v0  ;;  %4283 = vmatpush3.bf16.msra.mxu0 %v4775_v0  ;;  %v145_v5 = vpack.c.bf16 %v140_v3, %v139_v2  ;;  %v142_v6 = vld [vmem:[%s6557_s0 + $0x38] sm:$0xff]  ;;  %v5415_v7 = vld [vmem:[%s6557_s0] sm:$0xff]  ;;  %v5420_v8 = vld [vmem:[%s6557_s0 + $0x8] sm:$0xff] }
  0x50   :  { %4755 = vmatprep.subr.bf16.mxu1 %v4776_v1  ;;  %4284 = vmatprep.subr.bf16.mxu0 %v4776_v1  ;;  %v143_v9 = vpack.c.bf16 %v5420_v8, %v5415_v7  ;;  %v5428_v10 = vld [vmem:[%s6557_s0 + $0x10] sm:$0xff]  ;;  %v138_v11 = vld [vmem:[%s6557_s0 + $0x18] sm:$0xff]  ;;  %v146_v12 = vpack.c.bf16 %v142_v6, %v141_v4  ;;  %v5437_v14 = vld [vmem:[%s6559_s2] sm:$0xff]  }
  0x51   :  { %4290 = vmatprep.mubr.msk.bf16.mxu1 %vm169_vm0, %v145_v5  ;;  %v144_v13 = vpack.c.bf16 %v138_v11, %v5428_v10  ;;  %v5444_v16 = vld [vmem:[%s6559_s2 + $0x8] sm:$0xff]   ;;  %v255_v17 = vld [vmem:[%s6566_s9] sm:$0xff]  ;;  %v5495_v53 = vld [vmem:[%s6559_s2 + $0x10] sm:$0xff]  }
  0x52   :  { %4286 = vmatprep.mubr.msk.bf16.mxu0 %vm169_vm0, %v143_v9  ;;  %v5458_v18 = vpack.c.bf16 %v255_v17, %v255_v17  ;;  %v3982_v19 = vld [vmem:[%s6560_s3] ss:$0 sm:$0xff]  ;;  %v258_v42 = vld [vmem:[#allocation10] sm:$0xff]  ;;  %v5501_v54 = vld [vmem:[%s6559_s2 + $0x18] sm:$0xff]  }
  0x53   :  { %4757 = vmatpush3.bf16.msra.mxu1 %v4776_v1  ;;  %4285 = vmatpush3.bf16.msra.mxu0 %v4776_v1  ;;  %v3989_v55 = vld [vmem:[%s6566_s9 + $0x8] sm:$0xff]  ;;  %v5509_v56 = vld [vmem:[%s6558_s1 + $0x10] sm:$0xff]   ;;  %v5516_v57 = vld [vmem:[%s6558_s1 + $0x18] sm:$0xff]  }
  0x54   :  { %4294 = vmatprep.subr.bf16.mxu1 %v5257_v15  ;;  %4310 = vmatprep.subr.bf16.mxu0 %v5257_v15  ;;  %v349_v58 = vpack.c.bf16 %v3989_v55, %v3989_v55  ;;  %v5520_v59 = vld [vmem:[#allocation4] sm:$0xff]   ;;  %v5527_v61 = vld [vmem:[#allocation4 + $0x8] sm:$0xff]   ;;  %v5534_v62 = vld [vmem:[#allocation4 + $0x10] sm:$0xff]  }
  0x55   :  { %v5540_v63 = vld [vmem:[#allocation4 + $0x18] sm:$0xff]   ;;  %v260_v3 = vld [vmem:[#allocation10 + $0x8] sm:$0xff] }
  0x56   :  { %4291 = vmatmul.mubr.msk.bf16.vlgmr.msra.gmra.mrb[0].mxu1 %vm169_vm0, %v146_v12  ;;  %4287 = vmatmul.mubr.msk.bf16.vlgmr.msra.gmra.mrb[0].mxu0 %vm169_vm0, %v144_v13 }
  0x57   :  { %4295 = vmatpush3.bf16.msra.mxu1 %v5437_v14  ;;  %4298 = vmatprep.mubr.msk.bf16.mxu1 %vm5258_vm1, %v5257_v15 }
  0x58   :  { %4296 = vmatprep.subr.bf16.mxu1 %v5257_v15  ;;  %4314 = vmatprep.mubr.msk.bf16.mxu0 %vm5258_vm1, %v5257_v15 }
  0x59   :  { %4311 = vmatpush3.bf16.msra.mxu0 %v5509_v56 }
  0x5a   :  { %4312 = vmatprep.subr.bf16.mxu0 %v5257_v15 }
  0x5b   :  { %4297 = vmatpush3.bf16.msra.mxu1 %v5444_v16 }
  0x5c   :  { %4302 = vmatprep.subr.bf16.mxu1 %v5257_v15 }
  0x5d   :  { %4313 = vmatpush3.bf16.msra.mxu0 %v5516_v57 }
  0x5e   :  { %4299 = vmatmul.mubr.msk.bf16.vlgmr.msra.gmra.mrb[4].mxu1 %vm169_vm0, %v5458_v18  ;;  %4326 = vmatprep.subr.bf16.mxu0 %v5257_v15 }
  0x5f   :  { %4306 = vmatprep.mubr.msk.bf16.mxu1 %vm5258_vm1, %v5257_v15  ;;  %4303 = vmatpush3.bf16.msra.mxu1 %v5495_v53 }
  0x60   :  { %4304 = vmatprep.subr.bf16.mxu1 %v5257_v15 }
  0x63   :  { %4305 = vmatpush3.bf16.msra.mxu1 %v5501_v54 }
  0x64   :  { %4318 = vmatprep.subr.bf16.mxu1 %v5257_v15 }
  0x66   :  { %4307 = vmatmul.mubr.msk.bf16.vlgmr.msra.gmra.mrb[8].mxu1 %vm169_vm0, %v349_v58 }
  0x67   :  { %4319 = vmatpush3.bf16.msra.mxu1 %v5520_v59  ;;  %4322 = vmatprep.mubr.msk.bf16.mxu1 %vm5258_vm1, %v5257_v15 }
  0x68   :  { %4320 = vmatprep.subr.bf16.mxu1 %v5257_v15 }
  0x6b   :  { %4321 = vmatpush3.bf16.msra.mxu1 %v5527_v61 }
  0x6c   :  { %4334 = vmatprep.subr.bf16.mxu1 %v5257_v15 }
  0x6e   :  { %4323 = vmatmul.mubr.msk.bf16.vlgmr.msra.gmra.mrb[12].mxu1 %vm169_vm0, %v5458_v18 }
  0x6f   :  { %4335 = vmatpush3.bf16.msra.mxu1 %v5534_v62  ;;  %4338 = vmatprep.mubr.msk.bf16.mxu1 %vm5258_vm1, %v5257_v15 }
  0x70   :  { %4336 = vmatprep.subr.bf16.mxu1 %v5257_v15 }
  0x73   :  { %4337 = vmatpush3.bf16.msra.mxu1 %v5540_v63 }
  0x74   :  { %4350 = vmatprep.subr.bf16.mxu1 %v5257_v15 }
  0x76   :  { %4339 = vmatmul.mubr.msk.bf16.vlgmr.msra.gmra.mrb[16].mxu1 %vm169_vm0, %v349_v58  ;;  %v5590_v58 = vld [vmem:[%s6561_s4] sm:$0xff]  }
  0x77   :  { %4351 = vmatpush3.bf16.msra.mxu1 %v5437_v14  ;;  %4354 = vmatprep.mubr.msk.bf16.mxu1 %vm5258_vm1, %v5257_v15 }
  0x78   :  { %4352 = vmatprep.subr.bf16.mxu1 %v5257_v15 }
  0x7b   :  { %4353 = vmatpush3.bf16.msra.mxu1 %v5444_v16 }
  0x7c   :  { %4366 = vmatprep.subr.bf16.mxu1 %v5257_v15 }
 0x129   :  { %v4292_v20 = vpop.f32.mrb[0].mxu1  ;;  %v4288_v21 = vpop.f32.mrb[0].mxu0 }
 0x12a   :  { %v5469_v22 = vadd.f32 %v4292_v20, %v3982_v19  ;;  %v232_v23 = vpop.f32.mrb[1].mxu1  ;;  %v5471_v24 = vadd.f32 %v4288_v21, %v3982_v19  ;;  %v216_v25 = vpop.f32.mrb[1].mxu0 }
 0x12b   :  { %v5473_v26 = vadd.f32 %v3982_v19, %v232_v23  ;;  %v4293_v27 = vpop.f32.mrb[2].mxu1  ;;  %v4289_v28 = vpop.f32.mrb[2].mxu0  ;;  %v217_v35 = vadd.f32 %v3982_v19, %v216_v25  ;;  %v5573_v25 = vld [vmem:[%s6560_s3 + $0x1] ss:$0 sm:$0xff] }
 0x12c   :  { %v5475_v29 = vadd.f32 %v4293_v27, %v3982_v19  ;;  %v235_v30 = vpop.f32.mrb[3].mxu1  ;;  %v5477_v31 = vadd.f32 %v4289_v28, %v3982_v19  ;;  %v219_v32 = vpop.f32.mrb[3].mxu0 }
 0x12d   :  { %v5479_v33 = vadd.f32 %v3982_v19, %v235_v30  ;;  %v5481_v34 = vadd.f32 %v3982_v19, %v219_v32 }
 0x131   :  { %v313_v36 = vpop.f32.mrb[4].mxu1 }
 0x132   :  { %v319_v37 = vadd.f32 %v313_v36, %v217_v35  ;;  %v4300_v38 = vpop.f32.mrb[5].mxu1 }
 0x133   :  { %v316_v39 = vpop.f32.mrb[6].mxu1 }
 0x134   :  { %v4301_v40 = vpop.f32.mrb[7].mxu1  ;;  %4793 = vtanh.f32 %v319_v37  ;;  %v3993_v43 = vmul.f32 -1.442695, %v319_v37 }
 0x136   :  { %4795 = vpow2.f32 %v3993_v43 }
 0x139   :  { %v399_v4 = vpop.f32.mrb[8].mxu1 }
 0x13a   :  { %v4308_v5 = vpop.f32.mrb[9].mxu1 }
 0x13b   :  { %v402_v6 = vpop.f32.mrb[10].mxu1 }
 0x13c   :  { %v4309_v9 = vpop.f32.mrb[11].mxu1 }
 0x13e   :  { %v4794_v41 = vpop.eup %4793 }
 0x13f   :  { %333 = vrot.lane.b32.xlu0 %v4794_v41, %s5251_s6 }
 0x140   :  { %v4796_v44 = vpop.eup %4795 }
 0x141   :  { %v323_v45 = vadd.f32 1.0, %v4796_v44  ;;  %v5556_v11 = vpop.f32.mrb[12].mxu1 }
 0x142   :  { %v4324_v12 = vpop.f32.mrb[13].mxu1 }
 0x143   :  { %328 = vrot.lane.b32.xlu0 %v258_v42, %s5259_s17  ;;  %4797 = vrcp.f32 %v323_v45  ;;  %v553_v13 = vpop.f32.mrb[14].mxu1 }
 0x144   :  { %v4325_v17 = vpop.f32.mrb[15].mxu1 }
 0x149   :  { %v5558_v18 = vpop.f32.mrb[16].mxu1 }
 0x14a   :  { %v4340_v19 = vpop.f32.mrb[17].mxu1 }
 0x14b   :  { %v695_v20 = vpop.f32.mrb[18].mxu1 }
 0x14c   :  { %v4341_v21 = vpop.f32.mrb[19].mxu1 }
 0x14d   :  { %v4798_v46 = vpop.eup %4797 }
 0x1b1   :  { %v334_v47 = vpop.permute.xlu0 %333 }
 0x1b2   :  { %v336_v48 = vmul.f32 %v4798_v46, %v334_v47 }
 0x1b4   :  { %338 = vrot.lane.b32.xlu1 %v336_v48, %s5259_s17 }
 0x1b5   :  { %v5486_v49 = vpop.permute.xlu0 %328 }
 0x1b6   :  { %v331_v50 = vmul.f32 %v4798_v46, %v5486_v49 }
 0x226   :  { %v339_v51 = vpop.permute.xlu1 %338 }
 0x227   :  { %v5489_v52 = vadd.f32 %v339_v51, %v331_v50 }
 0x229   :  { %4799 = vtanh.f32 %v5489_v52 }
 0x233   :  { %v4800_v60 = vpop.eup %4799 }
 0x234   :  { %344 = vrot.lane.b32.xlu1 %v4800_v60, %s5251_s6 }
 0x2a6   :  { %v345_v0 = vpop.permute.xlu1 %344 }
 0x2a7   :  { %v347_v1 = vmul.f32 %v4798_v46, %v345_v0 }
 0x2a9   :  { %v348_v2 = vpack.c.bf16 %v347_v1, %v347_v1 }
 0x2ab   :  { %406 = vrot.lane.b32.xlu0 %v348_v2, %s5259_s17 }
 0x2af   :  { %478 = vrot.lane.b32.xlu0 %v260_v3, %s5259_s17 }
 0x31d   :  { %v407_v23 = vpop.permute.xlu0 %406 }
 0x31e   :  { %4315 = vmatmul.mubr.msk.bf16.vlgmr.msra.gmra.mrb[4].mxu0 %vm169_vm0, %v407_v23  ;;  %4355 = vmatmul.mubr.msk.bf16.vlgmr.msra.gmra.mrb[20].mxu1 %vm169_vm0, %v407_v23 }
 0x31f   :  { %4330 = vmatprep.mubr.msk.bf16.mxu0 %vm5258_vm1, %v5257_v15  ;;  %4367 = vmatpush3.bf16.msra.mxu1 %v5509_v56 }
 0x320   :  { %4368 = vmatprep.subr.bf16.mxu1 %v5257_v15  ;;  %4370 = vmatprep.mubr.msk.bf16.mxu1 %vm5258_vm1, %v5257_v15 }
 0x321   :  { %v5581_v48 = vpop.permute.xlu0 %478  ;;  %4327 = vmatpush3.bf16.msra.mxu0 %v5590_v58 }
 0x322   :  { %4328 = vmatprep.subr.bf16.mxu0 %v5257_v15 }
 0x323   :  { %4369 = vmatpush3.bf16.msra.mxu1 %v5516_v57 }
 0x324   :  { %4382 = vmatprep.subr.bf16.mxu1 %v5257_v15 }
 0x3f1   :  { %v457_v27 = vpop.f32.mrb[4].mxu0  ;;  %v828_v28 = vpop.f32.mrb[20].mxu1 }
 0x3f2   :  { %v458_v30 = vadd.f32 %v457_v27, %v399_v4  ;;  %v834_v32 = vadd.f32 %v828_v28, %v5481_v34  ;;  %v4316_v35 = vpop.f32.mrb[5].mxu0  ;;  %v4356_v36 = vpop.f32.mrb[21].mxu1 }
 0x3f3   :  { %v460_v37 = vpop.f32.mrb[6].mxu0  ;;  %v831_v38 = vpop.f32.mrb[22].mxu1 }
 0x3f4   :  { %v469_v39 = vadd.f32 %v5573_v25, %v458_v30  ;;  %v4317_v40 = vpop.f32.mrb[7].mxu0  ;;  %v4357_v41 = vpop.f32.mrb[23].mxu1  ;;  %v4019_v6 = vmul.f32 -1.442695, %v834_v32 }
 0x3f6   :  { %4801 = vtanh.f32 %v469_v39  ;;  %v4001_v43 = vmul.f32 -1.442695, %v469_v39 }
 0x3f8   :  { %4803 = vpow2.f32 %v4001_v43 }
 0x400   :  { %v4802_v42 = vpop.eup %4801 }
 0x401   :  { %483 = vrot.lane.b32.xlu1 %v4802_v42, %s5251_s6 }
 0x402   :  { %v4804_v44 = vpop.eup %4803 }
 0x403   :  { %v473_v45 = vadd.f32 1.0, %v4804_v44 }
 0x405   :  { %4805 = vrcp.f32 %v473_v45 }
 0x40f   :  { %v4806_v46 = vpop.eup %4805 }
 0x410   :  { %v481_v50 = vmul.f32 %v4806_v46, %v5581_v48 }
 0x473   :  { %v484_v47 = vpop.permute.xlu1 %483 }
 0x474   :  { %v486_v34 = vmul.f32 %v4806_v46, %v484_v47 }
 0x476   :  { %488 = vrot.lane.b32.xlu1 %v486_v34, %s5259_s17 }
 0x47a   :  { %499 = vrot.lane.b32.xlu1 %v5415_v7, %s5260_s14  ;;  %v5596_v7 = vld [vmem:[%s6561_s4 + $0x8] sm:$0xff]  }
 0x47b   :  { %4329 = vmatpush3.bf16.msra.mxu0 %v5596_v7 }
 0x47c   :  { %4342 = vmatprep.subr.bf16.mxu0 %v5257_v15 }
 0x4e8   :  { %v489_v51 = vpop.permute.xlu1 %488 }
 0x4e9   :  { %v5584_v55 = vadd.f32 %v489_v51, %v481_v50  ;;  %v5627_v50 = vld [vmem:[%s6561_s4 + $0x10] sm:$0xff]   ;;  %v5633_v51 = vld [vmem:[%s6561_s4 + $0x18] sm:$0xff]  }
 0x4eb   :  { %4807 = vtanh.f32 %v5584_v55 }
 0x4ec   :  { %4809 = vtanh.f32 %v834_v32  ;;  %v500_v1 = vpop.permute.xlu1 %499  ;;  %v5614_v32 = vld [vmem:[#allocation7] ss:$0 sm:$0xff] }
 0x4ed   :  { %4811 = vpow2.f32 %v4019_v6 }
 0x4f5   :  { %v4808_v60 = vpop.eup %4807 }
 0x4f6   :  { %494 = vrot.lane.b32.xlu0 %v4808_v60, %s5251_s6  ;;  %v4810_v5 = vpop.eup %4809 }
 0x4f7   :  { %v4812_v9 = vpop.eup %4811 }
 0x4f8   :  { %v838_v12 = vadd.f32 1.0, %v4812_v9 }
 0x4fa   :  { %4813 = vrcp.f32 %v838_v12  ;;  %v5672_v12 = vld [vmem:[#allocation7 + $0x1] ss:$0 sm:$0xff] }
 0x504   :  { %v4814_v17 = vpop.eup %4813 }
 0x505   :  { %v842_v21 = vmul.f32 %v4814_v17, %v5489_v52 }
 0x568   :  { %v495_v0 = vpop.permute.xlu0 %494 }
 0x569   :  { %v497_v2 = vmul.f32 %v4806_v46, %v495_v0 }
 0x56b   :  { %v502_v3 = vadd.f32 %v500_v1, %v497_v2  ;;  %v860_v30 = vpack.c.bf16 %v497_v2, %v497_v2 }
 0x56d   :  { %v503_v4 = vpack.c.bf16 %v502_v3, %v502_v3 }
 0x56f   :  { %557 = vrot.lane.b32.xlu0 %v503_v4, %s5259_s17 }
 0x573   :  { %844 = vrot.lane.b32.xlu0 %v4810_v5, %s5251_s6 }
 0x5e1   :  { %v558_v13 = vpop.permute.xlu0 %557 }
 0x5e2   :  { %4331 = vmatmul.mubr.msk.bf16.vlgmr.msra.gmra.mrb[8].mxu0 %vm169_vm0, %v558_v13 }
 0x5e3   :  { %4346 = vmatprep.mubr.msk.bf16.mxu0 %vm5258_vm1, %v5257_v15  ;;  %4343 = vmatpush3.bf16.msra.mxu0 %v5627_v50 }
 0x5e4   :  { %4344 = vmatprep.subr.bf16.mxu0 %v5257_v15 }
 0x5e5   :  { %v845_v19 = vpop.permute.xlu0 %844 }
 0x5e6   :  { %v847_v20 = vmul.f32 %v4814_v17, %v845_v19 }
 0x5e7   :  { %4345 = vmatpush3.bf16.msra.mxu0 %v5633_v51 }
 0x5e8   :  { %849 = vrot.lane.b32.xlu0 %v847_v20, %s5259_s17  ;;  %4358 = vmatprep.subr.bf16.mxu0 %v5257_v15 }
 0x65a   :  { %v850_v23 = vpop.permute.xlu0 %849 }
 0x65b   :  { %v5609_v27 = vadd.f32 %v850_v23, %v842_v21 }
 0x65d   :  { %4815 = vtanh.f32 %v5609_v27 }
 0x667   :  { %v4816_v28 = vpop.eup %4815 }
 0x668   :  { %855 = vrot.lane.b32.xlu0 %v4816_v28, %s5251_s6 }
 0x66c   :  { %862 = vrot.lane.b32.xlu0 %v860_v30, %s5259_s17 }
 0x6b5   :  { %v608_v35 = vpop.f32.mrb[8].mxu0 }
 0x6b6   :  { %v609_v36 = vadd.f32 %v608_v35, %v5556_v11  ;;  %v4332_v37 = vpop.f32.mrb[9].mxu0 }
 0x6b7   :  { %v611_v38 = vpop.f32.mrb[10].mxu0 }
 0x6b8   :  { %v620_v52 = vadd.f32 %v5614_v32, %v609_v36  ;;  %v4333_v39 = vpop.f32.mrb[11].mxu0 }
 0x6ba   :  { %4817 = vtanh.f32 %v620_v52  ;;  %v4009_v41 = vmul.f32 -1.442695, %v620_v52 }
 0x6bc   :  { %4819 = vpow2.f32 %v4009_v41 }
 0x6c4   :  { %v4818_v40 = vpop.eup %4817 }
 0x6c5   :  { %630 = vrot.lane.b32.xlu1 %v4818_v40, %s5251_s6 }
 0x6c6   :  { %v4820_v42 = vpop.eup %4819 }
 0x6c7   :  { %v624_v43 = vadd.f32 1.0, %v4820_v42 }
 0x6c9   :  { %4821 = vrcp.f32 %v624_v43 }
 0x6d3   :  { %v4822_v44 = vpop.eup %4821 }
 0x6d4   :  { %v628_v11 = vmul.f32 %v4822_v44, %v5486_v49 }
 0x6da   :  { %v856_v60 = vpop.permute.xlu0 %855 }
 0x6db   :  { %v858_v2 = vmul.f32 %v4814_v17, %v856_v60 }
 0x6dd   :  { %v859_v4 = vpack.c.bf16 %v858_v2, %v858_v2 }
 0x6de   :  { %v863_v9 = vpop.permute.xlu0 %862 }
 0x737   :  { %v631_v45 = vpop.permute.xlu1 %630 }
 0x738   :  { %v633_v46 = vmul.f32 %v4822_v44, %v631_v45 }
 0x73a   :  { %635 = vrot.lane.b32.xlu1 %v633_v46, %s5259_s17 }
 0x7ac   :  { %v636_v47 = vpop.permute.xlu1 %635 }
 0x7ad   :  { %v5621_v34 = vadd.f32 %v636_v47, %v628_v11 }
 0x7af   :  { %4823 = vtanh.f32 %v5621_v34 }
 0x7b9   :  { %v4824_v49 = vpop.eup %4823 }
 0x7ba   :  { %641 = vrot.lane.b32.xlu1 %v4824_v49, %s5251_s6 }
 0x82c   :  { %v642_v0 = vpop.permute.xlu1 %641 }
 0x82d   :  { %v644_v1 = vmul.f32 %v4822_v44, %v642_v0 }
 0x82f   :  { %v645_v3 = vpack.c.bf16 %v644_v1, %v644_v1 }
 0x831   :  { %699 = vrot.lane.b32.xlu1 %v645_v3, %s5259_s17 }
 0x835   :  { %908 = vrot.lane.b32.xlu1 %v859_v4, %s5259_s17 }
 0x8a3   :  { %v700_v5 = vpop.permute.xlu1 %699 }
 0x8a4   :  { %4347 = vmatmul.mubr.msk.bf16.vlgmr.msra.gmra.mrb[12].mxu0 %vm169_vm0, %v700_v5 }
 0x8a5   :  { %4359 = vmatpush3.bf16.msra.mxu0 %v5495_v53  ;;  %4362 = vmatprep.mubr.msk.bf16.mxu0 %vm5258_vm1, %v5257_v15 }
 0x8a6   :  { %4360 = vmatprep.subr.bf16.mxu0 %v5257_v15 }
 0x8a7   :  { %v5646_v6 = vpop.permute.xlu1 %908 }
 0x8a8   :  { %4371 = vmatmul.mubr.msk.bf16.vlgmr.msra.gmra.mrb[24].mxu1 %vm169_vm0, %v5646_v6 }
 0x8a9   :  { %4361 = vmatpush3.bf16.msra.mxu0 %v5501_v54  ;;  %4383 = vmatpush3.bf16.msra.mxu1 %v5590_v58 }
 0x8aa   :  { %4374 = vmatprep.subr.bf16.mxu0 %v5257_v15  ;;  %4384 = vmatprep.subr.bf16.mxu1 %v5257_v15 }
 0x8ab   :  { %4386 = vmatprep.mubr.msk.bf16.mxu1 %vm5258_vm1, %v5257_v15 }
 0x8ac   :  { %4363 = vmatmul.mubr.msk.bf16.vlgmr.msra.gmra.mrb[16].mxu0 %vm169_vm0, %v863_v9 }
 0x8ad   :  { %4375 = vmatpush3.bf16.msra.mxu0 %v5520_v59  ;;  %4378 = vmatprep.mubr.msk.bf16.mxu0 %vm5258_vm1, %v5257_v15 }
 0x8ae   :  { %4376 = vmatprep.subr.bf16.mxu0 %v5257_v15  ;;  %4385 = vmatpush3.bf16.msra.mxu1 %v5596_v7 }
 0x8af   :  { %4398 = vmatprep.subr.bf16.mxu1 %v5257_v15 }
 0x8b1   :  { %4377 = vmatpush3.bf16.msra.mxu0 %v5527_v61 }
 0x8b2   :  { %4390 = vmatprep.subr.bf16.mxu0 %v5257_v15 }
 0x8b4   :  { %4379 = vmatmul.mubr.msk.bf16.vlgmr.msra.gmra.mrb[20].mxu0 %vm169_vm0, %v700_v5 }
 0x8b5   :  { %4391 = vmatpush3.bf16.msra.mxu0 %v5534_v62  ;;  %4394 = vmatprep.mubr.msk.bf16.mxu0 %vm5258_vm1, %v5257_v15 }
 0x8b6   :  { %4392 = vmatprep.subr.bf16.mxu0 %v5257_v15 }
 0x8b9   :  { %4393 = vmatpush3.bf16.msra.mxu0 %v5540_v63 }
 0x8ba   :  { %4406 = vmatprep.subr.bf16.mxu0 %v5257_v15 }
 0x977   :  { %v750_v13 = vpop.f32.mrb[12].mxu0 }
 0x978   :  { %v751_v17 = vadd.f32 %v750_v13, %v5558_v18  ;;  %v4348_v19 = vpop.f32.mrb[13].mxu0 }
 0x979   :  { %v753_v20 = vpop.f32.mrb[14].mxu0 }
 0x97a   :  { %v762_v21 = vadd.f32 %v5672_v12, %v751_v17  ;;  %v4349_v23 = vpop.f32.mrb[15].mxu0 }
 0x97b   :  { %v947_v28 = vpop.f32.mrb[24].mxu1 }
 0x97c   :  { %4825 = vtanh.f32 %v762_v21  ;;  %v4372_v30 = vpop.f32.mrb[25].mxu1  ;;  %v4017_v11 = vmul.f32 -1.442695, %v762_v21 }
 0x97d   :  { %v950_v35 = vpop.f32.mrb[26].mxu1 }
 0x97e   :  { %v4373_v36 = vpop.f32.mrb[27].mxu1 }
 0x97f   :  { %v901_v37 = vpop.f32.mrb[16].mxu0 }
 0x980   :  { %v948_v38 = vadd.f32 %v947_v28, %v901_v37  ;;  %v4364_v52 = vpop.f32.mrb[17].mxu0 }
 0x981   :  { %v904_v39 = vpop.f32.mrb[18].mxu0 }
 0x982   :  { %v953_v40 = vadd.f32 %v5573_v25, %v948_v38  ;;  %v4365_v41 = vpop.f32.mrb[19].mxu0 }
 0x984   :  { %4827 = vtanh.f32 %v953_v40  ;;  %v4022_v47 = vmul.f32 -1.442695, %v953_v40 }
 0x985   :  { %4829 = vpow2.f32 %v4017_v11 }
 0x986   :  { %v4826_v42 = vpop.eup %4825  ;;  %4831 = vpow2.f32 %v4022_v47 }
 0x987   :  { %772 = vrot.lane.b32.xlu1 %v4826_v42, %s5251_s6  ;;  %v5678_v18 = vpop.f32.mrb[20].mxu0 }
 0x988   :  { %v4380_v43 = vpop.f32.mrb[21].mxu0 }
 0x989   :  { %v1021_v44 = vpop.f32.mrb[22].mxu0 }
 0x98a   :  { %v4381_v45 = vpop.f32.mrb[23].mxu0 }
 0x98e   :  { %v4828_v46 = vpop.eup %4827 }
 0x98f   :  { %963 = vrot.lane.b32.xlu0 %v4828_v46, %s5251_s6  ;;  %v4830_v49 = vpop.eup %4829 }
 0x990   :  { %v766_v60 = vadd.f32 1.0, %v4830_v49  ;;  %v4832_v0 = vpop.eup %4831 }
 0x991   :  { %v957_v1 = vadd.f32 1.0, %v4832_v0 }
 0x992   :  { %4833 = vrcp.f32 %v766_v60 }
 0x993   :  { %4835 = vrcp.f32 %v957_v1 }
 0x99c   :  { %v4834_v2 = vpop.eup %4833 }
 0x99d   :  { %v4836_v5 = vpop.eup %4835  ;;  %v770_v21 = vmul.f32 %v4834_v2, %v5581_v48 }
 0x99e   :  { %v961_v17 = vmul.f32 %v4836_v5, %v5584_v55 }
 0x9f9   :  { %v773_v3 = vpop.permute.xlu1 %772 }
 0x9fa   :  { %v775_v4 = vmul.f32 %v4834_v2, %v773_v3 }
 0x9fc   :  { %777 = vrot.lane.b32.xlu1 %v775_v4, %s5259_s17 }
 0xa00   :  { %979 = vrot.lane.b32.xlu1 %v5420_v8, %s5260_s14 }
 0xa01   :  { %v964_v9 = vpop.permute.xlu0 %963 }
 0xa02   :  { %v966_v13 = vmul.f32 %v4836_v5, %v964_v9 }
 0xa04   :  { %968 = vrot.lane.b32.xlu0 %v966_v13, %s5259_s17 }
 0xa6e   :  { %v778_v19 = vpop.permute.xlu1 %777 }
 0xa6f   :  { %v5689_v28 = vadd.f32 %v778_v19, %v770_v21 }
 0xa72   :  { %v980_v55 = vpop.permute.xlu1 %979 }
 0xa76   :  { %v969_v20 = vpop.permute.xlu0 %968 }
 0xa77   :  { %v5687_v23 = vadd.f32 %v969_v20, %v961_v17 }
 0xa79   :  { %4837 = vtanh.f32 %v5687_v23 }
 0xa7a   :  { %4839 = vtanh.f32 %v5689_v28 }
 0xa83   :  { %v4838_v8 = vpop.eup %4837 }
 0xa84   :  { %974 = vrot.lane.b32.xlu0 %v4838_v8, %s5251_s6  ;;  %v4840_v30 = vpop.eup %4839 }
 0xa88   :  { %783 = vrot.lane.b32.xlu0 %v4840_v30, %s5251_s6 }
 0xaf6   :  { %v975_v35 = vpop.permute.xlu0 %974 }
 0xaf7   :  { %v5695_v36 = vmul.f32 %v4836_v5, %v975_v35 }
 0xaf9   :  { %v982_v48 = vadd.f32 %v980_v55, %v5695_v36 }
 0xafa   :  { %v784_v37 = vpop.permute.xlu0 %783 }
 0xafb   :  { %v983_v38 = vpack.c.bf16 %v982_v48, %v982_v48  ;;  %v5698_v52 = vmul.f32 %v4834_v2, %v784_v37 }
 0xafd   :  { %v1096_v39 = vpack.c.bf16 %v5698_v52, %v5698_v52  ;;  %1025 = vrot.lane.b32.xlu1 %v983_v38, %s5259_s17 }
 0xaff   :  { %1098 = vrot.lane.b32.xlu0 %v1096_v39, %s5259_s17 }
 0xb6f   :  { %v1026_v40 = vpop.permute.xlu1 %1025 }
 0xb70   :  { %4387 = vmatmul.mubr.msk.bf16.vlgmr.msra.gmra.mrb[28].mxu1 %vm169_vm0, %v1026_v40 }
 0xb71   :  { %v1099_v41 = vpop.permute.xlu0 %1098  ;;  %4399 = vmatpush3.bf16.msra.mxu1 %v5627_v50  ;;  %4402 = vmatprep.mubr.msk.bf16.mxu1 %vm5258_vm1, %v5257_v15 }
 0xb72   :  { %4395 = vmatmul.mubr.msk.bf16.vlgmr.msra.gmra.mrb[24].mxu0 %vm169_vm0, %v1099_v41  ;;  %4400 = vmatprep.subr.bf16.mxu1 %v5257_v15 }
 0xb73   :  { %4407 = vmatpush3.bf16.msra.mxu0 %v5437_v14  ;;  %4410 = vmatprep.mubr.msk.bf16.mxu0 %vm5258_vm1, %v5257_v15 }
 0xb74   :  { %4408 = vmatprep.subr.bf16.mxu0 %v5257_v15 }
 0xb75   :  { %4401 = vmatpush3.bf16.msra.mxu1 %v5633_v51 }
 0xb76   :  { %4414 = vmatprep.subr.bf16.mxu1 %v5257_v15 }
 0xb77   :  { %4409 = vmatpush3.bf16.msra.mxu0 %v5444_v16 }
 0xb78   :  { %4422 = vmatprep.subr.bf16.mxu0 %v5257_v15 }
 0xb7a   :  { %4411 = vmatmul.mubr.msk.bf16.vlgmr.msra.gmra.mrb[28].mxu0 %vm169_vm0, %v5646_v6 }
 0xb7b   :  { %4423 = vmatpush3.bf16.msra.mxu0 %v5509_v56  ;;  %4426 = vmatprep.mubr.msk.bf16.mxu0 %vm5258_vm1, %v5257_v15 }
 0xb7c   :  { %4424 = vmatprep.subr.bf16.mxu0 %v5257_v15 }
 0xb7f   :  { %4425 = vmatpush3.bf16.msra.mxu0 %v5516_v57 }
 0xb80   :  { %4438 = vmatprep.subr.bf16.mxu0 %v5257_v15 }
 0xc43   :  { %v1064_v14 = vpop.f32.mrb[28].mxu1 }
 0xc44   :  { %v1065_v42 = vadd.f32 %v1064_v14, %v5678_v18  ;;  %v4388_v16 = vpop.f32.mrb[29].mxu1 }
 0xc45   :  { %v1067_v43 = vpop.f32.mrb[30].mxu1  ;;  %v5727_v44 = vpop.f32.mrb[24].mxu0 }
 0xc46   :  { %v1070_v6 = vadd.f32 %v5614_v32, %v1065_v42  ;;  %v4389_v45 = vpop.f32.mrb[31].mxu1  ;;  %v4396_v46 = vpop.f32.mrb[25].mxu0 }
 0xc47   :  { %v1140_v11 = vpop.f32.mrb[26].mxu0 }
 0xc48   :  { %4841 = vtanh.f32 %v1070_v6  ;;  %v4397_v47 = vpop.f32.mrb[27].mxu0  ;;  %v4025_v4 = vmul.f32 -1.442695, %v1070_v6 }
 0xc4d   :  { %v1255_v49 = vpop.f32.mrb[28].mxu0 }
 0xc4e   :  { %v1261_v60 = vadd.f32 %v1255_v49, %v5471_v24  ;;  %v4412_v0 = vpop.f32.mrb[29].mxu0 }
 0xc4f   :  { %v1258_v1 = vpop.f32.mrb[30].mxu0 }
 0xc50   :  { %4843 = vtanh.f32 %v1261_v60  ;;  %v4413_v2 = vpop.f32.mrb[31].mxu0  ;;  %v4030_v5 = vmul.f32 -1.442695, %v1261_v60 }
 0xc51   :  { %4845 = vpow2.f32 %v4025_v4 }
 0xc52   :  { %v4842_v3 = vpop.eup %4841  ;;  %4847 = vpow2.f32 %v4030_v5 }
 0xc53   :  { %1080 = vrot.lane.b32.xlu1 %v4842_v3, %s5251_s6 }
 0xc5a   :  { %v4844_v18 = vpop.eup %4843 }
 0xc5b   :  { %1271 = vrot.lane.b32.xlu0 %v4844_v18, %s5251_s6  ;;  %v4846_v9 = vpop.eup %4845 }
 0xc5c   :  { %v1074_v13 = vadd.f32 1.0, %v4846_v9  ;;  %v4848_v17 = vpop.eup %4847 }
 0xc5d   :  { %v1265_v19 = vadd.f32 1.0, %v4848_v17 }
 0xc5e   :  { %4849 = vrcp.f32 %v1074_v13 }
 0xc5f   :  { %4851 = vrcp.f32 %v1265_v19 }
 0xc68   :  { %v4850_v24 = vpop.eup %4849 }
 0xc69   :  { %v4852_v8 = vpop.eup %4851  ;;  %v1078_v55 = vmul.f32 %v4850_v24, %v5621_v34  ;;  %v1287_v34 = vpack.c.bf16 %v5695_v36, %v5695_v36 }
 0xc6a   :  { %v1269_v38 = vmul.f32 %v4852_v8, %v5609_v27 }
 0xcc5   :  { %v1081_v20 = vpop.permute.xlu1 %1080 }
 0xcc6   :  { %v1083_v21 = vmul.f32 %v4850_v24, %v1081_v20 }
 0xcc8   :  { %1085 = vrot.lane.b32.xlu1 %v1083_v21, %s5259_s17 }
 0xccd   :  { %v1272_v30 = vpop.permute.xlu0 %1271 }
 0xcce   :  { %v1274_v35 = vmul.f32 %v4852_v8, %v1272_v30 }
 0xcd0   :  { %1276 = vrot.lane.b32.xlu0 %v1274_v35, %s5259_s17 }
 0xd3a   :  { %v1086_v48 = vpop.permute.xlu1 %1085 }
 0xd3b   :  { %v5736_v37 = vadd.f32 %v1086_v48, %v1078_v55 }
 0xd3d   :  { %4853 = vtanh.f32 %v5736_v37 }
 0xd42   :  { %v1277_v39 = vpop.permute.xlu0 %1276 }
 0xd43   :  { %v5740_v40 = vadd.f32 %v1277_v39, %v1269_v38 }
 0xd45   :  { %4855 = vtanh.f32 %v5740_v40 }
 0xd47   :  { %v4854_v41 = vpop.eup %4853 }
 0xd48   :  { %1091 = vrot.lane.b32.xlu1 %v4854_v41, %s5251_s6 }
 0xd4f   :  { %v4856_v14 = vpop.eup %4855 }
 0xd50   :  { %1282 = vrot.lane.b32.xlu0 %v4856_v14, %s5251_s6 }
 0xd54   :  { %1289 = vrot.lane.b32.xlu0 %v1287_v34, %s5259_s17 }
 0xdba   :  { %v1092_v42 = vpop.permute.xlu1 %1091 }
 0xdbb   :  { %v1094_v16 = vmul.f32 %v4850_v24, %v1092_v42 }
 0xdbd   :  { %v1095_v43 = vpack.c.bf16 %v1094_v16, %v1094_v16 }
 0xdbf   :  { %1144 = vrot.lane.b32.xlu1 %v1095_v43, %s5259_s17 }
 0xdc2   :  { %v1283_v27 = vpop.permute.xlu0 %1282 }
 0xdc3   :  { %v1285_v6 = vmul.f32 %v4852_v8, %v1283_v27 }
 0xdc5   :  { %v1286_v45 = vpack.c.bf16 %v1285_v6, %v1285_v6 }
 0xdc6   :  { %v1290_v36 = vpop.permute.xlu0 %1289 }
 0xdc7   :  { %1335 = vrot.lane.b32.xlu1 %v1286_v45, %s5259_s17 }
 0xe31   :  { %v1145_v46 = vpop.permute.xlu1 %1144 }
 0xe32   :  { %4403 = vmatmul.mubr.msk.bf16.vlgmr.msra.gmra.mrb[32].mxu1 %vm169_vm0, %v1145_v46 }
 0xe33   :  { %4415 = vmatpush3.bf16.msra.mxu1 %v5495_v53  ;;  %4418 = vmatprep.mubr.msk.bf16.mxu1 %vm5258_vm1, %v5257_v15 }
 0xe34   :  { %4416 = vmatprep.subr.bf16.mxu1 %v5257_v15 }
 0xe37   :  { %4417 = vmatpush3.bf16.msra.mxu1 %v5501_v54 }
 0xe38   :  { %4430 = vmatprep.subr.bf16.mxu1 %v5257_v15 }
 0xe39   :  { %v5757_v11 = vpop.permute.xlu1 %1335 }
 0xe3a   :  { %4419 = vmatmul.mubr.msk.bf16.vlgmr.msra.gmra.mrb[36].mxu1 %vm169_vm0, %v1290_v36  ;;  %4427 = vmatmul.mubr.msk.bf16.vlgmr.msra.gmra.mrb[32].mxu0 %vm169_vm0, %v5757_v11 }
 0xe3b   :  { %4431 = vmatpush3.bf16.msra.mxu1 %v5520_v59  ;;  %4434 = vmatprep.mubr.msk.bf16.mxu1 %vm5258_vm1, %v5257_v15 }
 0xe3c   :  { %4432 = vmatprep.subr.bf16.mxu1 %v5257_v15  ;;  %4439 = vmatpush3.bf16.msra.mxu0 %v5590_v58 }
 0xe3d   :  { %4440 = vmatprep.subr.bf16.mxu0 %v5257_v15  ;;  %4442 = vmatprep.mubr.msk.bf16.mxu0 %vm5258_vm1, %v5257_v15 }
 0xe3f   :  { %4433 = vmatpush3.bf16.msra.mxu1 %v5527_v61 }
 0xe40   :  { %4446 = vmatprep.subr.bf16.mxu1 %v5257_v15  ;;  %4441 = vmatpush3.bf16.msra.mxu0 %v5596_v7 }
 0xe41   :  { %4454 = vmatprep.subr.bf16.mxu0 %v5257_v15 }
 0xe42   :  { %4435 = vmatmul.mubr.msk.bf16.vlgmr.msra.gmra.mrb[40].mxu1 %vm169_vm0, %v1145_v46 }
 0xe43   :  { %4447 = vmatpush3.bf16.msra.mxu1 %v5534_v62  ;;  %4450 = vmatprep.mubr.msk.bf16.mxu1 %vm5258_vm1, %v5257_v15 }
 0xe44   :  { %4448 = vmatprep.subr.bf16.mxu1 %v5257_v15 }
 0xe47   :  { %4449 = vmatpush3.bf16.msra.mxu1 %v5540_v63 }
 0xe48   :  { %4462 = vmatprep.subr.bf16.mxu1 %v5257_v15 }
 0xf05   :  { %v1183_v53 = vpop.f32.mrb[32].mxu1 }
 0xf06   :  { %v1184_v54 = vadd.f32 %v1183_v53, %v5727_v44  ;;  %v4404_v59 = vpop.f32.mrb[33].mxu1 }
 0xf07   :  { %v1186_v61 = vpop.f32.mrb[34].mxu1 }
 0xf08   :  { %v1189_v47 = vadd.f32 %v5672_v12, %v1184_v54  ;;  %v4405_v49 = vpop.f32.mrb[35].mxu1 }
 0xf0a   :  { %4857 = vtanh.f32 %v1189_v47  ;;  %v4028_v20 = vmul.f32 -1.442695, %v1189_v47 }
 0xf0d   :  { %v1328_v60 = vpop.f32.mrb[36].mxu1  ;;  %v1374_v62 = vpop.f32.mrb[32].mxu0 }
 0xf0e   :  { %v1375_v0 = vadd.f32 %v1374_v62, %v1328_v60  ;;  %v4420_v1 = vpop.f32.mrb[37].mxu1  ;;  %v4428_v2 = vpop.f32.mrb[33].mxu0  ;;  %v5820_v62 = vld [vmem:[%s6559_s2] sm:$0xff]  }
 0xf0f   :  { %v1331_v3 = vpop.f32.mrb[38].mxu1  ;;  %v1377_v18 = vpop.f32.mrb[34].mxu0 }
 0xf10   :  { %v1380_v63 = vadd.f32 %v5573_v25, %v1375_v0  ;;  %v4421_v4 = vpop.f32.mrb[39].mxu1  ;;  %v4429_v5 = vpop.f32.mrb[35].mxu0  ;;  %v5831_v0 = vld [vmem:[%s6559_s2 + $0x8] sm:$0xff]  }
 0xf12   :  { %4859 = vtanh.f32 %v1380_v63  ;;  %v4033_v21 = vmul.f32 -1.442695, %v1380_v63 }
 0xf13   :  { %4861 = vpow2.f32 %v4028_v20 }
 0xf14   :  { %v4858_v9 = vpop.eup %4857  ;;  %4863 = vpow2.f32 %v4033_v21 }
 0xf15   :  { %1199 = vrot.lane.b32.xlu1 %v4858_v9, %s5251_s6  ;;  %v5785_v44 = vpop.f32.mrb[40].mxu1 }
 0xf16   :  { %v4436_v13 = vpop.f32.mrb[41].mxu1 }
 0xf17   :  { %v1448_v17 = vpop.f32.mrb[42].mxu1 }
 0xf18   :  { %v4437_v19 = vpop.f32.mrb[43].mxu1 }
 0xf1c   :  { %v4860_v24 = vpop.eup %4859 }
 0xf1d   :  { %1390 = vrot.lane.b32.xlu0 %v4860_v24, %s5251_s6  ;;  %v4862_v8 = vpop.eup %4861 }
 0xf1e   :  { %v1193_v30 = vadd.f32 1.0, %v4862_v8  ;;  %v4864_v35 = vpop.eup %4863 }
 0xf1f   :  { %v1384_v55 = vadd.f32 1.0, %v4864_v35 }
 0xf20   :  { %4865 = vrcp.f32 %v1193_v30 }
 0xf21   :  { %4867 = vrcp.f32 %v1384_v55 }
 0xf2a   :  { %v4866_v48 = vpop.eup %4865 }
 0xf2b   :  { %v4868_v41 = vpop.eup %4867  ;;  %v1197_v27 = vmul.f32 %v4866_v48, %v5689_v28 }
 0xf2c   :  { %v1388_v42 = vmul.f32 %v4868_v41, %v5687_v23 }
 0xf87   :  { %v1200_v38 = vpop.permute.xlu1 %1199 }
 0xf88   :  { %v1202_v39 = vmul.f32 %v4866_v48, %v1200_v38 }
 0xf8a   :  { %1204 = vrot.lane.b32.xlu1 %v1202_v39, %s5259_s17 }
 0xf8e   :  { %1406 = vrot.lane.b32.xlu1 %v5428_v10, %s5260_s14 }
 0xf8f   :  { %v1391_v14 = vpop.permute.xlu0 %1390 }
 0xf90   :  { %v1393_v34 = vmul.f32 %v4868_v41, %v1391_v14 }
 0xf92   :  { %1395 = vrot.lane.b32.xlu0 %v1393_v34, %s5259_s17 }
 0xffc   :  { %v1205_v16 = vpop.permute.xlu1 %1204 }
 0xffd   :  { %v5796_v45 = vadd.f32 %v1205_v16, %v1197_v27 }
0x1000   :  { %v1407_v23 = vpop.permute.xlu1 %1406 }
0x1004   :  { %v1396_v43 = vpop.permute.xlu0 %1395 }
0x1005   :  { %v5794_v6 = vadd.f32 %v1396_v43, %v1388_v42 }
0x1007   :  { %4869 = vtanh.f32 %v5794_v6 }
0x1008   :  { %4871 = vtanh.f32 %v5796_v45 }
0x1011   :  { %v4870_v10 = vpop.eup %4869 }
0x1012   :  { %1401 = vrot.lane.b32.xlu0 %v4870_v10, %s5251_s6  ;;  %v4872_v46 = vpop.eup %4871 }
0x1016   :  { %1210 = vrot.lane.b32.xlu0 %v4872_v46, %s5251_s6 }
0x1084   :  { %v1402_v36 = vpop.permute.xlu0 %1401 }
0x1085   :  { %v5802_v53 = vmul.f32 %v4868_v41, %v1402_v36 }
0x1087   :  { %v1409_v28 = vadd.f32 %v1407_v23, %v5802_v53 }
0x1088   :  { %v1211_v54 = vpop.permute.xlu0 %1210 }
0x1089   :  { %v1410_v59 = vpack.c.bf16 %v1409_v28, %v1409_v28  ;;  %v5805_v61 = vmul.f32 %v4866_v48, %v1211_v54 }
0x108b   :  { %v1523_v47 = vpack.c.bf16 %v5805_v61, %v5805_v61  ;;  %1452 = vrot.lane.b32.xlu1 %v1410_v59, %s5259_s17 }
0x108d   :  { %1525 = vrot.lane.b32.xlu0 %v1523_v47, %s5259_s17 }
0x10fd   :  { %v1453_v49 = vpop.permute.xlu1 %1452 }
0x10fe   :  { %4443 = vmatmul.mubr.msk.bf16.vlgmr.msra.gmra.mrb[36].mxu0 %vm169_vm0, %v1453_v49 }
0x10ff   :  { %v1526_v60 = vpop.permute.xlu0 %1525  ;;  %4455 = vmatpush3.bf16.msra.mxu0 %v5627_v50  ;;  %4458 = vmatprep.mubr.msk.bf16.mxu0 %vm5258_vm1, %v5257_v15 }
0x1100   :  { %4451 = vmatmul.mubr.msk.bf16.vlgmr.msra.gmra.mrb[44].mxu1 %vm169_vm0, %v1526_v60  ;;  %4456 = vmatprep.subr.bf16.mxu0 %v5257_v15 }
0x1101   :  { %4463 = vmatpush3.bf16.msra.mxu1 %v5820_v62  ;;  %4466 = vmatprep.mubr.msk.bf16.mxu1 %vm5258_vm1, %v5257_v15 }
0x1102   :  { %4464 = vmatprep.subr.bf16.mxu1 %v5257_v15 }
0x1103   :  { %4457 = vmatpush3.bf16.msra.mxu0 %v5633_v51 }
0x1104   :  { %4470 = vmatprep.subr.bf16.mxu0 %v5257_v15 }
0x1105   :  { %4465 = vmatpush3.bf16.msra.mxu1 %v5831_v0 }
0x1106   :  { %4478 = vmatprep.subr.bf16.mxu1 %v5257_v15 }
0x1108   :  { %4467 = vmatmul.mubr.msk.bf16.vlgmr.msra.gmra.mrb[48].mxu1 %vm169_vm0, %v5757_v11 }
0x1109   :  { %4479 = vmatpush3.bf16.msra.mxu1 %v5509_v56  ;;  %4482 = vmatprep.mubr.msk.bf16.mxu1 %vm5258_vm1, %v5257_v15 }
0x110a   :  { %4480 = vmatprep.subr.bf16.mxu1 %v5257_v15 }
0x110d   :  { %4481 = vmatpush3.bf16.msra.mxu1 %v5516_v57 }
0x110e   :  { %4494 = vmatprep.subr.bf16.mxu1 %v5257_v15 }
0x11d1   :  { %v1491_v1 = vpop.f32.mrb[36].mxu0 }
0x11d2   :  { %v1492_v2 = vadd.f32 %v1491_v1, %v5785_v44  ;;  %v4444_v3 = vpop.f32.mrb[37].mxu0  ;;  %v5871_v1 = vld [vmem:[%s6559_s2 + $0x10] sm:$0xff]  }
0x11d3   :  { %v1494_v18 = vpop.f32.mrb[38].mxu0  ;;  %v5844_v63 = vpop.f32.mrb[44].mxu1 }
0x11d4   :  { %v1497_v11 = vadd.f32 %v5614_v32, %v1492_v2  ;;  %v4445_v4 = vpop.f32.mrb[39].mxu0  ;;  %v4452_v56 = vpop.f32.mrb[45].mxu1  ;;  %v5889_v18 = vld [vmem:[#allocation4] sm:$0xff]  }
0x11d5   :  { %v1567_v5 = vpop.f32.mrb[46].mxu1  ;;  %v5906_v4 = vld [vmem:[#allocation4 + $0x10] sm:$0xff]  }
0x11d6   :  { %4873 = vtanh.f32 %v1497_v11  ;;  %v4453_v9 = vpop.f32.mrb[47].mxu1  ;;  %v4036_v21 = vmul.f32 -1.442695, %v1497_v11  ;;  %v5899_v11 = vld [vmem:[#allocation4 + $0x8] sm:$0xff]  }
0x11db   :  { %v1682_v13 = vpop.f32.mrb[48].mxu1 }
0x11dc   :  { %v1688_v17 = vadd.f32 %v1682_v13, %v5477_v31  ;;  %v4468_v57 = vpop.f32.mrb[49].mxu1 }
0x11dd   :  { %v1685_v19 = vpop.f32.mrb[50].mxu1 }
0x11de   :  { %4875 = vtanh.f32 %v1688_v17  ;;  %v4469_v24 = vpop.f32.mrb[51].mxu1  ;;  %v4041_v8 = vmul.f32 -1.442695, %v1688_v17 }
0x11df   :  { %4877 = vpow2.f32 %v4036_v21 }
0x11e0   :  { %v4874_v20 = vpop.eup %4873  ;;  %4879 = vpow2.f32 %v4041_v8 }
0x11e1   :  { %1507 = vrot.lane.b32.xlu1 %v4874_v20, %s5251_s6 }
0x11e8   :  { %v4876_v44 = vpop.eup %4875 }
0x11e9   :  { %1698 = vrot.lane.b32.xlu0 %v4876_v44, %s5251_s6  ;;  %v4878_v30 = vpop.eup %4877 }
0x11ea   :  { %v1501_v35 = vadd.f32 1.0, %v4878_v30  ;;  %v4880_v55 = vpop.eup %4879 }
0x11eb   :  { %v1692_v48 = vadd.f32 1.0, %v4880_v55 }
0x11ec   :  { %4881 = vrcp.f32 %v1501_v35 }
0x11ed   :  { %4883 = vrcp.f32 %v1692_v48 }
0x11f6   :  { %v4882_v31 = vpop.eup %4881 }
0x11f7   :  { %v4884_v41 = vpop.eup %4883  ;;  %v1505_v42 = vmul.f32 %v4882_v31, %v5736_v37  ;;  %v1714_v37 = vpack.c.bf16 %v5802_v53, %v5802_v53  ;;  %v5880_v53 = vld [vmem:[%s6559_s2 + $0x18] sm:$0xff]  }
0x11f8   :  { %v1696_v27 = vmul.f32 %v4884_v41, %v5740_v40 }
0x1253   :  { %v1508_v38 = vpop.permute.xlu1 %1507 }
0x1254   :  { %v1510_v39 = vmul.f32 %v4882_v31, %v1508_v38 }
0x1256   :  { %1512 = vrot.lane.b32.xlu1 %v1510_v39, %s5259_s17 }
0x125b   :  { %v1699_v14 = vpop.permute.xlu0 %1698 }
0x125c   :  { %v1701_v34 = vmul.f32 %v4884_v41, %v1699_v14 }
0x125e   :  { %1703 = vrot.lane.b32.xlu0 %v1701_v34, %s5259_s17 }
0x12c8   :  { %v1513_v16 = vpop.permute.xlu1 %1512 }
0x12c9   :  { %v5853_v43 = vadd.f32 %v1513_v16, %v1505_v42 }
0x12cb   :  { %4885 = vtanh.f32 %v5853_v43 }
0x12d0   :  { %v1704_v10 = vpop.permute.xlu0 %1703 }
0x12d1   :  { %v5857_v46 = vadd.f32 %v1704_v10, %v1696_v27 }
0x12d3   :  { %4887 = vtanh.f32 %v5857_v46 }
0x12d5   :  { %v4886_v36 = vpop.eup %4885 }
0x12d6   :  { %1518 = vrot.lane.b32.xlu1 %v4886_v36, %s5251_s6 }
0x12dd   :  { %v4888_v23 = vpop.eup %4887 }
0x12de   :  { %1709 = vrot.lane.b32.xlu0 %v4888_v23, %s5251_s6 }
0x12e2   :  { %1716 = vrot.lane.b32.xlu0 %v1714_v37, %s5259_s17 }
0x1348   :  { %v1519_v28 = vpop.permute.xlu1 %1518 }
0x1349   :  { %v1521_v54 = vmul.f32 %v4882_v31, %v1519_v28 }
0x134b   :  { %v1522_v59 = vpack.c.bf16 %v1521_v54, %v1521_v54  ;;  %v1646_v54 = vld [vmem:[%s6557_s0 + $0x18] sm:$0xff] }
0x134d   :  { %1571 = vrot.lane.b32.xlu1 %v1522_v59, %s5259_s17 }
0x1350   :  { %v1710_v40 = vpop.permute.xlu0 %1709 }
0x1351   :  { %v1712_v47 = vmul.f32 %v4884_v41, %v1710_v40 }
0x1353   :  { %v1713_v49 = vpack.c.bf16 %v1712_v47, %v1712_v47 }
0x1354   :  { %v1717_v2 = vpop.permute.xlu0 %1716 }
0x1355   :  { %1762 = vrot.lane.b32.xlu1 %v1713_v49, %s5259_s17 }
0x13bf   :  { %v1572_v60 = vpop.permute.xlu1 %1571 }
0x13c0   :  { %4459 = vmatmul.mubr.msk.bf16.vlgmr.msra.gmra.mrb[40].mxu0 %vm169_vm0, %v1572_v60 }
0x13c1   :  { %4471 = vmatpush3.bf16.msra.mxu0 %v5871_v1  ;;  %4474 = vmatprep.mubr.msk.bf16.mxu0 %vm5258_vm1, %v5257_v15 }
0x13c2   :  { %4472 = vmatprep.subr.bf16.mxu0 %v5257_v15 }
0x13c5   :  { %4473 = vmatpush3.bf16.msra.mxu0 %v5880_v53 }
0x13c6   :  { %4486 = vmatprep.subr.bf16.mxu0 %v5257_v15 }
0x13c7   :  { %v5884_v3 = vpop.permute.xlu1 %1762 }
0x13c8   :  { %4475 = vmatmul.mubr.msk.bf16.vlgmr.msra.gmra.mrb[44].mxu0 %vm169_vm0, %v1717_v2  ;;  %4483 = vmatmul.mubr.msk.bf16.vlgmr.msra.gmra.mrb[52].mxu1 %vm169_vm0, %v5884_v3 }
0x13c9   :  { %4487 = vmatpush3.bf16.msra.mxu0 %v5889_v18  ;;  %4490 = vmatprep.mubr.msk.bf16.mxu0 %vm5258_vm1, %v5257_v15 }
0x13ca   :  { %4488 = vmatprep.subr.bf16.mxu0 %v5257_v15  ;;  %4495 = vmatpush3.bf16.msra.mxu1 %v5590_v58  ;;  %v5912_v58 = vld [vmem:[#allocation4 + $0x18] sm:$0xff]  }
0x13cb   :  { %4496 = vmatprep.subr.bf16.mxu1 %v5257_v15  ;;  %4498 = vmatprep.mubr.msk.bf16.mxu1 %vm5258_vm1, %v5257_v15 }
0x13cd   :  { %4489 = vmatpush3.bf16.msra.mxu0 %v5899_v11 }
0x13ce   :  { %4502 = vmatprep.subr.bf16.mxu0 %v5257_v15  ;;  %4497 = vmatpush3.bf16.msra.mxu1 %v5596_v7 }
0x13cf   :  { %4510 = vmatprep.subr.bf16.mxu1 %v5257_v15 }
0x13d0   :  { %4491 = vmatmul.mubr.msk.bf16.vlgmr.msra.gmra.mrb[48].mxu0 %vm169_vm0, %v1572_v60 }
0x13d1   :  { %4503 = vmatpush3.bf16.msra.mxu0 %v5906_v4  ;;  %4506 = vmatprep.mubr.msk.bf16.mxu0 %vm5258_vm1, %v5257_v15 }
0x13d2   :  { %4504 = vmatprep.subr.bf16.mxu0 %v5257_v15 }
0x13d5   :  { %4505 = vmatpush3.bf16.msra.mxu0 %v5912_v58 }
0x13d6   :  { %4518 = vmatprep.subr.bf16.mxu0 %v5257_v15 }
0x1493   :  { %v1610_v7 = vpop.f32.mrb[40].mxu0 }
0x1494   :  { %v1611_v56 = vadd.f32 %v1610_v7, %v5844_v63  ;;  %v4460_v5 = vpop.f32.mrb[41].mxu0 }
0x1495   :  { %v1613_v9 = vpop.f32.mrb[42].mxu0 }
0x1496   :  { %v1616_v13 = vadd.f32 %v5672_v12, %v1611_v56  ;;  %v4461_v17 = vpop.f32.mrb[43].mxu0 }
0x1498   :  { %4889 = vtanh.f32 %v1616_v13  ;;  %v4039_v41 = vmul.f32 -1.442695, %v1616_v13 }
0x149b   :  { %v1755_v57 = vpop.f32.mrb[44].mxu0  ;;  %v1801_v19 = vpop.f32.mrb[52].mxu1 }
0x149c   :  { %v1802_v24 = vadd.f32 %v1801_v19, %v1755_v57  ;;  %v4476_v20 = vpop.f32.mrb[45].mxu0  ;;  %v4484_v44 = vpop.f32.mrb[53].mxu1 }
0x149d   :  { %v1758_v21 = vpop.f32.mrb[46].mxu0  ;;  %v1804_v8 = vpop.f32.mrb[54].mxu1 }
0x149e   :  { %v1807_v30 = vadd.f32 %v5573_v25, %v1802_v24  ;;  %v4477_v35 = vpop.f32.mrb[47].mxu0  ;;  %v4485_v55 = vpop.f32.mrb[55].mxu1 }
0x14a0   :  { %4891 = vtanh.f32 %v1807_v30  ;;  %v4044_v14 = vmul.f32 -1.442695, %v1807_v30 }
0x14a1   :  { %4893 = vpow2.f32 %v4039_v41 }
0x14a2   :  { %v4890_v48 = vpop.eup %4889  ;;  %4895 = vpow2.f32 %v4044_v14 }
0x14a3   :  { %1626 = vrot.lane.b32.xlu1 %v4890_v48, %s5251_s6  ;;  %v5920_v63 = vpop.f32.mrb[48].mxu0 }
0x14a4   :  { %v4492_v12 = vpop.f32.mrb[49].mxu0 }
0x14a5   :  { %v1875_v31 = vpop.f32.mrb[50].mxu0 }
0x14a6   :  { %v4493_v38 = vpop.f32.mrb[51].mxu0 }
0x14aa   :  { %v4892_v39 = vpop.eup %4891 }
0x14ab   :  { %1817 = vrot.lane.b32.xlu0 %v4892_v39, %s5251_s6  ;;  %v4894_v34 = vpop.eup %4893 }
0x14ac   :  { %v1620_v25 = vadd.f32 1.0, %v4894_v34  ;;  %v4896_v42 = vpop.eup %4895 }
0x14ad   :  { %v1811_v16 = vadd.f32 1.0, %v4896_v42 }
0x14ae   :  { %4897 = vrcp.f32 %v1620_v25 }
0x14af   :  { %4899 = vrcp.f32 %v1811_v16 }
0x14b8   :  { %v4898_v27 = vpop.eup %4897 }
0x14b9   :  { %v4900_v23 = vpop.eup %4899  ;;  %v1624_v49 = vmul.f32 %v4898_v27, %v5796_v45 }
0x14ba   :  { %v1815_v59 = vmul.f32 %v4900_v23, %v5794_v6 }
0x1515   :  { %v1627_v10 = vpop.permute.xlu1 %1626 }
0x1516   :  { %v1629_v36 = vmul.f32 %v4898_v27, %v1627_v10 }
0x1518   :  { %1631 = vrot.lane.b32.xlu1 %v1629_v36, %s5259_s17 }
0x151c   :  { %1833 = vrot.lane.b32.xlu1 %v1646_v54, %s5260_s14 }
0x151d   :  { %v1818_v37 = vpop.permute.xlu0 %1817 }
0x151e   :  { %v1820_v28 = vmul.f32 %v4900_v23, %v1818_v37 }
0x1520   :  { %1822 = vrot.lane.b32.xlu0 %v1820_v28, %s5259_s17 }
0x158a   :  { %v1632_v40 = vpop.permute.xlu1 %1631 }
0x158b   :  { %v5933_v2 = vadd.f32 %v1632_v40, %v1624_v49 }
0x158e   :  { %v1834_v6 = vpop.permute.xlu1 %1833 }
0x1592   :  { %v1823_v47 = vpop.permute.xlu0 %1822 }
0x1593   :  { %v5931_v60 = vadd.f32 %v1823_v47, %v1815_v59 }
0x1595   :  { %4901 = vtanh.f32 %v5931_v60 }
0x1596   :  { %4903 = vtanh.f32 %v5933_v2 }
0x159f   :  { %v4902_v7 = vpop.eup %4901 }
0x15a0   :  { %1828 = vrot.lane.b32.xlu0 %v4902_v7, %s5251_s6  ;;  %v4904_v56 = vpop.eup %4903 }
0x15a4   :  { %1637 = vrot.lane.b32.xlu0 %v4904_v56, %s5251_s6 }
0x1612   :  { %v1829_v5 = vpop.permute.xlu0 %1828 }
0x1613   :  { %v5939_v9 = vmul.f32 %v4900_v23, %v1829_v5 }
0x1615   :  { %v1836_v45 = vadd.f32 %v1834_v6, %v5939_v9 }
0x1616   :  { %v1638_v13 = vpop.permute.xlu0 %1637 }
0x1617   :  { %v1837_v17 = vpack.c.bf16 %v1836_v45, %v1836_v45  ;;  %v5942_v57 = vmul.f32 %v4898_v27, %v1638_v13 }
0x1619   :  { %v1950_v19 = vpack.c.bf16 %v5942_v57, %v5942_v57  ;;  %1879 = vrot.lane.b32.xlu1 %v1837_v17, %s5259_s17 }
0x161b   :  { %1952 = vrot.lane.b32.xlu0 %v1950_v19, %s5259_s17 }
0x168b   :  { %v1880_v24 = vpop.permute.xlu1 %1879 }
0x168c   :  { %4499 = vmatmul.mubr.msk.bf16.vlgmr.msra.gmra.mrb[56].mxu1 %vm169_vm0, %v1880_v24 }
0x168d   :  { %v1953_v20 = vpop.permute.xlu0 %1952  ;;  %4511 = vmatpush3.bf16.msra.mxu1 %v5627_v50  ;;  %4514 = vmatprep.mubr.msk.bf16.mxu1 %vm5258_vm1, %v5257_v15  ;;  %v5967_v50 = vld [vmem:[%s6558_s1 + $0x10] sm:$0xff]  }
0x168e   :  { %4507 = vmatmul.mubr.msk.bf16.vlgmr.msra.gmra.mrb[52].mxu0 %vm169_vm0, %v1953_v20  ;;  %4512 = vmatprep.subr.bf16.mxu1 %v5257_v15 }
0x168f   :  { %4519 = vmatpush3.bf16.msra.mxu0 %v5820_v62  ;;  %4522 = vmatprep.mubr.msk.bf16.mxu0 %vm5258_vm1, %v5257_v15 }
0x1690   :  { %4520 = vmatprep.subr.bf16.mxu0 %v5257_v15 }
0x1691   :  { %4513 = vmatpush3.bf16.msra.mxu1 %v5633_v51  ;;  %v5976_v51 = vld [vmem:[%s6558_s1 + $0x18] sm:$0xff]  }
0x1692   :  { %4526 = vmatprep.subr.bf16.mxu1 %v5257_v15 }
0x1693   :  { %4521 = vmatpush3.bf16.msra.mxu0 %v5831_v0 }
0x1694   :  { %4534 = vmatprep.subr.bf16.mxu0 %v5257_v15 }
0x1696   :  { %4523 = vmatmul.mubr.msk.bf16.vlgmr.msra.gmra.mrb[56].mxu0 %vm169_vm0, %v5884_v3 }
0x1697   :  { %4535 = vmatpush3.bf16.msra.mxu0 %v5967_v50  ;;  %4538 = vmatprep.mubr.msk.bf16.mxu0 %vm5258_vm1, %v5257_v15 }
0x1698   :  { %4536 = vmatprep.subr.bf16.mxu0 %v5257_v15 }
0x169b   :  { %4537 = vmatpush3.bf16.msra.mxu0 %v5976_v51 }
0x169c   :  { %4550 = vmatprep.subr.bf16.mxu0 %v5257_v15 }
0x175f   :  { %v1918_v3 = vpop.f32.mrb[56].mxu1 }
0x1760   :  { %v1919_v44 = vadd.f32 %v1918_v3, %v5920_v63  ;;  %v4500_v21 = vpop.f32.mrb[57].mxu1 }
0x1761   :  { %v1921_v8 = vpop.f32.mrb[58].mxu1  ;;  %v5981_v30 = vpop.f32.mrb[52].mxu0  ;;  %v6023_v21 = vld [vmem:[%s6561_s4] sm:$0xff]  }
0x1762   :  { %v1924_v35 = vadd.f32 %v5614_v32, %v1919_v44  ;;  %v4501_v55 = vpop.f32.mrb[59].mxu1  ;;  %v4508_v48 = vpop.f32.mrb[53].mxu0  ;;  %v6034_v8 = vld [vmem:[%s6561_s4 + $0x8] sm:$0xff]  }
0x1763   :  { %v1994_v12 = vpop.f32.mrb[54].mxu0 }
0x1764   :  { %4905 = vtanh.f32 %v1924_v35  ;;  %v4509_v31 = vpop.f32.mrb[55].mxu0  ;;  %v4047_v42 = vmul.f32 -1.442695, %v1924_v35 }
0x1765   :  { %v6046_v31 = vld [vmem:[#allocation7 + $0x1] ss:$0 sm:$0xff] }
0x1769   :  { %v2109_v38 = vpop.f32.mrb[56].mxu0 }
0x176a   :  { %v2115_v39 = vadd.f32 %v2109_v38, %v5473_v26  ;;  %v4524_v41 = vpop.f32.mrb[57].mxu0 }
0x176b   :  { %v2112_v14 = vpop.f32.mrb[58].mxu0 }
0x176c   :  { %4907 = vtanh.f32 %v2115_v39  ;;  %v4525_v34 = vpop.f32.mrb[59].mxu0  ;;  %v4052_v32 = vmul.f32 -1.442695, %v2115_v39 }
0x176d   :  { %4909 = vpow2.f32 %v4047_v42 }
0x176e   :  { %v4906_v25 = vpop.eup %4905  ;;  %4911 = vpow2.f32 %v4052_v32 }
0x176f   :  { %1934 = vrot.lane.b32.xlu1 %v4906_v25, %s5251_s6 }
0x1776   :  { %v4908_v63 = vpop.eup %4907 }
0x1777   :  { %2125 = vrot.lane.b32.xlu0 %v4908_v63, %s5251_s6  ;;  %v4910_v16 = vpop.eup %4909 }
0x1778   :  { %v1928_v27 = vadd.f32 1.0, %v4910_v16  ;;  %v4912_v10 = vpop.eup %4911  ;;  %v6052_v16 = vld [vmem:[%s6560_s3 + $0x1] ss:$0 sm:$0xff] }
0x1779   :  { %v2119_v36 = vadd.f32 1.0, %v4912_v10 }
0x177a   :  { %4913 = vrcp.f32 %v1928_v27 }
0x177b   :  { %4915 = vrcp.f32 %v2119_v36 }
0x1784   :  { %v4914_v26 = vpop.eup %4913 }
0x1785   :  { %v4916_v28 = vpop.eup %4915  ;;  %v1932_v40 = vmul.f32 %v4914_v26, %v5853_v43  ;;  %v2141_v43 = vpack.c.bf16 %v5939_v9, %v5939_v9 }
0x1786   :  { %v2123_v7 = vmul.f32 %v4916_v28, %v5857_v46 }
0x17e1   :  { %v1935_v23 = vpop.permute.xlu1 %1934 }
0x17e2   :  { %v1937_v37 = vmul.f32 %v4914_v26, %v1935_v23 }
0x17e4   :  { %1939 = vrot.lane.b32.xlu1 %v1937_v37, %s5259_s17 }
0x17e9   :  { %v2126_v54 = vpop.permute.xlu0 %2125 }
0x17ea   :  { %v2128_v59 = vmul.f32 %v4916_v28, %v2126_v54 }
0x17ec   :  { %2130 = vrot.lane.b32.xlu0 %v2128_v59, %s5259_s17 }
0x1856   :  { %v1940_v47 = vpop.permute.xlu1 %1939 }
0x1857   :  { %v5990_v49 = vadd.f32 %v1940_v47, %v1932_v40 }
0x1859   :  { %4917 = vtanh.f32 %v5990_v49 }
0x185e   :  { %v2131_v56 = vpop.permute.xlu0 %2130 }
0x185f   :  { %v5994_v5 = vadd.f32 %v2131_v56, %v2123_v7 }
0x1861   :  { %4919 = vtanh.f32 %v5994_v5 }
0x1863   :  { %v4918_v6 = vpop.eup %4917 }
0x1864   :  { %1945 = vrot.lane.b32.xlu1 %v4918_v6, %s5251_s6 }
0x186b   :  { %v4920_v45 = vpop.eup %4919 }
0x186c   :  { %2136 = vrot.lane.b32.xlu0 %v4920_v45, %s5251_s6 }
0x1870   :  { %2143 = vrot.lane.b32.xlu0 %v2141_v43, %s5259_s17 }
0x18d6   :  { %v1946_v13 = vpop.permute.xlu1 %1945 }
0x18d7   :  { %v1948_v17 = vmul.f32 %v4914_v26, %v1946_v13 }
0x18d9   :  { %v1949_v19 = vpack.c.bf16 %v1948_v17, %v1948_v17 }
0x18db   :  { %1998 = vrot.lane.b32.xlu1 %v1949_v19, %s5259_s17 }
0x18de   :  { %v2137_v46 = vpop.permute.xlu0 %2136 }
0x18df   :  { %v2139_v24 = vmul.f32 %v4916_v28, %v2137_v46 }
0x18e1   :  { %v2140_v20 = vpack.c.bf16 %v2139_v24, %v2139_v24  ;;  %v2073_v24 = vld [vmem:[%s6557_s0 + $0x20] sm:$0xff] }
0x18e2   :  { %v2144_v9 = vpop.permute.xlu0 %2143 }
0x18e3   :  { %2189 = vrot.lane.b32.xlu1 %v2140_v20, %s5259_s17 }
0x194d   :  { %v1999_v3 = vpop.permute.xlu1 %1998 }
0x194e   :  { %4515 = vmatmul.mubr.msk.bf16.vlgmr.msra.gmra.mrb[60].mxu1 %vm169_vm0, %v1999_v3 }
0x194f   :  { %4527 = vmatpush3.bf16.msra.mxu1 %v5871_v1  ;;  %4530 = vmatprep.mubr.msk.bf16.mxu1 %vm5258_vm1, %v5257_v15 }
0x1950   :  { %4528 = vmatprep.subr.bf16.mxu1 %v5257_v15 }
0x1953   :  { %4529 = vmatpush3.bf16.msra.mxu1 %v5880_v53 }
0x1954   :  { %4542 = vmatprep.subr.bf16.mxu1 %v5257_v15 }
0x1955   :  { %v6011_v44 = vpop.permute.xlu1 %2189 }
0x1956   :  { %4531 = vmatmul.mubr.msk.bf16.vlgmr.msra.gmra.mrb[64].mxu1 %vm169_vm0, %v2144_v9  ;;  %4539 = vmatmul.mubr.msk.bf16.vlgmr.msra.gmra.mrb[60].mxu0 %vm169_vm0, %v6011_v44 }
0x1957   :  { %4543 = vmatpush3.bf16.msra.mxu1 %v5889_v18  ;;  %4546 = vmatprep.mubr.msk.bf16.mxu1 %vm5258_vm1, %v5257_v15 }
0x1958   :  { %4544 = vmatprep.subr.bf16.mxu1 %v5257_v15  ;;  %4551 = vmatpush3.bf16.msra.mxu0 %v6023_v21 }
0x1959   :  { %4552 = vmatprep.subr.bf16.mxu0 %v5257_v15  ;;  %4554 = vmatprep.mubr.msk.bf16.mxu0 %vm5258_vm1, %v5257_v15 }
0x195b   :  { %4545 = vmatpush3.bf16.msra.mxu1 %v5899_v11 }
0x195c   :  { %4558 = vmatprep.subr.bf16.mxu1 %v5257_v15  ;;  %4553 = vmatpush3.bf16.msra.mxu0 %v6034_v8 }
0x195d   :  { %4566 = vmatprep.subr.bf16.mxu0 %v5257_v15 }
0x195e   :  { %4547 = vmatmul.mubr.msk.bf16.vlgmr.msra.gmra.mrb[68].mxu1 %vm169_vm0, %v1999_v3 }
0x195f   :  { %4559 = vmatpush3.bf16.msra.mxu1 %v5906_v4  ;;  %4562 = vmatprep.mubr.msk.bf16.mxu1 %vm5258_vm1, %v5257_v15 }
0x1960   :  { %4560 = vmatprep.subr.bf16.mxu1 %v5257_v15 }
0x1963   :  { %4561 = vmatpush3.bf16.msra.mxu1 %v5912_v58 }
0x1964   :  { %4574 = vmatprep.subr.bf16.mxu1 %v5257_v15 }
0x1a21   :  { %v2037_v35 = vpop.f32.mrb[60].mxu1 }
0x1a22   :  { %v2038_v55 = vadd.f32 %v2037_v35, %v5981_v30  ;;  %v4516_v48 = vpop.f32.mrb[61].mxu1 }
0x1a23   :  { %v2040_v12 = vpop.f32.mrb[62].mxu1 }
0x1a24   :  { %v2043_v38 = vadd.f32 %v6046_v31, %v2038_v55  ;;  %v4517_v39 = vpop.f32.mrb[63].mxu1 }
0x1a26   :  { %4921 = vtanh.f32 %v2043_v38  ;;  %v4050_v59 = vmul.f32 -1.442695, %v2043_v38 }
0x1a29   :  { %v2182_v41 = vpop.f32.mrb[64].mxu1  ;;  %v2228_v14 = vpop.f32.mrb[60].mxu0 }
0x1a2a   :  { %v2229_v34 = vadd.f32 %v2228_v14, %v2182_v41  ;;  %v4532_v25 = vpop.f32.mrb[65].mxu1  ;;  %v4540_v63 = vpop.f32.mrb[61].mxu0 }
0x1a2b   :  { %v2185_v42 = vpop.f32.mrb[66].mxu1  ;;  %v2231_v32 = vpop.f32.mrb[62].mxu0 }
0x1a2c   :  { %v2234_v30 = vadd.f32 %v6052_v16, %v2229_v34  ;;  %v4533_v27 = vpop.f32.mrb[67].mxu1  ;;  %v4541_v10 = vpop.f32.mrb[63].mxu0 }
0x1a2d   :  { %v6102_v27 = vld [vmem:[%s6561_s4 + $0x18] sm:$0xff]  }
0x1a2e   :  { %4923 = vtanh.f32 %v2234_v30  ;;  %v4055_v40 = vmul.f32 -1.442695, %v2234_v30  ;;  %v6088_v30 = vld [vmem:[%s6561_s4 + $0x10] sm:$0xff]  }
0x1a2f   :  { %4925 = vpow2.f32 %v4050_v59 }
0x1a30   :  { %v4922_v36 = vpop.eup %4921  ;;  %4927 = vpow2.f32 %v4055_v40 }
0x1a31   :  { %2053 = vrot.lane.b32.xlu1 %v4922_v36, %s5251_s6  ;;  %v6056_v26 = vpop.f32.mrb[68].mxu1 }
0x1a32   :  { %v4548_v23 = vpop.f32.mrb[69].mxu1 }
0x1a33   :  { %v2302_v37 = vpop.f32.mrb[70].mxu1 }
0x1a34   :  { %v4549_v28 = vpop.f32.mrb[71].mxu1  ;;  %v6119_v37 = vld [vmem:[#allocation7] ss:$0 sm:$0xff] }
0x1a38   :  { %v4924_v54 = vpop.eup %4923 }
0x1a39   :  { %2244 = vrot.lane.b32.xlu0 %v4924_v54, %s5251_s6  ;;  %v4926_v47 = vpop.eup %4925 }
0x1a3a   :  { %v2047_v7 = vadd.f32 1.0, %v4926_v47  ;;  %v4928_v56 = vpop.eup %4927 }
0x1a3b   :  { %v2238_v6 = vadd.f32 1.0, %v4928_v56 }
0x1a3c   :  { %4929 = vrcp.f32 %v2047_v7 }
0x1a3d   :  { %4931 = vrcp.f32 %v2238_v6 }
0x1a46   :  { %v4930_v45 = vpop.eup %4929 }
0x1a47   :  { %v4932_v17 = vpop.eup %4931  ;;  %v2051_v35 = vmul.f32 %v4930_v45, %v5933_v2 }
0x1a48   :  { %v2242_v20 = vmul.f32 %v4932_v17, %v5931_v60 }
0x1aa3   :  { %v2054_v43 = vpop.permute.xlu1 %2053 }
0x1aa4   :  { %v2056_v13 = vmul.f32 %v4930_v45, %v2054_v43 }
0x1aa6   :  { %2058 = vrot.lane.b32.xlu1 %v2056_v13, %s5259_s17 }
0x1aaa   :  { %2260 = vrot.lane.b32.xlu1 %v2073_v24, %s5260_s14 }
0x1aab   :  { %v2245_v19 = vpop.permute.xlu0 %2244 }
0x1aac   :  { %v2247_v46 = vmul.f32 %v4932_v17, %v2245_v19 }
0x1aae   :  { %2249 = vrot.lane.b32.xlu0 %v2247_v46, %s5259_s17 }
0x1b18   :  { %v2059_v3 = vpop.permute.xlu1 %2058 }
0x1b19   :  { %v6069_v48 = vadd.f32 %v2059_v3, %v2051_v35 }
0x1b1c   :  { %v2261_v60 = vpop.permute.xlu1 %2260 }
0x1b20   :  { %v2250_v9 = vpop.permute.xlu0 %2249 }
0x1b21   :  { %v6067_v55 = vadd.f32 %v2250_v9, %v2242_v20 }
0x1b23   :  { %4933 = vtanh.f32 %v6067_v55 }
0x1b24   :  { %4935 = vtanh.f32 %v6069_v48 }
0x1b2d   :  { %v4934_v12 = vpop.eup %4933 }
0x1b2e   :  { %2255 = vrot.lane.b32.xlu0 %v4934_v12, %s5251_s6  ;;  %v4936_v38 = vpop.eup %4935 }
0x1b32   :  { %2064 = vrot.lane.b32.xlu0 %v4936_v38, %s5251_s6 }
0x1ba0   :  { %v2256_v39 = vpop.permute.xlu0 %2255 }
0x1ba1   :  { %v6075_v41 = vmul.f32 %v4932_v17, %v2256_v39 }
0x1ba3   :  { %v2263_v2 = vadd.f32 %v2261_v60, %v6075_v41 }
0x1ba4   :  { %v2065_v14 = vpop.permute.xlu0 %2064 }
0x1ba5   :  { %v2264_v34 = vpack.c.bf16 %v2263_v2, %v2263_v2  ;;  %v6078_v25 = vmul.f32 %v4930_v45, %v2065_v14 }
0x1ba7   :  { %v2377_v63 = vpack.c.bf16 %v6078_v25, %v6078_v25  ;;  %2306 = vrot.lane.b32.xlu1 %v2264_v34, %s5259_s17 }
0x1ba9   :  { %2379 = vrot.lane.b32.xlu0 %v2377_v63, %s5259_s17 }
0x1c19   :  { %v2307_v42 = vpop.permute.xlu1 %2306 }
0x1c1a   :  { %4555 = vmatmul.mubr.msk.bf16.vlgmr.msra.gmra.mrb[64].mxu0 %vm169_vm0, %v2307_v42 }
0x1c1b   :  { %v2380_v32 = vpop.permute.xlu0 %2379  ;;  %4567 = vmatpush3.bf16.msra.mxu0 %v6088_v30  ;;  %4570 = vmatprep.mubr.msk.bf16.mxu0 %vm5258_vm1, %v5257_v15 }
0x1c1c   :  { %4563 = vmatmul.mubr.msk.bf16.vlgmr.msra.gmra.mrb[72].mxu1 %vm169_vm0, %v2380_v32  ;;  %4568 = vmatprep.subr.bf16.mxu0 %v5257_v15 }
0x1c1d   :  { %4575 = vmatpush3.bf16.msra.mxu1 %v5820_v62  ;;  %4578 = vmatprep.mubr.msk.bf16.mxu1 %vm5258_vm1, %v5257_v15 }
0x1c1e   :  { %4576 = vmatprep.subr.bf16.mxu1 %v5257_v15 }
0x1c1f   :  { %4569 = vmatpush3.bf16.msra.mxu0 %v6102_v27 }
0x1c20   :  { %4582 = vmatprep.subr.bf16.mxu0 %v5257_v15 }
0x1c21   :  { %4577 = vmatpush3.bf16.msra.mxu1 %v5831_v0 }
0x1c22   :  { %4590 = vmatprep.subr.bf16.mxu1 %v5257_v15 }
0x1c24   :  { %4579 = vmatmul.mubr.msk.bf16.vlgmr.msra.gmra.mrb[76].mxu1 %vm169_vm0, %v6011_v44 }
0x1c25   :  { %4591 = vmatpush3.bf16.msra.mxu1 %v5967_v50  ;;  %4594 = vmatprep.mubr.msk.bf16.mxu1 %vm5258_vm1, %v5257_v15 }
0x1c26   :  { %4592 = vmatprep.subr.bf16.mxu1 %v5257_v15 }
0x1c29   :  { %4593 = vmatpush3.bf16.msra.mxu1 %v5976_v51 }
0x1c2a   :  { %4606 = vmatprep.subr.bf16.mxu1 %v5257_v15 }
0x1ced   :  { %v2345_v62 = vpop.f32.mrb[64].mxu0 }
0x1cee   :  { %v2346_v10 = vadd.f32 %v2345_v62, %v6056_v26  ;;  %v4556_v0 = vpop.f32.mrb[65].mxu0 }
0x1cef   :  { %v2348_v36 = vpop.f32.mrb[66].mxu0  ;;  %v6117_v23 = vpop.f32.mrb[72].mxu1 }
0x1cf0   :  { %v2351_v44 = vadd.f32 %v6119_v37, %v2346_v10  ;;  %v4557_v28 = vpop.f32.mrb[67].mxu0  ;;  %v4564_v54 = vpop.f32.mrb[73].mxu1 }
0x1cf1   :  { %v2421_v59 = vpop.f32.mrb[74].mxu1 }
0x1cf2   :  { %4937 = vtanh.f32 %v2351_v44  ;;  %v4565_v40 = vpop.f32.mrb[75].mxu1  ;;  %v4058_v13 = vmul.f32 -1.442695, %v2351_v44 }
0x1cf7   :  { %v2536_v47 = vpop.f32.mrb[76].mxu1 }
0x1cf8   :  { %v2542_v7 = vadd.f32 %v2536_v47, %v5479_v33  ;;  %v4580_v56 = vpop.f32.mrb[77].mxu1 }
0x1cf9   :  { %v2539_v6 = vpop.f32.mrb[78].mxu1 }
0x1cfa   :  { %4939 = vtanh.f32 %v2542_v7  ;;  %v4581_v26 = vpop.f32.mrb[79].mxu1  ;;  %v4063_v17 = vmul.f32 -1.442695, %v2542_v7 }
0x1cfb   :  { %4941 = vpow2.f32 %v4058_v13 }
0x1cfc   :  { %v4938_v45 = vpop.eup %4937  ;;  %4943 = vpow2.f32 %v4063_v17 }
0x1cfd   :  { %2361 = vrot.lane.b32.xlu1 %v4938_v45, %s5251_s6 }
0x1d04   :  { %v4940_v43 = vpop.eup %4939 }
0x1d05   :  { %2552 = vrot.lane.b32.xlu0 %v4940_v43, %s5251_s6  ;;  %v4942_v19 = vpop.eup %4941 }
0x1d06   :  { %v2355_v46 = vadd.f32 1.0, %v4942_v19  ;;  %v4944_v24 = vpop.eup %4943 }
0x1d07   :  { %v2546_v20 = vadd.f32 1.0, %v4944_v24 }
0x1d08   :  { %4945 = vrcp.f32 %v2355_v46 }
0x1d09   :  { %4947 = vrcp.f32 %v2546_v20 }
0x1d12   :  { %v4946_v33 = vpop.eup %4945 }
0x1d13   :  { %v4948_v35 = vpop.eup %4947  ;;  %v2359_v39 = vmul.f32 %v4946_v33, %v5990_v49  ;;  %v2568_v49 = vpack.c.bf16 %v6075_v41, %v6075_v41 }
0x1d14   :  { %v2550_v14 = vmul.f32 %v4948_v35, %v5994_v5 }
0x1d6f   :  { %v2362_v3 = vpop.permute.xlu1 %2361 }
0x1d70   :  { %v2364_v9 = vmul.f32 %v4946_v33, %v2362_v3 }
0x1d72   :  { %2366 = vrot.lane.b32.xlu1 %v2364_v9, %s5259_s17 }
0x1d77   :  { %v2553_v12 = vpop.permute.xlu0 %2552 }
0x1d78   :  { %v2555_v38 = vmul.f32 %v4948_v35, %v2553_v12 }
0x1d7a   :  { %2557 = vrot.lane.b32.xlu0 %v2555_v38, %s5259_s17 }
0x1de4   :  { %v2367_v60 = vpop.permute.xlu1 %2366 }
0x1de5   :  { %v6128_v2 = vadd.f32 %v2367_v60, %v2359_v39 }
0x1de7   :  { %4949 = vtanh.f32 %v6128_v2 }
0x1dec   :  { %v2558_v34 = vpop.permute.xlu0 %2557 }
0x1ded   :  { %v6132_v63 = vadd.f32 %v2558_v34, %v2550_v14 }
0x1def   :  { %4951 = vtanh.f32 %v6132_v63 }
0x1df1   :  { %v4950_v42 = vpop.eup %4949 }
0x1df2   :  { %2372 = vrot.lane.b32.xlu1 %v4950_v42, %s5251_s6 }
0x1df9   :  { %v4952_v32 = vpop.eup %4951 }
0x1dfa   :  { %2563 = vrot.lane.b32.xlu0 %v4952_v32, %s5251_s6 }
0x1dfe   :  { %2570 = vrot.lane.b32.xlu0 %v2568_v49, %s5259_s17  ;;  %v2500_v49 = vld [vmem:[%s6557_s0 + $0x28] sm:$0xff] }
0x1e64   :  { %v2373_v62 = vpop.permute.xlu1 %2372 }
0x1e65   :  { %v2375_v10 = vmul.f32 %v4946_v33, %v2373_v62 }
0x1e67   :  { %v2376_v0 = vpack.c.bf16 %v2375_v10, %v2375_v10 }
0x1e69   :  { %2425 = vrot.lane.b32.xlu1 %v2376_v0, %s5259_s17 }
0x1e6c   :  { %v2564_v5 = vpop.permute.xlu0 %2563 }
0x1e6d   :  { %v2566_v36 = vmul.f32 %v4948_v35, %v2564_v5 }
0x1e6f   :  { %v2567_v44 = vpack.c.bf16 %v2566_v36, %v2566_v36 }
0x1e70   :  { %v2571_v41 = vpop.permute.xlu0 %2570 }
0x1e71   :  { %2616 = vrot.lane.b32.xlu1 %v2567_v44, %s5259_s17 }
0x1edb   :  { %v2426_v28 = vpop.permute.xlu1 %2425 }
0x1edc   :  { %4571 = vmatmul.mubr.msk.bf16.vlgmr.msra.gmra.mrb[68].mxu0 %vm169_vm0, %v2426_v28 }
0x1edd   :  { %4583 = vmatpush3.bf16.msra.mxu0 %v5871_v1  ;;  %4586 = vmatprep.mubr.msk.bf16.mxu0 %vm5258_vm1, %v5257_v15 }
0x1ede   :  { %4584 = vmatprep.subr.bf16.mxu0 %v5257_v15 }
0x1ee1   :  { %4585 = vmatpush3.bf16.msra.mxu0 %v5880_v53 }
0x1ee2   :  { %4598 = vmatprep.subr.bf16.mxu0 %v5257_v15 }
0x1ee3   :  { %v6149_v54 = vpop.permute.xlu1 %2616 }
0x1ee4   :  { %4587 = vmatmul.mubr.msk.bf16.vlgmr.msra.gmra.mrb[72].mxu0 %vm169_vm0, %v2571_v41  ;;  %4595 = vmatmul.mubr.msk.bf16.vlgmr.msra.gmra.mrb[80].mxu1 %vm169_vm0, %v6149_v54 }
0x1ee5   :  { %4599 = vmatpush3.bf16.msra.mxu0 %v5889_v18  ;;  %4602 = vmatprep.mubr.msk.bf16.mxu0 %vm5258_vm1, %v5257_v15 }
0x1ee6   :  { %4600 = vmatprep.subr.bf16.mxu0 %v5257_v15  ;;  %4607 = vmatpush3.bf16.msra.mxu1 %v6023_v21 }
0x1ee7   :  { %4608 = vmatprep.subr.bf16.mxu1 %v5257_v15  ;;  %4610 = vmatprep.mubr.msk.bf16.mxu1 %vm5258_vm1, %v5257_v15 }
0x1ee9   :  { %4601 = vmatpush3.bf16.msra.mxu0 %v5899_v11 }
0x1eea   :  { %4614 = vmatprep.subr.bf16.mxu0 %v5257_v15  ;;  %4609 = vmatpush3.bf16.msra.mxu1 %v6034_v8 }
0x1eeb   :  { %4622 = vmatprep.subr.bf16.mxu1 %v5257_v15 }
0x1eec   :  { %4603 = vmatmul.mubr.msk.bf16.vlgmr.msra.gmra.mrb[76].mxu0 %vm169_vm0, %v2426_v28 }
0x1eed   :  { %4615 = vmatpush3.bf16.msra.mxu0 %v5906_v4  ;;  %4618 = vmatprep.mubr.msk.bf16.mxu0 %vm5258_vm1, %v5257_v15 }
0x1eee   :  { %4616 = vmatprep.subr.bf16.mxu0 %v5257_v15 }
0x1ef1   :  { %4617 = vmatpush3.bf16.msra.mxu0 %v5912_v58 }
0x1ef2   :  { %4630 = vmatprep.subr.bf16.mxu0 %v5257_v15 }
0x1faf   :  { %v2464_v1 = vpop.f32.mrb[68].mxu0 }
0x1fb0   :  { %v2465_v53 = vadd.f32 %v2464_v1, %v6117_v23  ;;  %v4572_v18 = vpop.f32.mrb[69].mxu0 }
0x1fb1   :  { %v2467_v11 = vpop.f32.mrb[70].mxu0 }
0x1fb2   :  { %v2470_v59 = vadd.f32 %v6046_v31, %v2465_v53  ;;  %v4573_v40 = vpop.f32.mrb[71].mxu0 }
0x1fb4   :  { %4953 = vtanh.f32 %v2470_v59  ;;  %v4061_v33 = vmul.f32 -1.442695, %v2470_v59 }
0x1fb7   :  { %v2609_v47 = vpop.f32.mrb[72].mxu0  ;;  %v2655_v4 = vpop.f32.mrb[80].mxu1 }
0x1fb8   :  { %v2656_v7 = vadd.f32 %v2655_v4, %v2609_v47  ;;  %v4588_v56 = vpop.f32.mrb[73].mxu0  ;;  %v4596_v6 = vpop.f32.mrb[81].mxu1 }
0x1fb9   :  { %v2612_v26 = vpop.f32.mrb[74].mxu0  ;;  %v2658_v45 = vpop.f32.mrb[82].mxu1  ;;  %v6225_v56 = vld [vmem:[%s6559_s2 + $0x8] sm:$0xff]  }
0x1fba   :  { %v2661_v58 = vadd.f32 %v6052_v16, %v2656_v7  ;;  %v4589_v43 = vpop.f32.mrb[75].mxu0  ;;  %v4597_v13 = vpop.f32.mrb[83].mxu1  ;;  %v6214_v7 = vld [vmem:[%s6559_s2] sm:$0xff]  }
0x1fbc   :  { %4955 = vtanh.f32 %v2661_v58  ;;  %v4066_v3 = vmul.f32 -1.442695, %v2661_v58 }
0x1fbd   :  { %4957 = vpow2.f32 %v4061_v33 }
0x1fbe   :  { %v4954_v17 = vpop.eup %4953  ;;  %4959 = vpow2.f32 %v4066_v3 }
0x1fbf   :  { %2480 = vrot.lane.b32.xlu1 %v4954_v17, %s5251_s6  ;;  %v6177_v23 = vpop.f32.mrb[76].mxu0 }
0x1fc0   :  { %v4604_v19 = vpop.f32.mrb[77].mxu0 }
0x1fc1   :  { %v2729_v46 = vpop.f32.mrb[78].mxu0 }
0x1fc2   :  { %v4605_v24 = vpop.f32.mrb[79].mxu0 }
0x1fc6   :  { %v4956_v20 = vpop.eup %4955 }
0x1fc7   :  { %2671 = vrot.lane.b32.xlu0 %v4956_v20, %s5251_s6  ;;  %v4958_v9 = vpop.eup %4957 }
0x1fc8   :  { %v2474_v35 = vadd.f32 1.0, %v4958_v9  ;;  %v4960_v12 = vpop.eup %4959 }
0x1fc9   :  { %v2665_v38 = vadd.f32 1.0, %v4960_v12 }
0x1fca   :  { %4961 = vrcp.f32 %v2474_v35 }
0x1fcb   :  { %4963 = vrcp.f32 %v2665_v38 }
0x1fd4   :  { %v4962_v39 = vpop.eup %4961 }
0x1fd5   :  { %v4964_v34 = vpop.eup %4963  ;;  %v2478_v5 = vmul.f32 %v4962_v39, %v6069_v48 }
0x1fd6   :  { %v2669_v62 = vmul.f32 %v4964_v34, %v6067_v55 }
0x2031   :  { %v2481_v60 = vpop.permute.xlu1 %2480 }
0x2032   :  { %v2483_v14 = vmul.f32 %v4962_v39, %v2481_v60 }
0x2034   :  { %2485 = vrot.lane.b32.xlu1 %v2483_v14, %s5259_s17 }
0x2038   :  { %2687 = vrot.lane.b32.xlu1 %v2500_v49, %s5260_s14 }
0x2039   :  { %v2672_v42 = vpop.permute.xlu0 %2671 }
0x203a   :  { %v2674_v32 = vmul.f32 %v4964_v34, %v2672_v42 }
0x203c   :  { %2676 = vrot.lane.b32.xlu0 %v2674_v32, %s5259_s17 }
0x20a6   :  { %v2486_v10 = vpop.permute.xlu1 %2485 }
0x20a7   :  { %v6190_v44 = vadd.f32 %v2486_v10, %v2478_v5 }
0x20aa   :  { %v2688_v55 = vpop.permute.xlu1 %2687 }
0x20ae   :  { %v2677_v0 = vpop.permute.xlu0 %2676 }
0x20af   :  { %v6188_v36 = vadd.f32 %v2677_v0, %v2669_v62 }
0x20b1   :  { %4965 = vtanh.f32 %v6188_v36 }
0x20b2   :  { %4967 = vtanh.f32 %v6190_v44 }
0x20bb   :  { %v4966_v28 = vpop.eup %4965 }
0x20bc   :  { %2682 = vrot.lane.b32.xlu0 %v4966_v28, %s5251_s6  ;;  %v4968_v41 = vpop.eup %4967 }
0x20c0   :  { %2491 = vrot.lane.b32.xlu0 %v4968_v41, %s5251_s6 }
0x212e   :  { %v2683_v1 = vpop.permute.xlu0 %2682 }
0x212f   :  { %v6196_v53 = vmul.f32 %v4964_v34, %v2683_v1 }
0x2131   :  { %v2690_v48 = vadd.f32 %v2688_v55, %v6196_v53 }
0x2132   :  { %v2492_v18 = vpop.permute.xlu0 %2491 }
0x2133   :  { %v2691_v11 = vpack.c.bf16 %v2690_v48, %v2690_v48  ;;  %v6199_v59 = vmul.f32 %v4962_v39, %v2492_v18 }
0x2135   :  { %v2804_v40 = vpack.c.bf16 %v6199_v59, %v6199_v59  ;;  %2733 = vrot.lane.b32.xlu1 %v2691_v11, %s5259_s17 }
0x2137   :  { %2806 = vrot.lane.b32.xlu0 %v2804_v40, %s5259_s17 }
0x21a7   :  { %v2734_v47 = vpop.permute.xlu1 %2733 }
0x21a8   :  { %4611 = vmatmul.mubr.msk.bf16.vlgmr.msra.gmra.mrb[84].mxu1 %vm169_vm0, %v2734_v47 }
0x21a9   :  { %v2807_v4 = vpop.permute.xlu0 %2806  ;;  %4623 = vmatpush3.bf16.msra.mxu1 %v6088_v30  ;;  %4626 = vmatprep.mubr.msk.bf16.mxu1 %vm5258_vm1, %v5257_v15 }
0x21aa   :  { %4619 = vmatmul.mubr.msk.bf16.vlgmr.msra.gmra.mrb[80].mxu0 %vm169_vm0, %v2807_v4  ;;  %4624 = vmatprep.subr.bf16.mxu1 %v5257_v15 }
0x21ab   :  { %4631 = vmatpush3.bf16.msra.mxu0 %v6214_v7  ;;  %4634 = vmatprep.mubr.msk.bf16.mxu0 %vm5258_vm1, %v5257_v15 }
0x21ac   :  { %4632 = vmatprep.subr.bf16.mxu0 %v5257_v15 }
0x21ad   :  { %4625 = vmatpush3.bf16.msra.mxu1 %v6102_v27 }
0x21ae   :  { %4638 = vmatprep.subr.bf16.mxu1 %v5257_v15 }
0x21af   :  { %4633 = vmatpush3.bf16.msra.mxu0 %v6225_v56 }
0x21b0   :  { %4646 = vmatprep.subr.bf16.mxu0 %v5257_v15 }
0x21b2   :  { %4635 = vmatmul.mubr.msk.bf16.vlgmr.msra.gmra.mrb[84].mxu0 %vm169_vm0, %v6149_v54 }
0x21b3   :  { %4647 = vmatpush3.bf16.msra.mxu0 %v5967_v50  ;;  %4650 = vmatprep.mubr.msk.bf16.mxu0 %vm5258_vm1, %v5257_v15 }
0x21b4   :  { %4648 = vmatprep.subr.bf16.mxu0 %v5257_v15 }
0x21b7   :  { %4649 = vmatpush3.bf16.msra.mxu0 %v5976_v51 }
0x21b8   :  { %4662 = vmatprep.subr.bf16.mxu0 %v5257_v15 }
0x227b   :  { %v2772_v6 = vpop.f32.mrb[84].mxu1 }
0x227c   :  { %v2773_v26 = vadd.f32 %v2772_v6, %v6177_v23  ;;  %v4612_v45 = vpop.f32.mrb[85].mxu1  ;;  %v6265_v6 = vld [vmem:[%s6559_s2 + $0x10] sm:$0xff]  }
0x227d   :  { %v2775_v58 = vpop.f32.mrb[86].mxu1  ;;  %v6238_v43 = vpop.f32.mrb[80].mxu0 }
0x227e   :  { %v2778_v54 = vadd.f32 %v6119_v37, %v2773_v26  ;;  %v4613_v13 = vpop.f32.mrb[87].mxu1  ;;  %v4620_v50 = vpop.f32.mrb[81].mxu0  ;;  %v6283_v58 = vld [vmem:[#allocation4] sm:$0xff]  }
0x227f   :  { %v2848_v17 = vpop.f32.mrb[82].mxu0  ;;  %v6300_v13 = vld [vmem:[#allocation4 + $0x10] sm:$0xff]  }
0x2280   :  { %4969 = vtanh.f32 %v2778_v54  ;;  %v4621_v19 = vpop.f32.mrb[83].mxu0  ;;  %v4069_v9 = vmul.f32 -1.442695, %v2778_v54  ;;  %v6293_v54 = vld [vmem:[#allocation4 + $0x8] sm:$0xff]  }
0x2285   :  { %v2963_v46 = vpop.f32.mrb[84].mxu0 }
0x2286   :  { %v2969_v24 = vadd.f32 %v2963_v46, %v5469_v22  ;;  %v4636_v51 = vpop.f32.mrb[85].mxu0 }
0x2287   :  { %v2966_v20 = vpop.f32.mrb[86].mxu0 }
0x2288   :  { %4971 = vtanh.f32 %v2969_v24  ;;  %v4637_v33 = vpop.f32.mrb[87].mxu0  ;;  %v4074_v35 = vmul.f32 -1.442695, %v2969_v24 }
0x2289   :  { %4973 = vpow2.f32 %v4069_v9 }
0x228a   :  { %v4970_v3 = vpop.eup %4969  ;;  %4975 = vpow2.f32 %v4074_v35 }
0x228b   :  { %2788 = vrot.lane.b32.xlu1 %v4970_v3, %s5251_s6 }
0x2292   :  { %v4972_v23 = vpop.eup %4971 }
0x2293   :  { %2979 = vrot.lane.b32.xlu0 %v4972_v23, %s5251_s6  ;;  %v4974_v12 = vpop.eup %4973 }
0x2294   :  { %v2782_v38 = vadd.f32 1.0, %v4974_v12  ;;  %v4976_v39 = vpop.eup %4975 }
0x2295   :  { %v2973_v60 = vadd.f32 1.0, %v4976_v39 }
0x2296   :  { %4977 = vrcp.f32 %v2782_v38 }
0x2297   :  { %4979 = vrcp.f32 %v2973_v60 }
0x22a0   :  { %v4978_v22 = vpop.eup %4977 }
0x22a1   :  { %v4980_v42 = vpop.eup %4979  ;;  %v2786_v62 = vmul.f32 %v4978_v22, %v6128_v2  ;;  %v2995_v2 = vpack.c.bf16 %v6196_v53, %v6196_v53  ;;  %v6274_v53 = vld [vmem:[%s6559_s2 + $0x18] sm:$0xff]  }
0x22a2   :  { %v2977_v5 = vmul.f32 %v4980_v42, %v6132_v63 }
0x22fd   :  { %v2789_v14 = vpop.permute.xlu1 %2788 }
0x22fe   :  { %v2791_v34 = vmul.f32 %v4978_v22, %v2789_v14 }
0x2300   :  { %2793 = vrot.lane.b32.xlu1 %v2791_v34, %s5259_s17 }
0x2305   :  { %v2980_v32 = vpop.permute.xlu0 %2979 }
0x2306   :  { %v2982_v49 = vmul.f32 %v4980_v42, %v2980_v32 }
0x2308   :  { %2984 = vrot.lane.b32.xlu0 %v2982_v49, %s5259_s17 }
0x2372   :  { %v2794_v10 = vpop.permute.xlu1 %2793 }
0x2373   :  { %v6247_v0 = vadd.f32 %v2794_v10, %v2786_v62 }
0x2375   :  { %4981 = vtanh.f32 %v6247_v0 }
0x237a   :  { %v2985_v28 = vpop.permute.xlu0 %2984 }
0x237b   :  { %v6251_v41 = vadd.f32 %v2985_v28, %v2977_v5 }
0x237d   :  { %4983 = vtanh.f32 %v6251_v41 }
0x237f   :  { %v4982_v1 = vpop.eup %4981 }
0x2380   :  { %2799 = vrot.lane.b32.xlu1 %v4982_v1, %s5251_s6 }
0x2387   :  { %v4984_v55 = vpop.eup %4983 }
0x2388   :  { %2990 = vrot.lane.b32.xlu0 %v4984_v55, %s5251_s6 }
0x238c   :  { %2997 = vrot.lane.b32.xlu0 %v2995_v2, %s5259_s17 }
0x23f2   :  { %v2800_v48 = vpop.permute.xlu1 %2799 }
0x23f3   :  { %v2802_v18 = vmul.f32 %v4978_v22, %v2800_v48 }
0x23f5   :  { %v2803_v11 = vpack.c.bf16 %v2802_v18, %v2802_v18  ;;  %v2927_v18 = vld [vmem:[%s6557_s0 + $0x30] sm:$0xff] }
0x23f7   :  { %2852 = vrot.lane.b32.xlu1 %v2803_v11, %s5259_s17 }
0x23fa   :  { %v2991_v63 = vpop.permute.xlu0 %2990 }
0x23fb   :  { %v2993_v40 = vmul.f32 %v4980_v42, %v2991_v63 }
0x23fd   :  { %v2994_v47 = vpack.c.bf16 %v2993_v40, %v2993_v40 }
0x23fe   :  { %v2998_v26 = vpop.permute.xlu0 %2997 }
0x23ff   :  { %3043 = vrot.lane.b32.xlu1 %v2994_v47, %s5259_s17 }
0x2469   :  { %v2853_v4 = vpop.permute.xlu1 %2852 }
0x246a   :  { %4627 = vmatmul.mubr.msk.bf16.vlgmr.msra.gmra.mrb[88].mxu1 %vm169_vm0, %v2853_v4 }
0x246b   :  { %4639 = vmatpush3.bf16.msra.mxu1 %v6265_v6  ;;  %4642 = vmatprep.mubr.msk.bf16.mxu1 %vm5258_vm1, %v5257_v15 }
0x246c   :  { %4640 = vmatprep.subr.bf16.mxu1 %v5257_v15 }
0x246f   :  { %4641 = vmatpush3.bf16.msra.mxu1 %v6274_v53 }
0x2470   :  { %4654 = vmatprep.subr.bf16.mxu1 %v5257_v15 }
0x2471   :  { %v6278_v45 = vpop.permute.xlu1 %3043 }
0x2472   :  { %4643 = vmatmul.mubr.msk.bf16.vlgmr.msra.gmra.mrb[92].mxu1 %vm169_vm0, %v2998_v26  ;;  %4651 = vmatmul.mubr.msk.bf16.vlgmr.msra.gmra.mrb[88].mxu0 %vm169_vm0, %v6278_v45 }
0x2473   :  { %4655 = vmatpush3.bf16.msra.mxu1 %v6283_v58  ;;  %4658 = vmatprep.mubr.msk.bf16.mxu1 %vm5258_vm1, %v5257_v15 }
0x2474   :  { %4656 = vmatprep.subr.bf16.mxu1 %v5257_v15  ;;  %4663 = vmatpush3.bf16.msra.mxu0 %v6023_v21  ;;  %v6306_v21 = vld [vmem:[#allocation4 + $0x18] sm:$0xff]  }
0x2475   :  { %4664 = vmatprep.subr.bf16.mxu0 %v5257_v15  ;;  %4666 = vmatprep.mubr.msk.bf16.mxu0 %vm5258_vm1, %v5257_v15 }
0x2477   :  { %4657 = vmatpush3.bf16.msra.mxu1 %v6293_v54 }
0x2478   :  { %4670 = vmatprep.subr.bf16.mxu1 %v5257_v15  ;;  %4665 = vmatpush3.bf16.msra.mxu0 %v6034_v8 }
0x2479   :  { %4678 = vmatprep.subr.bf16.mxu0 %v5257_v15 }
0x247a   :  { %4659 = vmatmul.mubr.msk.bf16.vlgmr.msra.gmra.mrb[96].mxu1 %vm169_vm0, %v2853_v4 }
0x247b   :  { %4671 = vmatpush3.bf16.msra.mxu1 %v6300_v13  ;;  %4674 = vmatprep.mubr.msk.bf16.mxu1 %vm5258_vm1, %v5257_v15 }
0x247c   :  { %4672 = vmatprep.subr.bf16.mxu1 %v5257_v15 }
0x247f   :  { %4673 = vmatpush3.bf16.msra.mxu1 %v6306_v21 }
0x2480   :  { %4686 = vmatprep.subr.bf16.mxu1 %v5257_v15 }
0x253d   :  { %v2891_v8 = vpop.f32.mrb[88].mxu1 }
0x253e   :  { %v2892_v50 = vadd.f32 %v2891_v8, %v6238_v43  ;;  %v4628_v17 = vpop.f32.mrb[89].mxu1 }
0x253f   :  { %v2894_v19 = vpop.f32.mrb[90].mxu1 }
0x2540   :  { %v2897_v46 = vadd.f32 %v6046_v31, %v2892_v50  ;;  %v4629_v24 = vpop.f32.mrb[91].mxu1 }
0x2542   :  { %4985 = vtanh.f32 %v2897_v46  ;;  %v4072_v42 = vmul.f32 -1.442695, %v2897_v46 }
0x2545   :  { %v3036_v51 = vpop.f32.mrb[92].mxu1  ;;  %v3082_v20 = vpop.f32.mrb[88].mxu0 }
0x2546   :  { %v3083_v33 = vadd.f32 %v3082_v20, %v3036_v51  ;;  %v4644_v3 = vpop.f32.mrb[93].mxu1  ;;  %v4652_v23 = vpop.f32.mrb[89].mxu0 }
0x2547   :  { %v3039_v9 = vpop.f32.mrb[94].mxu1  ;;  %v3085_v35 = vpop.f32.mrb[90].mxu0 }
0x2548   :  { %v3088_v12 = vadd.f32 %v6052_v16, %v3083_v33  ;;  %v4645_v38 = vpop.f32.mrb[95].mxu1  ;;  %v4653_v39 = vpop.f32.mrb[91].mxu0 }
0x254a   :  { %4987 = vtanh.f32 %v3088_v12  ;;  %v4077_v32 = vmul.f32 -1.442695, %v3088_v12 }
0x254b   :  { %4989 = vpow2.f32 %v4072_v42 }
0x254c   :  { %v4986_v60 = vpop.eup %4985  ;;  %4991 = vpow2.f32 %v4077_v32 }
0x254d   :  { %2907 = vrot.lane.b32.xlu1 %v4986_v60, %s5251_s6  ;;  %v6314_v43 = vpop.f32.mrb[96].mxu1 }
0x254e   :  { %v4660_v31 = vpop.f32.mrb[97].mxu1 }
0x254f   :  { %v3156_v22 = vpop.f32.mrb[98].mxu1 }
0x2550   :  { %v4661_v14 = vpop.f32.mrb[99].mxu1 }
0x2554   :  { %v4988_v34 = vpop.eup %4987 }
0x2555   :  { %3098 = vrot.lane.b32.xlu0 %v4988_v34, %s5251_s6  ;;  %v4990_v49 = vpop.eup %4989 }
0x2556   :  { %v2901_v16 = vadd.f32 1.0, %v4990_v49  ;;  %v4992_v62 = vpop.eup %4991 }
0x2557   :  { %v3092_v10 = vadd.f32 1.0, %v4992_v62 }
0x2558   :  { %4993 = vrcp.f32 %v2901_v16 }
0x2559   :  { %4995 = vrcp.f32 %v3092_v10 }
0x2562   :  { %v4994_v5 = vpop.eup %4993 }
0x2563   :  { %v4996_v55 = vpop.eup %4995  ;;  %v2905_v47 = vmul.f32 %v4994_v5, %v6190_v44 }
0x2564   :  { %v3096_v11 = vmul.f32 %v4996_v55, %v6188_v36 }
0x25bf   :  { %v2908_v28 = vpop.permute.xlu1 %2907 }
0x25c0   :  { %v2910_v1 = vmul.f32 %v4994_v5, %v2908_v28 }
0x25c2   :  { %2912 = vrot.lane.b32.xlu1 %v2910_v1, %s5259_s17 }
0x25c6   :  { %3114 = vrot.lane.b32.xlu1 %v2927_v18, %s5260_s14 }
0x25c7   :  { %v3099_v2 = vpop.permute.xlu0 %3098 }
0x25c8   :  { %v3101_v48 = vmul.f32 %v4996_v55, %v3099_v2 }
0x25ca   :  { %3103 = vrot.lane.b32.xlu0 %v3101_v48, %s5259_s17 }
0x2634   :  { %v2913_v63 = vpop.permute.xlu1 %2912 }
0x2635   :  { %v6327_v26 = vadd.f32 %v2913_v63, %v2905_v47 }
0x2638   :  { %v3115_v36 = vpop.permute.xlu1 %3114 }
0x263c   :  { %v3104_v40 = vpop.permute.xlu0 %3103 }
0x263d   :  { %v6325_v4 = vadd.f32 %v3104_v40, %v3096_v11 }
0x263f   :  { %4997 = vtanh.f32 %v6325_v4 }
0x2640   :  { %4999 = vtanh.f32 %v6327_v26 }
0x2649   :  { %v4998_v8 = vpop.eup %4997 }
0x264a   :  { %3109 = vrot.lane.b32.xlu0 %v4998_v8, %s5251_s6  ;;  %v5000_v50 = vpop.eup %4999 }
0x264e   :  { %2918 = vrot.lane.b32.xlu0 %v5000_v50, %s5251_s6 }
0x26bc   :  { %v3110_v17 = vpop.permute.xlu0 %3109 }
0x26bd   :  { %v6333_v19 = vmul.f32 %v4996_v55, %v3110_v17 }
0x26bf   :  { %v3117_v44 = vadd.f32 %v3115_v36, %v6333_v19  ;;  %v3422_v36 = vpack.c.bf16 %v6333_v19, %v6333_v19 }
0x26c0   :  { %v2919_v46 = vpop.permute.xlu0 %2918 }
0x26c1   :  { %v3118_v24 = vpack.c.bf16 %v3117_v44, %v3117_v44  ;;  %v6336_v51 = vmul.f32 %v4994_v5, %v2919_v46 }
0x26c3   :  { %v3231_v20 = vpack.c.bf16 %v6336_v51, %v6336_v51  ;;  %3160 = vrot.lane.b32.xlu1 %v3118_v24, %s5259_s17 }
0x26c5   :  { %3233 = vrot.lane.b32.xlu0 %v3231_v20, %s5259_s17 }
0x2735   :  { %v3161_v33 = vpop.permute.xlu1 %3160 }
0x2736   :  { %4667 = vmatmul.mubr.msk.bf16.vlgmr.msra.gmra.mrb[92].mxu0 %vm169_vm0, %v3161_v33 }
0x2737   :  { %v3234_v3 = vpop.permute.xlu0 %3233  ;;  %4679 = vmatpush3.bf16.msra.mxu0 %v6088_v30  ;;  %4682 = vmatprep.mubr.msk.bf16.mxu0 %vm5258_vm1, %v5257_v15  ;;  %v5074_v30 = vld [vmem:[%s6558_s1 + $0x10] sm:$0xff]  }
0x2738   :  { %4675 = vmatmul.mubr.msk.bf16.vlgmr.msra.gmra.mrb[100].mxu1 %vm169_vm0, %v3234_v3  ;;  %4680 = vmatprep.subr.bf16.mxu0 %v5257_v15 }
0x2739   :  { %4687 = vmatpush3.bf16.msra.mxu1 %v6214_v7  ;;  %4690 = vmatprep.mubr.msk.bf16.mxu1 %vm5258_vm1, %v5257_v15 }
0x273a   :  { %4688 = vmatprep.subr.bf16.mxu1 %v5257_v15 }
0x273b   :  { %4681 = vmatpush3.bf16.msra.mxu0 %v6102_v27  ;;  %v5075_v27 = vld [vmem:[%s6558_s1 + $0x18] sm:$0xff]  }
0x273c   :  { %4694 = vmatprep.subr.bf16.mxu0 %v5257_v15 }
0x273d   :  { %4689 = vmatpush3.bf16.msra.mxu1 %v6225_v56 }
0x273e   :  { %4702 = vmatprep.subr.bf16.mxu1 %v5257_v15 }
0x2740   :  { %4691 = vmatmul.mubr.msk.bf16.vlgmr.msra.gmra.mrb[104].mxu1 %vm169_vm0, %v6278_v45 }
0x2741   :  { %4703 = vmatpush3.bf16.msra.mxu1 %v5074_v30  ;;  %4706 = vmatprep.mubr.msk.bf16.mxu1 %vm5258_vm1, %v5257_v15 }
0x2742   :  { %4704 = vmatprep.subr.bf16.mxu1 %v5257_v15 }
0x2745   :  { %4705 = vmatpush3.bf16.msra.mxu1 %v5075_v27 }
0x2746   :  { %4718 = vmatprep.subr.bf16.mxu1 %v5257_v15 }
0x2809   :  { %v3199_v7 = vpop.f32.mrb[92].mxu0 }
0x280a   :  { %v3200_v56 = vadd.f32 %v3199_v7, %v6314_v43  ;;  %v4668_v45 = vpop.f32.mrb[93].mxu0 }
0x280b   :  { %v3202_v23 = vpop.f32.mrb[94].mxu0  ;;  %v6369_v9 = vpop.f32.mrb[100].mxu1 }
0x280c   :  { %v3205_v35 = vadd.f32 %v6119_v37, %v3200_v56  ;;  %v4669_v12 = vpop.f32.mrb[95].mxu0  ;;  %v4676_v38 = vpop.f32.mrb[101].mxu1 }
0x280d   :  { %v3275_v39 = vpop.f32.mrb[102].mxu1 }
0x280e   :  { %5001 = vtanh.f32 %v3205_v35  ;;  %v4677_v60 = vpop.f32.mrb[103].mxu1  ;;  %v4080_v49 = vmul.f32 -1.442695, %v3205_v35  ;;  %v5078_v39 = vld [vmem:[%s6560_s3 + $0x1] ss:$0 sm:$0xff] }
0x2813   :  { %v3390_v31 = vpop.f32.mrb[104].mxu1 }
0x2814   :  { %v3396_v22 = vadd.f32 %v3390_v31, %v5475_v29  ;;  %v4692_v14 = vpop.f32.mrb[105].mxu1 }
0x2815   :  { %v3393_v34 = vpop.f32.mrb[106].mxu1 }
0x2816   :  { %5003 = vtanh.f32 %v3396_v22  ;;  %v4693_v42 = vpop.f32.mrb[107].mxu1  ;;  %v4085_v37 = vmul.f32 -1.442695, %v3396_v22 }
0x2817   :  { %5005 = vpow2.f32 %v4080_v49 }
0x2818   :  { %v5002_v32 = vpop.eup %5001  ;;  %5007 = vpow2.f32 %v4085_v37  ;;  %v6427_v37 = vld [vmem:[#allocation7 + $0x1] ss:$0 sm:$0xff] }
0x2819   :  { %3215 = vrot.lane.b32.xlu1 %v5002_v32, %s5251_s6 }
0x2820   :  { %v5004_v43 = vpop.eup %5003 }
0x2821   :  { %3406 = vrot.lane.b32.xlu0 %v5004_v43, %s5251_s6  ;;  %v5006_v16 = vpop.eup %5005 }
0x2822   :  { %v3209_v62 = vadd.f32 1.0, %v5006_v16  ;;  %v5008_v10 = vpop.eup %5007 }
0x2823   :  { %v3400_v5 = vadd.f32 1.0, %v5008_v10 }
0x2824   :  { %5009 = vrcp.f32 %v3209_v62 }
0x2825   :  { %5011 = vrcp.f32 %v3400_v5 }
0x282e   :  { %v5010_v29 = vpop.eup %5009 }
0x282f   :  { %v5012_v55 = vpop.eup %5011  ;;  %v3213_v18 = vmul.f32 %v5010_v29, %v6247_v0 }
0x2830   :  { %v3404_v40 = vmul.f32 %v5012_v55, %v6251_v41 }
0x288b   :  { %v3216_v28 = vpop.permute.xlu1 %3215 }
0x288c   :  { %v3218_v1 = vmul.f32 %v5010_v29, %v3216_v28 }
0x288e   :  { %3220 = vrot.lane.b32.xlu1 %v3218_v1, %s5259_s17 }
0x2893   :  { %v3407_v2 = vpop.permute.xlu0 %3406 }
0x2894   :  { %v3409_v48 = vmul.f32 %v5012_v55, %v3407_v2 }
0x2896   :  { %3411 = vrot.lane.b32.xlu0 %v3409_v48, %s5259_s17 }
0x2900   :  { %v3221_v11 = vpop.permute.xlu1 %3220 }
0x2901   :  { %v6378_v63 = vadd.f32 %v3221_v11, %v3213_v18 }
0x2903   :  { %5013 = vtanh.f32 %v6378_v63 }
0x2908   :  { %v3412_v47 = vpop.permute.xlu0 %3411 }
0x2909   :  { %v3414_v8 = vadd.f32 %v3412_v47, %v3404_v40 }
0x290b   :  { %5015 = vtanh.f32 %v3414_v8 }
0x290d   :  { %v5014_v50 = vpop.eup %5013 }
0x290e   :  { %3226 = vrot.lane.b32.xlu1 %v5014_v50, %s5251_s6 }
0x2915   :  { %v5016_v17 = vpop.eup %5015 }
0x2916   :  { %3417 = vrot.lane.b32.xlu0 %v5016_v17, %s5251_s6 }
0x291a   :  { %3424 = vrot.lane.b32.xlu0 %v3422_v36, %s5259_s17 }
0x2980   :  { %v3227_v0 = vpop.permute.xlu1 %3226 }
0x2981   :  { %v3229_v44 = vmul.f32 %v5010_v29, %v3227_v0  ;;  %v3354_v29 = vld [vmem:[%s6557_s0 + $0x38] sm:$0xff] }
0x2983   :  { %v3230_v46 = vpack.c.bf16 %v3229_v44, %v3229_v44 }
0x2985   :  { %3279 = vrot.lane.b32.xlu1 %v3230_v46, %s5259_s17 }
0x2988   :  { %v3418_v41 = vpop.permute.xlu0 %3417 }
0x2989   :  { %v3420_v24 = vmul.f32 %v5012_v55, %v3418_v41 }
0x298b   :  { %v3421_v20 = vpack.c.bf16 %v3420_v24, %v3420_v24 }
0x298c   :  { %v3425_v19 = vpop.permute.xlu0 %3424 }
0x298d   :  { %3470 = vrot.lane.b32.xlu1 %v3421_v20, %s5259_s17 }
0x29f7   :  { %v3280_v33 = vpop.permute.xlu1 %3279 }
0x29f8   :  { %4683 = vmatmul.mubr.msk.bf16.vlgmr.msra.gmra.mrb[96].mxu0 %vm169_vm0, %v3280_v33 }
0x29f9   :  { %4695 = vmatpush3.bf16.msra.mxu0 %v6265_v6  ;;  %4698 = vmatprep.mubr.msk.bf16.mxu0 %vm5258_vm1, %v5257_v15  ;;  %v5076_v6 = vld [vmem:[%s6561_s4] sm:$0xff]  }
0x29fa   :  { %4696 = vmatprep.subr.bf16.mxu0 %v5257_v15 }
0x29fd   :  { %4697 = vmatpush3.bf16.msra.mxu0 %v6274_v53  ;;  %v5077_v53 = vld [vmem:[%s6561_s4 + $0x8] sm:$0xff]  }
0x29fe   :  { %4710 = vmatprep.subr.bf16.mxu0 %v5257_v15 }
0x29ff   :  { %v3471_v3 = vpop.permute.xlu1 %3470 }
0x2a00   :  { %4699 = vmatmul.mubr.msk.bf16.vlgmr.msra.gmra.mrb[100].mxu0 %vm169_vm0, %v3425_v19  ;;  %4707 = vmatmul.mubr.msk.bf16.vlgmr.msra.gmra.mrb[108].mxu1 %vm169_vm0, %v3471_v3 }
0x2a01   :  { %4711 = vmatpush3.bf16.msra.mxu0 %v6283_v58  ;;  %4714 = vmatprep.mubr.msk.bf16.mxu0 %vm5258_vm1, %v5257_v15 }
0x2a02   :  { %4712 = vmatprep.subr.bf16.mxu0 %v5257_v15  ;;  %4719 = vmatpush3.bf16.msra.mxu1 %v5076_v6  ;;  %v5081_v6 = vld [vmem:[%s6561_s4 + $0x18] sm:$0xff]  }
0x2a03   :  { %4720 = vmatprep.subr.bf16.mxu1 %v5257_v15  ;;  %4722 = vmatprep.mubr.msk.bf16.mxu1 %vm5258_vm1, %v5257_v15 }
0x2a05   :  { %4713 = vmatpush3.bf16.msra.mxu0 %v6293_v54 }
0x2a06   :  { %4721 = vmatpush3.bf16.msra.mxu1 %v5077_v53  ;;  %4726 = vmatprep.subr.bf16.mxu0 %v5257_v15 }
0x2a07   :  { %4734 = vmatprep.subr.bf16.mxu1 %v5257_v15 }
0x2a08   :  { %4715 = vmatmul.mubr.msk.bf16.vlgmr.msra.gmra.mrb[104].mxu0 %vm169_vm0, %v3280_v33 }
0x2a09   :  { %4727 = vmatpush3.bf16.msra.mxu0 %v6300_v13  ;;  %4730 = vmatprep.mubr.msk.bf16.mxu0 %vm5258_vm1, %v5257_v15 }
0x2a0a   :  { %4728 = vmatprep.subr.bf16.mxu0 %v5257_v15 }
0x2a0d   :  { %4729 = vmatpush3.bf16.msra.mxu0 %v6306_v21 }
0x2acb   :  { %v3318_v58 = vpop.f32.mrb[96].mxu0 }
0x2acc   :  { %v3319_v54 = vadd.f32 %v3318_v58, %v6369_v9  ;;  %v4684_v30 = vpop.f32.mrb[97].mxu0 }
0x2acd   :  { %v3321_v27 = vpop.f32.mrb[98].mxu0 }
0x2ace   :  { %v4685_v7 = vpop.f32.mrb[99].mxu0  ;;  %v3324_v16 = vadd.f32 %v6427_v37, %v3319_v54 }
0x2ad0   :  { %v4083_v1 = vmul.f32 -1.442695, %v3324_v16 }
0x2ad3   :  { %v3463_v56 = vpop.f32.mrb[100].mxu0  ;;  %v3509_v45 = vpop.f32.mrb[108].mxu1 }
0x2ad4   :  { %v3510_v23 = vadd.f32 %v3509_v45, %v3463_v56  ;;  %v4700_v35 = vpop.f32.mrb[101].mxu0  ;;  %v4708_v12 = vpop.f32.mrb[109].mxu1  ;;  %v5082_v56 = vld [vmem:[#allocation7] ss:$0 sm:$0xff] }
0x2ad5   :  { %v3466_v38 = vpop.f32.mrb[102].mxu0  ;;  %v3512_v13 = vpop.f32.mrb[110].mxu1 }
0x2ad6   :  { %v3515_v60 = vadd.f32 %v5078_v39, %v3510_v23  ;;  %v4701_v31 = vpop.f32.mrb[103].mxu0  ;;  %v4709_v21 = vpop.f32.mrb[111].mxu1 }
0x2ad8   :  { %5017 = vtanh.f32 %v3515_v60  ;;  %v4088_v32 = vmul.f32 -1.442695, %v3515_v60 }
0x2ada   :  { %5019 = vpow2.f32 %v4088_v32 }
0x2adb   :  { %v6424_v22 = vpop.f32.mrb[104].mxu0 }
0x2adc   :  { %v4716_v9 = vpop.f32.mrb[105].mxu0 }
0x2add   :  { %v3583_v14 = vpop.f32.mrb[106].mxu0 }
0x2ade   :  { %v4717_v34 = vpop.f32.mrb[107].mxu0 }
0x2ae2   :  { %v5018_v42 = vpop.eup %5017 }
0x2ae3   :  { %3525 = vrot.lane.b32.xlu0 %v5018_v42, %s5251_s6 }
0x2ae4   :  { %v5020_v43 = vpop.eup %5019 }
0x2ae5   :  { %v3519_v49 = vadd.f32 1.0, %v5020_v43 }
0x2ae7   :  { %5021 = vrcp.f32 %v3519_v49 }
0x2ae8   :  { %5023 = vtanh.f32 %v3324_v16 }
0x2ae9   :  { %5025 = vpow2.f32 %v4083_v1 }
0x2af1   :  { %v5022_v62 = vpop.eup %5021 }
0x2af2   :  { %v5024_v28 = vpop.eup %5023  ;;  %v3523_v48 = vmul.f32 %v5022_v62, %v6325_v4 }
0x2af3   :  { %v5026_v55 = vpop.eup %5025 }
0x2af4   :  { %v3328_v2 = vadd.f32 1.0, %v5026_v55 }
0x2af6   :  { %5027 = vrcp.f32 %v3328_v2 }
0x2b00   :  { %v5028_v47 = vpop.eup %5027 }
0x2b01   :  { %v3332_v36 = vmul.f32 %v5028_v47, %v6327_v26  ;;  %v5080_v26 = vld [vmem:[%s6561_s4 + $0x10] sm:$0xff]  }
0x2b55   :  { %v3526_v10 = vpop.permute.xlu0 %3525 }
0x2b56   :  { %v3528_v5 = vmul.f32 %v5022_v62, %v3526_v10 }
0x2b58   :  { %3530 = vrot.lane.b32.xlu1 %v3528_v5, %s5259_s17 }
0x2b5c   :  { %3541 = vrot.lane.b32.xlu1 %v3354_v29, %s5260_s14 }
0x2b60   :  { %3334 = vrot.lane.b32.xlu1 %v5024_v28, %s5251_s6 }
0x2bca   :  { %v3531_v18 = vpop.permute.xlu1 %3530 }
0x2bcb   :  { %v3533_v11 = vadd.f32 %v3531_v18, %v3523_v48 }
0x2bcd   :  { %5029 = vtanh.f32 %v3533_v11 }
0x2bce   :  { %v3542_v40 = vpop.permute.xlu1 %3541 }
0x2bd2   :  { %v3335_v8 = vpop.permute.xlu1 %3334 }
0x2bd3   :  { %v3337_v50 = vmul.f32 %v5028_v47, %v3335_v8 }
0x2bd5   :  { %3339 = vrot.lane.b32.xlu1 %v3337_v50, %s5259_s17 }
0x2bd7   :  { %v5030_v17 = vpop.eup %5029 }
0x2bd8   :  { %3536 = vrot.lane.b32.xlu0 %v5030_v17, %s5251_s6 }
0x2c47   :  { %v3340_v0 = vpop.permute.xlu1 %3339 }
0x2c48   :  { %v6440_v44 = vadd.f32 %v3340_v0, %v3332_v36  ;;  %v4792_v0 = vld [vmem:[%s6564_s7 + $0x8] sm:$0xff]  }
0x2c4a   :  { %5031 = vtanh.f32 %v6440_v44  ;;  %v3537_v4 = vpop.permute.xlu0 %3536 }
0x2c4b   :  { %v3539_v46 = vmul.f32 %v5022_v62, %v3537_v4 }
0x2c4d   :  { %v3544_v41 = vadd.f32 %v3542_v40, %v3539_v46 }
0x2c4f   :  { %v3545_v24 = vpack.c.bf16 %v3544_v41, %v3544_v41 }
0x2c51   :  { %3587 = vrot.lane.b32.xlu0 %v3545_v24, %s5259_s17 }
0x2c54   :  { %v5032_v20 = vpop.eup %5031 }
0x2c55   :  { %3345 = vrot.lane.b32.xlu1 %v5032_v20, %s5251_s6 }
0x2cc3   :  { %v3588_v33 = vpop.permute.xlu0 %3587 }
0x2cc4   :  { %4723 = vmatmul.mubr.msk.bf16.vlgmr.msra.gmra.mrb[112].mxu1 %vm169_vm0, %v3588_v33 }
0x2cc5   :  { %4735 = vmatpush3.bf16.msra.mxu1 %v5080_v26  ;;  %4738 = vmatprep.mubr.msk.bf16.mxu1 %vm5258_vm1, %v5257_v15 }
0x2cc6   :  { %4736 = vmatprep.subr.bf16.mxu1 %v5257_v15 }
0x2cc7   :  { %v3346_v19 = vpop.permute.xlu1 %3345 }
0x2cc8   :  { %v3348_v3 = vmul.f32 %v5028_v47, %v3346_v19 }
0x2cc9   :  { %4737 = vmatpush3.bf16.msra.mxu1 %v5081_v6 }
0x2cca   :  { %v3658_v53 = vpack.c.bf16 %v3348_v3, %v3348_v3 }
0x2ccc   :  { %3660 = vrot.lane.b32.xlu1 %v3658_v53, %s5259_s17 }
0x2d3e   :  { %v3661_v58 = vpop.permute.xlu1 %3660 }
0x2d3f   :  { %4731 = vmatmul.mubr.msk.bf16.vlgmr.msra.gmra.mrb[108].mxu0 %vm169_vm0, %v3661_v58 }
0x2d97   :  { %v3626_v54 = vpop.f32.mrb[112].mxu1 }
0x2d98   :  { %v3627_v30 = vadd.f32 %v3626_v54, %v6424_v22  ;;  %v4724_v27 = vpop.f32.mrb[113].mxu1 }
0x2d99   :  { %v3629_v7 = vpop.f32.mrb[114].mxu1 }
0x2d9a   :  { %v3632_v15 = vadd.f32 %v5082_v56, %v3627_v30  ;;  %v4725_v45 = vpop.f32.mrb[115].mxu1 }
0x2d9c   :  { %5033 = vtanh.f32 %v3632_v15  ;;  %v4091_v35 = vmul.f32 -1.442695, %v3632_v15 }
0x2d9e   :  { %5035 = vpow2.f32 %v4091_v35 }
0x2da6   :  { %v5034_v23 = vpop.eup %5033 }
0x2da7   :  { %3642 = vrot.lane.b32.xlu0 %v5034_v23, %s5251_s6 }
0x2da8   :  { %v5036_v12 = vpop.eup %5035 }
0x2da9   :  { %v3636_v38 = vadd.f32 1.0, %v5036_v12 }
0x2dab   :  { %5037 = vrcp.f32 %v3636_v38 }
0x2db5   :  { %v5038_v21 = vpop.eup %5037 }
0x2db6   :  { %v3640_v14 = vmul.f32 %v5038_v21, %v6378_v63 }
0x2e12   :  { %v3699_v13 = vpop.f32.mrb[108].mxu0 }
0x2e13   :  { %v4732_v39 = vpop.f32.mrb[109].mxu0 }
0x2e14   :  { %v3702_v60 = vpop.f32.mrb[110].mxu0 }
0x2e15   :  { %v4733_v31 = vpop.f32.mrb[111].mxu0 }
0x2e19   :  { %v3643_v22 = vpop.permute.xlu0 %3642 }
0x2e1a   :  { %v3645_v9 = vmul.f32 %v5038_v21, %v3643_v22 }
0x2e1c   :  { %3647 = vrot.lane.b32.xlu0 %v3645_v9, %s5259_s17 }
0x2e8e   :  { %v3648_v34 = vpop.permute.xlu0 %3647 }
0x2e8f   :  { %v6461_v42 = vadd.f32 %v3648_v34, %v3640_v14 }
0x2e91   :  { %5039 = vtanh.f32 %v6461_v42 }
0x2e9b   :  { %v5040_v32 = vpop.eup %5039 }
0x2e9c   :  { %3653 = vrot.lane.b32.xlu0 %v5040_v32, %s5251_s6 }
0x2f0e   :  { %v3654_v43 = vpop.permute.xlu0 %3653 }
0x2f0f   :  { %v3656_v49 = vmul.f32 %v5038_v21, %v3654_v43 }
0x2f11   :  { %v3657_v16 = vpack.c.bf16 %v3656_v49, %v3656_v49 }
0x2f13   :  { %3706 = vrot.lane.b32.xlu0 %v3657_v16, %s5259_s17 }
0x2f85   :  { %v3707_v62 = vpop.permute.xlu0 %3706 }
0x2f86   :  { %4739 = vmatmul.mubr.msk.bf16.vlgmr.msra.gmra.mrb[116].mxu1 %vm169_vm0, %v3707_v62 }
0x3059   :  { %v3745_v10 = vpop.f32.mrb[116].mxu1 }
0x305a   :  { %v3746_v5 = vadd.f32 %v3745_v10, %v3699_v13  ;;  %v4740_v29 = vpop.f32.mrb[117].mxu1 }
0x305b   :  { %v3748_v63 = vpop.f32.mrb[118].mxu1 }
0x305c   :  { %v3751_v28 = vadd.f32 %v6427_v37, %v3746_v5  ;;  %v4741_v1 = vpop.f32.mrb[119].mxu1 }
0x305e   :  { %5041 = vtanh.f32 %v3751_v28  ;;  %v4094_v2 = vmul.f32 -1.442695, %v3751_v28 }
0x3060   :  { %5043 = vpow2.f32 %v4094_v2 }
0x3068   :  { %v5042_v55 = vpop.eup %5041 }
0x3069   :  { %3761 = vrot.lane.b32.xlu1 %v5042_v55, %s5251_s6 }
0x306a   :  { %v5044_v48 = vpop.eup %5043 }
0x306b   :  { %v3755_v18 = vadd.f32 1.0, %v5044_v48 }
0x306d   :  { %5045 = vrcp.f32 %v3755_v18 }
0x3077   :  { %v5046_v11 = vpop.eup %5045 }
0x3078   :  { %v3759_v37 = vmul.f32 %v5046_v11, %v6440_v44 }
0x30db   :  { %v3762_v40 = vpop.permute.xlu1 %3761 }
0x30dc   :  { %v3764_v47 = vmul.f32 %v5046_v11, %v3762_v40 }
0x30de   :  { %3766 = vrot.lane.b32.xlu0 %v3764_v47, %s5259_s17 }
0x30e2   :  { %788 = vrot.lane.b32.xlu0 %v5698_v52, %s5259_s17 }
0x30e6   :  { %1642 = vrot.lane.b32.xlu0 %v5942_v57, %s5259_s17  ;;  %v4791_v57 = vld [vmem:[%s6564_s7] sm:$0xff]   ;;  %s5261_s7 = smov [#allocation13]  }
0x30e7   :  { %4742 = vmatprep.subr.bf16.mxu0 %v4791_v57 }
0x30e8   :  { %4743 = vmatpush3.bf16.msra.mxu0 %v4791_v57 }
0x30e9   :  { %4744 = vmatprep.subr.bf16.mxu0 %v4792_v0 }
0x30ea   :  { %2496 = vrot.lane.b32.xlu0 %v6199_v59, %s5259_s17 }
0x30ec   :  { %4745 = vmatpush3.bf16.msra.mxu0 %v4792_v0 }
0x30ee   :  { %3350 = vrot.lane.b32.xlu0 %v3348_v3, %s5259_s17 }
0x30f2   :  { %3902 = vrot.lane.b32.xlu0 %v3656_v49, %s5259_s17 }
0x3150   :  { %v3767_v8 = vpop.permute.xlu0 %3766 }
0x3151   :  { %v3769_v50 = vadd.f32 %v3767_v8, %v3759_v37 }
0x3153   :  { %5047 = vtanh.f32 %v3769_v50  ;;  %3914 = vrot.lane.b32.xlu0 %v3769_v50, %s5260_s14 }
0x3154   :  { %v789_v17 = vpop.permute.xlu0 %788 }
0x3155   :  { %791 = vst.msk [vmem:[#allocation3] sm:$0xff] %vm169_vm0, %v789_v17 }
0x3158   :  { %v1643_v52 = vpop.permute.xlu0 %1642 }
0x3159   :  { %1645 = vst.msk [vmem:[#allocation3 + $0x10] sm:$0xff] %vm169_vm0, %v1643_v52 }
0x315c   :  { %v2497_v59 = vpop.permute.xlu0 %2496  ;;  %v3781_v33 = vld [vmem:[#allocation3] sm:$0xff] }
0x315d   :  { %v5048_v36 = vpop.eup %5047  ;;  %2499 = vst.msk [vmem:[#allocation3 + $0x20] sm:$0xff] %vm169_vm0, %v2497_v59 }
0x315e   :  { %3772 = vrot.lane.b32.xlu1 %v5048_v36, %s5251_s6  ;;  %s3936_s6 = sshll.u32 %s5261_s7, 4  ;;  %s3937_s6 = int_to_ptr.vmem [resolvable:$true] %s3936_s6 }
0x315f   :  { %p5176_p5 = scmp.lt.s32.totalorder %s3937_s6, %s3937_s6 }
0x3160   :  { %v3351_v44 = vpop.permute.xlu0 %3350  ;;  %v3783_v19 = vld [vmem:[#allocation3 + $0x10] sm:$0xff] }
0x3161   :  { %3353 = vst.msk [vmem:[#allocation3 + $0x30] sm:$0xff] %vm169_vm0, %v3351_v44 }
0x3162   :  { %1215 = vrot.lane.b32.xlu1 %v5805_v61, %s5259_s17 }
0x3164   :  { %v3903_v4 = vpop.permute.xlu0 %3902  ;;  %v3785_v53 = vld [vmem:[#allocation3 + $0x20] sm:$0xff] }
0x3165   :  { %3905 = vst.msk [vmem:[#allocation13] sm:$0xff] %vm169_vm0, %v3903_v4 }
0x3166   :  { %2069 = vrot.lane.b32.xlu1 %v6078_v25, %s5259_s17 }
0x3168   :  { %v3787_v7 = vld [vmem:[#allocation3 + $0x30] sm:$0xff] }
0x316a   :  { %2923 = vrot.lane.b32.xlu1 %v6336_v51, %s5259_s17 }
0x31c5   :  { %v3915_v46 = vpop.permute.xlu0 %3914 }
0x31c6   :  { %3918 = vst.msk [vmem:[#allocation15 + $0x8] sm:$0xff] %vm169_vm0, %v3915_v46 }
0x31d0   :  { %v3773_v41 = vpop.permute.xlu1 %3772 }
0x31d1   :  { %v3775_v24 = vmul.f32 %v5046_v11, %v3773_v41 }
0x31d3   :  { %3777 = vrot.lane.b32.xlu1 %v3775_v24, %s5259_s17  ;;  %s5171_s17 = scalar_lea.vmem %s3937_s6, 256 }
0x31d4   :  { %v1216_v20 = vpop.permute.xlu1 %1215  ;;  %p5172_p4 = scmp.ne.s32.totalorder %s3937_s6, %s5171_s17  ;;  %p5177_p6 = scmp.lt.s32.totalorder %s5171_s17, %s5171_s17 }
0x31d5   :  { %1218 = vst.msk [vmem:[#allocation3 + $0x8] sm:$0xff] %vm169_vm0, %v1216_v20 }
0x31d6   :  { %p5178_p7 = por %p5177_p6, %p5176_p5 }
0x31d7   :  { %3907 = vrot.lane.b32.xlu1 %v6461_v42, %s5260_s14 }
0x31d8   :  { %v2070_v61 = vpop.permute.xlu1 %2069  ;;  %p5179_p8 = pnand %p5178_p7, %p5172_p4 }
0x31d9   :  { %2072 = vst.msk [vmem:[#allocation3 + $0x18] sm:$0xff] %vm169_vm0, %v2070_v61 }
0x31dc   :  { %v2924_v25 = vpop.permute.xlu1 %2923  ;;  %v3782_v26 = vld [vmem:[#allocation3 + $0x8] sm:$0xff] }
0x31dd   :  { %2926 = vst.msk [vmem:[#allocation3 + $0x28] sm:$0xff] %vm169_vm0, %v2924_v25  ;;  %v3789_v51 = vpack.c.bf16 %v3782_v26, %v3781_v33 }
0x31df   :  { %4746 = vmatprep.mubr.msk.bf16.mxu0 %vm169_vm0, %v3789_v51 }
0x31e0   :  { %v3784_v3 = vld [vmem:[#allocation3 + $0x18] sm:$0xff] }
0x31e1   :  { %v3790_v6 = vpack.c.bf16 %v3784_v3, %v3783_v19 }
0x31e3   :  { %4747 = vmatmul.mubr.msk.bf16.vlgmr.msra.gmra.mrb[112].mxu0 %vm169_vm0, %v3790_v6 }
0x31e4   :  { %v3786_v58 = vld [vmem:[#allocation3 + $0x28] sm:$0xff] }
0x31e5   :  { %v3791_v54 = vpack.c.bf16 %v3786_v58, %v3785_v53 }
0x31e7   :  { %4750 = vmatprep.mubr.msk.bf16.mxu0 %vm169_vm0, %v3791_v54 }
0x3245   :  { %v3778_v30 = vpop.permute.xlu1 %3777 }
0x3246   :  { %3780 = vst.msk [vmem:[#allocation3 + $0x38] sm:$0xff] %vm169_vm0, %v3778_v30  ;;  %3912 = vst.msk [vmem:[#allocation13 + $0x8] sm:$0xff] %vm169_vm0, %v3778_v30 }
0x3249   :  { %v3908_v27 = vpop.permute.xlu1 %3907 }
0x324a   :  { %3910 = vst.msk [vmem:[#allocation15] sm:$0xff] %vm169_vm0, %v3908_v27 }
0x324d   :  { %v3788_v56 = vld [vmem:[#allocation3 + $0x38] sm:$0xff] }
0x324e   :  { %v3792_v15 = vpack.c.bf16 %v3788_v56, %v3787_v7 }
0x3250   :  { %4751 = vmatmul.mubr.msk.bf16.gmra.mrb[116].mxu0 %vm169_vm0, %v3792_v15 }
0x3251   :  { %5182 = shalt.err (!%p5179_p8)
}
0x3252   :  { %s5183_s27 = scalar_lea.hbm %s6569_s12, 256 }
0x3253   :  { %p5184_p9 = scmp.ne.s32.totalorder %s6569_s12, %s5183_s27  ;;  %p5187_p10 = scmp.lt.u32.totalorder %s5183_s27, %s6569_s12 }
0x3255   :  { %p5189_p11 = pnand %p5187_p10, %p5184_p9 }
0x3257   :  { %5192 = shalt.err (!%p5189_p11)
}
0x3258   :  { %3942 = dma.vmem_to_hbm [thread:$0]  %s3937_s6, 256, %s6569_s12, [#allocation14], %s5255_s8, %s5255_s8, %s5256_s19  }
0x3259   :  { %s5262_s23 = smov [#allocation15]  }
0x325a   :  { %s3948_s15 = sshll.u32 %s5262_s23, 4  ;;  %s3949_s15 = int_to_ptr.vmem [resolvable:$true] %s3948_s15 }
0x325b   :  { %s5193_s10 = scalar_lea.vmem %s3949_s15, 256  ;;  %p5198_p13 = scmp.lt.s32.totalorder %s3949_s15, %s3949_s15 }
0x325c   :  { %p5194_p12 = scmp.ne.s32.totalorder %s3949_s15, %s5193_s10  ;;  %p5199_p0 = scmp.lt.s32.totalorder %s5193_s10, %s5193_s10 }
0x325e   :  { %p5200_p1 = por %p5199_p0, %p5198_p13 }
0x3260   :  { %p5201_p2 = pnand %p5200_p1, %p5194_p12 }
0x3262   :  { %5204 = shalt.err (!%p5201_p2)
}
0x3263   :  { %s5205_s26 = scalar_lea.hbm %s6570_s13, 256 }
0x3264   :  { %p5206_p3 = scmp.ne.s32.totalorder %s6570_s13, %s5205_s26  ;;  %p5209_p4 = scmp.lt.u32.totalorder %s5205_s26, %s6570_s13 }
0x3266   :  { %p5211_p5 = pnand %p5209_p4, %p5206_p3 }
0x3268   :  { %5214 = shalt.err (!%p5211_p5)
}
0x3269   :  { %3954 = dma.vmem_to_hbm [thread:$0]  %s3949_s15, 256, %s6570_s13, [#allocation14], %s5255_s8, %s5255_s8, %s5256_s19   ;;  %v4095_v45 = vld [vmem:[#allocation9] ss:$0 sm:$0xff] }
0x326a   :  { %s5263_s22 = smov [#allocation12]  }
0x326b   :  { %s3924_s24 = sshll.u32 %s5263_s22, 4  ;;  %s3925_s24 = int_to_ptr.vmem [resolvable:$true] %s3924_s24 }
0x326c   :  { %s5215_s13 = scalar_lea.vmem %s3925_s24, 1024  ;;  %p5220_p7 = scmp.lt.s32.totalorder %s3925_s24, %s3925_s24 }
0x326d   :  { %p5216_p6 = scmp.ne.s32.totalorder %s3925_s24, %s5215_s13  ;;  %p5221_p8 = scmp.lt.s32.totalorder %s5215_s13, %s5215_s13 }
0x326f   :  { %p5222_p9 = por %p5221_p8, %p5220_p7 }
0x3271   :  { %p5223_p10 = pnand %p5222_p9, %p5216_p6 }
0x32b6   :  { %v4748_v23 = vpop.f32.mrb[112].mxu0 }
0x32b7   :  { %v3871_v35 = vadd.f32 %v4748_v23, %v4095_v45  ;;  %v3862_v12 = vpop.f32.mrb[113].mxu0 }
0x32b8   :  { %v3863_v38 = vadd.f32 %v4095_v45, %v3862_v12  ;;  %v4749_v13 = vpop.f32.mrb[114].mxu0 }
0x32b9   :  { %3895 = vst [vmem:[#allocation12 + $0x10] sm:$0xff] %v3871_v35  ;;  %v3874_v39 = vadd.f32 %v4749_v13, %v4095_v45  ;;  %v3865_v60 = vpop.f32.mrb[115].mxu0 }
0x32ba   :  { %3893 = vst [vmem:[#allocation12] sm:$0xff] %v3863_v38  ;;  %v3866_v31 = vadd.f32 %v4095_v45, %v3865_v60 }
0x32bb   :  { %3896 = vst [vmem:[#allocation12 + $0x18] sm:$0xff] %v3874_v39 }
0x32bc   :  { %3894 = vst [vmem:[#allocation12 + $0x8] sm:$0xff] %v3866_v31 }
0x3323   :  { %v4752_v21 = vpop.f32.mrb[116].mxu0 }
0x3324   :  { %v3887_v22 = vadd.f32 %v4752_v21, %v4095_v45  ;;  %v3878_v9 = vpop.f32.mrb[117].mxu0 }
0x3325   :  { %v3879_v14 = vadd.f32 %v4095_v45, %v3878_v9  ;;  %v4753_v34 = vpop.f32.mrb[118].mxu0 }
0x3326   :  { %3899 = vst [vmem:[#allocation12 + $0x30] sm:$0xff] %v3887_v22  ;;  %v3890_v42 = vadd.f32 %v4753_v34, %v4095_v45  ;;  %v3881_v32 = vpop.f32.mrb[119].mxu0 }
0x3327   :  { %3897 = vst [vmem:[#allocation12 + $0x20] sm:$0xff] %v3879_v14  ;;  %v3882_v43 = vadd.f32 %v4095_v45, %v3881_v32 }
0x3328   :  { %3900 = vst [vmem:[#allocation12 + $0x38] sm:$0xff] %v3890_v42 }
0x3329   :  { %3898 = vst [vmem:[#allocation12 + $0x28] sm:$0xff] %v3882_v43 }
0x332a   :  { %5226 = shalt.err (!%p5223_p10)
}
0x332b   :  { %s5227_s6 = scalar_lea.hbm %s6568_s11, 1024 }
0x332c   :  { %p5228_p11 = scmp.ne.s32.totalorder %s6568_s11, %s5227_s6  ;;  %p5231_p12 = scmp.lt.u32.totalorder %s5227_s6, %s6568_s11 }
0x332e   :  { %p5233_p13 = pnand %p5231_p12, %p5228_p11 }
0x3330   :  { %5236 = shalt.err (!%p5233_p13)
}
0x3331   :  { %3930 = dma.vmem_to_hbm [thread:$0]  %s3925_s24, 1024, %s6568_s11, [#allocation6], %s5255_s8, %s5255_s8, %s5256_s19  }
0x3332   :  { %5243 = dma.done.wait [#allocation6], 1024  }
0x3333   :  { %5244 = vsyncadd [#allocation6], 4294966272 }
0x3334   :  { %5245 = dma.done.wait [#allocation14], 512  }
0x3335   :  { %5246 = vsyncadd [#allocation14], 4294966784 }
0x3336   :  { %3964 = vsyncpa [#allocation5], 1 }
0x3337   :  { %3965 = vsyncpa [#allocation8], 1 }
0x3338   :  { %3966 = vsyncpa [#allocation11], 1 }
0x3339   :  { %3967 = vsyncpa [#allocation6], 1 }
0x333a   :  { %3968 = vsyncpa [#allocation14], 1 }

</bundles_post_ra>
